<compile_context>
chip_gen: v7x
topology: tpu7x:2x2x1
jax: 0.10.0
libtpu: 0.0.40
codegen_flags: <defaults>
</compile_context>

<pallas_src>
import functools

import jax
import jax.numpy as jnp
from jax.experimental import pallas as pl
from jax.experimental.pallas import tpu as pltpu

IN_FEATURES = 3072
HIDDEN = 512
OUT_FEATURES = 10
OUT_PAD = 128        # lane-dense output width (multiple of 128)
NEG_BIG = -1e30      # finite "minus infinity" for the padded logit columns


def ann_kernel(x_ref, w1_ref, b1_ref, w2_ref, b2_ref, out_ref):
    # x_ref:  (TILE_M, 3072) bf16     w1_ref: (3072, 512) bf16
    # b1_ref: (1, 512)  f32           w2_ref: (512, 128)  f32
    # b2_ref: (1, 128)  f32 (cols >= 10 are -1e30)
    # out_ref:(TILE_M, 128) f32
    h = jnp.dot(x_ref[...], w1_ref[...], preferred_element_type=jnp.float32)
    h = jnp.maximum(h + b1_ref[...], 0.0)

    logits = jnp.dot(h, w2_ref[...], preferred_element_type=jnp.float32) + b2_ref[...]

    # Numerically stable log_softmax over the full 128 lanes.  Padded columns
    # carry -1e30, so exp() contributes exactly 0 and the first 10 columns are
    # numerically identical to a 10-wide log_softmax.
    m = jnp.max(logits, axis=1, keepdims=True)
    shifted = logits - m
    lse = jnp.log(jnp.sum(jnp.exp(shifted), axis=1, keepdims=True))
    out_ref[...] = shifted - lse


def _round_up(x, m):
    return ((x + m - 1) // m) * m


@functools.partial(jax.jit, static_argnames=("tile_m",))
def ann_forward(x_nchw, w1, b1, w2, b2, *, tile_m=256):
    n = x_nchw.shape[0]
    x_flat = x_nchw.reshape(n, IN_FEATURES)  # same semantics as xb.view(-1, 3072)

    # bf16 for the big streaming operands (cast in the wrapper, not in-kernel).
    x_bf16 = x_flat.astype(jnp.bfloat16)
    w1_bf16 = w1.astype(jnp.bfloat16)

    # Lane-dense second layer: pad to 128 output columns.  Dead columns get
    # zero weights and a huge-negative bias so they vanish in the softmax.
    w2_pad = jnp.zeros((HIDDEN, OUT_PAD), jnp.float32).at[:, :OUT_FEATURES].set(w2)
    b2_pad = jnp.full((1, OUT_PAD), NEG_BIG, jnp.float32).at[:, :OUT_FEATURES].set(
        b2.reshape(1, OUT_FEATURES))

    # Batch tile: 256-aligned for large batches (fills the 256x256 MXU on
    # v6e/v7x, multiple of 128 for v5e); shrink to a 16-aligned tile for tiny
    # batches (bf16 sublane packing).
    tile = min(tile_m, _round_up(n, 16))
    n_pad = _round_up(n, tile)
    if n_pad != n:
        x_bf16 = jnp.pad(x_bf16, ((0, n_pad - n), (0, 0)))

    grid = (n_pad // tile,)

    cost = pl.CostEstimate(
        flops=2 * n_pad * IN_FEATURES * HIDDEN + 2 * n_pad * HIDDEN * OUT_PAD,
        transcendentals=n_pad * OUT_PAD + n_pad,          # exp + log per row
        bytes_accessed=(n_pad * IN_FEATURES * 2            # x (bf16)
                        + IN_FEATURES * HIDDEN * 2         # W1 (bf16)
                        + HIDDEN * 4                       # b1
                        + HIDDEN * OUT_PAD * 4             # W2 (padded)
                        + OUT_PAD * 4                      # b2 (padded)
                        + n_pad * OUT_PAD * 4),            # output
    )

    out_pad = pl.pallas_call(
        ann_kernel,
        out_shape=jax.ShapeDtypeStruct((n_pad, OUT_PAD), jnp.float32),
        grid=grid,
        in_specs=[
            pl.BlockSpec((tile, IN_FEATURES), lambda i: (i, 0)),     # x: tiled over batch
            pl.BlockSpec((IN_FEATURES, HIDDEN), lambda i: (0, 0)),   # W1: resident
            pl.BlockSpec((1, HIDDEN), lambda i: (0, 0)),             # b1: resident
            pl.BlockSpec((HIDDEN, OUT_PAD), lambda i: (0, 0)),       # W2: resident
            pl.BlockSpec((1, OUT_PAD), lambda i: (0, 0)),            # b2: resident
        ],
        out_specs=pl.BlockSpec((tile, OUT_PAD), lambda i: (i, 0)),
        compiler_params=pltpu.CompilerParams(
            dimension_semantics=("parallel",),       # shards batch tiles across TCs on v7x
            vmem_limit_bytes=32 * 1024 * 1024,
        ),
        cost_estimate=cost,
    )(x_bf16, w1_bf16, b1, w2_pad, b2_pad)

    return out_pad[:n, :OUT_FEATURES]


def init_params(key):
    """Deterministic init mimicking nn.Linear's U(-1/sqrt(fan_in), 1/sqrt(fan_in))."""
    k1, k2, k3, k4 = jax.random.split(key, 4)
    bound1 = 1.0 / jnp.sqrt(3072.0)
    bound2 = 1.0 / jnp.sqrt(512.0)
    w1 = jax.random.uniform(k1, (IN_FEATURES, HIDDEN), jnp.float32, -bound1, bound1)
    b1 = jax.random.uniform(k2, (1, HIDDEN), jnp.float32, -bound1, bound1)
    w2 = jax.random.uniform(k3, (HIDDEN, OUT_FEATURES), jnp.float32, -bound2, bound2)
    b2 = jax.random.uniform(k4, (1, OUT_FEATURES), jnp.float32, -bound2, bound2)
    return w1, b1, w2, b2


def ann_reference_matched(x_nchw, w1, b1, w2, b2):
    """Pure-JAX reference at the SAME precision as the kernel (bf16 first layer)."""
    x = x_nchw.reshape(x_nchw.shape[0], IN_FEATURES).astype(jnp.bfloat16)
    h = jnp.dot(x, w1.astype(jnp.bfloat16), preferred_element_type=jnp.float32) + b1
    h = jnp.maximum(h, 0.0)
    logits = jnp.dot(h, w2, preferred_element_type=jnp.float32) + b2
    return jax.nn.log_softmax(logits, axis=1)


def ann_reference_f32(x_nchw, w1, b1, w2, b2):
    """Full-f32 reference (module semantics)."""
    x = x_nchw.reshape(x_nchw.shape[0], IN_FEATURES)
    h = jnp.maximum(x @ w1 + b1, 0.0)
    logits = h @ w2 + b2
    return jax.nn.log_softmax(logits, axis=1)


if __name__ == "__main__":
    key = jax.random.PRNGKey(0)
    k_params, k_x = jax.random.split(key)

    # Small deterministic input: NCHW (2, 3, 32, 32) -> 3*32*32 = 3072 features.
    x = jax.random.normal(k_x, (2, 3, 32, 32), dtype=jnp.float32)
    w1, b1, w2, b2 = init_params(k_params)

    out = ann_forward(x, w1, b1, w2, b2)
    out = jax.block_until_ready(out)

    assert out.shape == (2, OUT_FEATURES)
    assert bool(jnp.all(jnp.isfinite(out)))

    # Tight check vs. a matched-precision (bf16 first layer) reference.
    ref_bf16 = ann_reference_matched(x, w1, b1, w2, b2)
    assert jnp.allclose(out, ref_bf16, atol=1e-3, rtol=1e-3)

    # Loose check vs. the full-f32 PyTorch-equivalent math (bf16 weight cast
    # introduces ~1e-3 level differences).
    ref_f32 = ann_reference_f32(x, w1, b1, w2, b2)
    assert jnp.allclose(out, ref_f32, atol=3e-2, rtol=3e-2)

    print("KERNEL_OK")
</pallas_src>

<mosaic_0001>
module attributes {stable_mosaic.version = 11 : i64} {
  func.func @ann_kernel(%arg0: i32, %arg1: memref<16x3072xbf16, #tpu.memory_space<vmem>>, %arg2: memref<3072x512xbf16, #tpu.memory_space<vmem>>, %arg3: memref<1x512xf32, #tpu.memory_space<vmem>>, %arg4: memref<512x128xf32, #tpu.memory_space<vmem>>, %arg5: memref<1x128xf32, #tpu.memory_space<vmem>>, %arg6: memref<16x128xf32, #tpu.memory_space<vmem>>) attributes {dimension_semantics = [#tpu.dimension_semantics<parallel>], iteration_bounds = array<i64: 1>, scalar_prefetch = 0 : i64, scratch_operands = 0 : i64, tpu.core_type = #tpu.core_type<tc>, window_params = [{transform_indices = @transform_0, window_bounds = array<i64: 16, 3072>}, {pipeline_mode = #tpu.pipeline_mode<synchronous>, transform_indices = @transform_1, window_bounds = array<i64: 3072, 512>}, {pipeline_mode = #tpu.pipeline_mode<synchronous>, transform_indices = @transform_2, window_bounds = array<i64: 1, 512>}, {pipeline_mode = #tpu.pipeline_mode<synchronous>, transform_indices = @transform_3, window_bounds = array<i64: 512, 128>}, {pipeline_mode = #tpu.pipeline_mode<synchronous>, transform_indices = @transform_4, window_bounds = array<i64: 1, 128>}, {transform_indices = @transform_5, window_bounds = array<i64: 16, 128>}]} {
    %c0 = arith.constant 0 : index
    %c0_0 = arith.constant 0 : index
    %0 = vector.load %arg1[%c0, %c0_0] : memref<16x3072xbf16, #tpu.memory_space<vmem>>, vector<16x3072xbf16>
    %c0_1 = arith.constant 0 : index
    %c0_2 = arith.constant 0 : index
    %1 = vector.load %arg2[%c0_1, %c0_2] : memref<3072x512xbf16, #tpu.memory_space<vmem>>, vector<3072x512xbf16>
    %cst = arith.constant dense<0.000000e+00> : vector<16x512xf32>
    %2 = tpu.matmul %0, %1, %cst {dimension_numbers = #tpu.dot_dimension_numbers<[1], [0], [0], [1], [0, 0, 1, 1], [], []>} : vector<16x3072xbf16>, vector<3072x512xbf16>, vector<16x512xf32> -> vector<16x512xf32>
    %c0_3 = arith.constant 0 : index
    %c0_4 = arith.constant 0 : index
    %3 = vector.load %arg3[%c0_3, %c0_4] : memref<1x512xf32, #tpu.memory_space<vmem>>, vector<1x512xf32>
    %4 = vector.broadcast %3 : vector<1x512xf32> to vector<16x512xf32>
    %5 = arith.addf %2, %4 : vector<16x512xf32>
    %cst_5 = arith.constant 0.000000e+00 : f32
    %6 = vector.broadcast %cst_5 : f32 to vector<16x512xf32>
    %7 = arith.maximumf %5, %6 : vector<16x512xf32>
    %c0_6 = arith.constant 0 : index
    %c0_7 = arith.constant 0 : index
    %8 = vector.load %arg4[%c0_6, %c0_7] : memref<512x128xf32, #tpu.memory_space<vmem>>, vector<512x128xf32>
    %cst_8 = arith.constant dense<0.000000e+00> : vector<16x128xf32>
    %9 = tpu.matmul %7, %8, %cst_8 {dimension_numbers = #tpu.dot_dimension_numbers<[1], [0], [0], [1], [0, 0, 1, 1], [], []>} : vector<16x512xf32>, vector<512x128xf32>, vector<16x128xf32> -> vector<16x128xf32>
    %c0_9 = arith.constant 0 : index
    %c0_10 = arith.constant 0 : index
    %10 = vector.load %arg5[%c0_9, %c0_10] : memref<1x128xf32, #tpu.memory_space<vmem>>, vector<1x128xf32>
    %11 = vector.broadcast %10 : vector<1x128xf32> to vector<16x128xf32>
    %12 = arith.addf %9, %11 : vector<16x128xf32>
    %cst_11 = arith.constant dense<0xFF800000> : vector<16xf32>
    %13 = vector.multi_reduction <maximumf>, %12, %cst_11 [1] : vector<16x128xf32> to vector<16xf32>
    %14 = vector.shape_cast %13 : vector<16xf32> to vector<16x1xf32>
    %15 = vector.broadcast %14 : vector<16x1xf32> to vector<16x128xf32>
    %16 = arith.subf %12, %15 : vector<16x128xf32>
    %17 = math.exp %16 : vector<16x128xf32>
    %cst_12 = arith.constant dense<0.000000e+00> : vector<16xf32>
    %18 = vector.multi_reduction <add>, %17, %cst_12 [1] : vector<16x128xf32> to vector<16xf32>
    %19 = vector.shape_cast %18 : vector<16xf32> to vector<16x1xf32>
    %20 = math.log %19 : vector<16x1xf32>
    %21 = vector.broadcast %20 : vector<16x1xf32> to vector<16x128xf32>
    %22 = arith.subf %16, %21 : vector<16x128xf32>
    %c0_13 = arith.constant 0 : index
    %c0_14 = arith.constant 0 : index
    %23 = vector.load %arg6[%c0_13, %c0_14] : memref<16x128xf32, #tpu.memory_space<vmem>>, vector<16x128xf32>
    tpu.vector_store %arg6[%c0_13, %c0_14], %22 {strides = array<i32>} : memref<16x128xf32, #tpu.memory_space<vmem>>, vector<16x128xf32>,
    return
  }
  func.func @transform_0(%arg0: i32) -> (i32, i32) {
    %c0_i32 = arith.constant 0 : i32
    %c0_i32_0 = arith.constant 0 : i32
    return %arg0, %c0_i32 : i32, i32
  }
  func.func @transform_1(%arg0: i32) -> (i32, i32) {
    %c0_i32 = arith.constant 0 : i32
    %c0_i32_0 = arith.constant 0 : i32
    %c0_i32_1 = arith.constant 0 : i32
    return %c0_i32, %c0_i32_0 : i32, i32
  }
  func.func @transform_2(%arg0: i32) -> (i32, i32) {
    %c0_i32 = arith.constant 0 : i32
    %c0_i32_0 = arith.constant 0 : i32
    %c0_i32_1 = arith.constant 0 : i32
    return %c0_i32, %c0_i32_0 : i32, i32
  }
  func.func @transform_3(%arg0: i32) -> (i32, i32) {
    %c0_i32 = arith.constant 0 : i32
    %c0_i32_0 = arith.constant 0 : i32
    %c0_i32_1 = arith.constant 0 : i32
    return %c0_i32, %c0_i32_0 : i32, i32
  }
  func.func @transform_4(%arg0: i32) -> (i32, i32) {
    %c0_i32 = arith.constant 0 : i32
    %c0_i32_0 = arith.constant 0 : i32
    %c0_i32_1 = arith.constant 0 : i32
    return %c0_i32, %c0_i32_0 : i32, i32
  }
  func.func @transform_5(%arg0: i32) -> (i32, i32) {
    %c0_i32 = arith.constant 0 : i32
    %c0_i32_0 = arith.constant 0 : i32
    return %arg0, %c0_i32 : i32, i32
  }
}

</mosaic_0001>

<bundles_post_ra>
// kernel: ann_forward.1
= control target key start
LH: loop header
LB: loop body
LE: loop exit
PB: predicated region body
PF: predicated region fallthrough
CT: control target
= control target key end

     0   :  { %s10968_s1 = inlined_call_operand.vmem [shape: bf16[3072,512], index: 1, kind: input, shape index: {}]   ;;  %s10969_s0 = inlined_call_operand.vmem [shape: bf16[16,3072], index: 0, kind: input, shape index: {}]   ;;  %s10970_s3 = inlined_call_operand.vmem [shape: f32[512,128], index: 3, kind: input, shape index: {}]   ;;  %s10971_s2 = inlined_call_operand.vmem [shape: f32[1,512], index: 2, kind: input, shape index: {}]   ;;  %s10972_s4 = inlined_call_operand.vmem [shape: f32[1,128], index: 4, kind: input, shape index: {}]   ;;  %s10973_s5 = inlined_call_operand.vmem [shape: f32[16,128], index: 5, kind: output, shape index: {}]  }
   0x1   :  { %v7110_v0 = vld [vmem:[%s10968_s1 + $0x4] ss:$16 sps:$4 sm:$0xff]   ;;  %v7112_v1 = vld [vmem:[%s10968_s1 + $0xc] ss:$16 sps:$4 sm:$0xff]   ;;  %v7114_v2 = vld [vmem:[%s10968_s1] ss:$16 sps:$4 sm:$0xff]  }
   0x2   :  { %4794 = vmatprep.subr.bf16.mxu0 %v7110_v0  ;;  %v7115_v3 = vld [vmem:[%s10968_s1 + $0x8] ss:$16 sps:$4 sm:$0xff]   ;;  %5310 = vmatprep.subr.bf16.mxu1 %v7112_v1  ;;  %v7116_v4 = vld [vmem:[%s10968_s1 + $0x24] ss:$16 sps:$4 sm:$0xff]   ;;  %v7118_v5 = vld [vmem:[%s10968_s1 + $0x2c] ss:$16 sps:$4 sm:$0xff]  }
   0x3   :  { %4795 = vmatpush1.bf16.msra.mxu0 %v7114_v2  ;;  %5311 = vmatpush1.bf16.msra.mxu1 %v7115_v3  ;;  %v7120_v6 = vld [vmem:[%s10968_s1 + $0x20] ss:$16 sps:$4 sm:$0xff]   ;;  %v7121_v7 = vld [vmem:[%s10968_s1 + $0x28] ss:$16 sps:$4 sm:$0xff]   ;;  %v7122_v8 = vld [vmem:[%s10968_s1 + $0x44] ss:$16 sps:$4 sm:$0xff]  }
   0x4   :  { %4796 = vmatprep.subr.bf16.mxu0 %v7116_v4  ;;  %5312 = vmatprep.subr.bf16.mxu1 %v7118_v5  ;;  %v7124_v9 = vld [vmem:[%s10968_s1 + $0x4c] ss:$16 sps:$4 sm:$0xff]   ;;  %v7126_v10 = vld [vmem:[%s10968_s1 + $0x40] ss:$16 sps:$4 sm:$0xff]   ;;  %v7127_v11 = vld [vmem:[%s10968_s1 + $0x48] ss:$16 sps:$4 sm:$0xff]  }
   0x5   :  { %v7128_v12 = vld [vmem:[%s10968_s1 + $0x64] ss:$16 sps:$4 sm:$0xff]   ;;  %v7130_v13 = vld [vmem:[%s10968_s1 + $0x6c] ss:$16 sps:$4 sm:$0xff]   ;;  %v7132_v14 = vld [vmem:[%s10968_s1 + $0x60] ss:$16 sps:$4 sm:$0xff]  }
   0x6   :  { %v7133_v15 = vld [vmem:[%s10968_s1 + $0x68] ss:$16 sps:$4 sm:$0xff]   ;;  %v7134_v16 = vld [vmem:[%s10968_s1 + $0x84] ss:$16 sps:$4 sm:$0xff]   ;;  %v7136_v17 = vld [vmem:[%s10968_s1 + $0x8c] ss:$16 sps:$4 sm:$0xff]  }
   0x7   :  { %4797 = vmatpush1.bf16.msra.mxu0 %v7120_v6  ;;  %5313 = vmatpush1.bf16.msra.mxu1 %v7121_v7  ;;  %v7138_v18 = vld [vmem:[%s10968_s1 + $0x80] ss:$16 sps:$4 sm:$0xff]   ;;  %v7139_v19 = vld [vmem:[%s10968_s1 + $0x88] ss:$16 sps:$4 sm:$0xff]   ;;  %v7140_v20 = vld [vmem:[%s10968_s1 + $0xa4] ss:$16 sps:$4 sm:$0xff]  }
   0x8   :  { %4798 = vmatprep.subr.bf16.mxu0 %v7122_v8  ;;  %5314 = vmatprep.subr.bf16.mxu1 %v7124_v9  ;;  %v7142_v21 = vld [vmem:[%s10968_s1 + $0xac] ss:$16 sps:$4 sm:$0xff]   ;;  %v7144_v22 = vld [vmem:[%s10968_s1 + $0xa0] ss:$16 sps:$4 sm:$0xff]   ;;  %v7145_v23 = vld [vmem:[%s10968_s1 + $0xa8] ss:$16 sps:$4 sm:$0xff]  }
   0x9   :  { %v7146_v24 = vld [vmem:[%s10968_s1 + $0xc4] ss:$16 sps:$4 sm:$0xff]   ;;  %v7148_v25 = vld [vmem:[%s10968_s1 + $0xcc] ss:$16 sps:$4 sm:$0xff]   ;;  %v7150_v26 = vld [vmem:[%s10968_s1 + $0xc0] ss:$16 sps:$4 sm:$0xff]  }
   0xa   :  { %v7151_v27 = vld [vmem:[%s10968_s1 + $0xc8] ss:$16 sps:$4 sm:$0xff]   ;;  %v7152_v28 = vld [vmem:[%s10968_s1 + $0xe4] ss:$16 sps:$4 sm:$0xff]   ;;  %v7154_v29 = vld [vmem:[%s10968_s1 + $0xec] ss:$16 sps:$4 sm:$0xff]  }
   0xb   :  { %4799 = vmatpush1.bf16.msra.mxu0 %v7126_v10  ;;  %5315 = vmatpush1.bf16.msra.mxu1 %v7127_v11  ;;  %v7156_v30 = vld [vmem:[%s10968_s1 + $0xe0] ss:$16 sps:$4 sm:$0xff]   ;;  %v7157_v31 = vld [vmem:[%s10968_s1 + $0xe8] ss:$16 sps:$4 sm:$0xff]   ;;  %v7158_v32 = vld [vmem:[%s10968_s1 + $0x104] ss:$16 sps:$4 sm:$0xff]  }
   0xc   :  { %4800 = vmatprep.subr.bf16.mxu0 %v7128_v12  ;;  %5316 = vmatprep.subr.bf16.mxu1 %v7130_v13  ;;  %v7160_v33 = vld [vmem:[%s10968_s1 + $0x10c] ss:$16 sps:$4 sm:$0xff]   ;;  %v7162_v34 = vld [vmem:[%s10968_s1 + $0x100] ss:$16 sps:$4 sm:$0xff]   ;;  %v7163_v35 = vld [vmem:[%s10968_s1 + $0x108] ss:$16 sps:$4 sm:$0xff]  }
   0xd   :  { %v7164_v36 = vld [vmem:[%s10968_s1 + $0x124] ss:$16 sps:$4 sm:$0xff]   ;;  %v7166_v37 = vld [vmem:[%s10968_s1 + $0x12c] ss:$16 sps:$4 sm:$0xff]   ;;  %v7168_v38 = vld [vmem:[%s10968_s1 + $0x120] ss:$16 sps:$4 sm:$0xff]  }
   0xe   :  { %v7169_v39 = vld [vmem:[%s10968_s1 + $0x128] ss:$16 sps:$4 sm:$0xff]   ;;  %v7170_v40 = vld [vmem:[%s10968_s1 + $0x144] ss:$16 sps:$4 sm:$0xff]   ;;  %v7172_v41 = vld [vmem:[%s10968_s1 + $0x14c] ss:$16 sps:$4 sm:$0xff]  }
   0xf   :  { %4801 = vmatpush1.bf16.msra.mxu0 %v7132_v14  ;;  %5317 = vmatpush1.bf16.msra.mxu1 %v7133_v15  ;;  %v7174_v42 = vld [vmem:[%s10968_s1 + $0x140] ss:$16 sps:$4 sm:$0xff]   ;;  %v7175_v43 = vld [vmem:[%s10968_s1 + $0x148] ss:$16 sps:$4 sm:$0xff]   ;;  %v7176_v44 = vld [vmem:[%s10968_s1 + $0x164] ss:$16 sps:$4 sm:$0xff]  }
  0x10   :  { %4802 = vmatprep.subr.bf16.mxu0 %v7134_v16  ;;  %5318 = vmatprep.subr.bf16.mxu1 %v7136_v17  ;;  %v7178_v45 = vld [vmem:[%s10968_s1 + $0x16c] ss:$16 sps:$4 sm:$0xff]   ;;  %v20_v46 = vld [vmem:[%s10969_s0] sm:$0xff]  ;;  %v7181_v49 = vld [vmem:[%s10968_s1 + $0x168] ss:$16 sps:$4 sm:$0xff]  }
  0x11   :  { %v32_v47 = vld [vmem:[%s10969_s0 + $0x60] sm:$0xff]  ;;  %v7184_v52 = vld [vmem:[%s10968_s1 + $0x18c] ss:$16 sps:$4 sm:$0xff]   ;;  %v7187_v54 = vld [vmem:[%s10968_s1 + $0x188] ss:$16 sps:$4 sm:$0xff]  }
  0x12   :  { %v7180_v48 = vld [vmem:[%s10968_s1 + $0x160] ss:$16 sps:$4 sm:$0xff]   ;;  %v6082_v50 = vcombine.high %v20_v46, %v32_v47  ;;  %v7182_v51 = vld [vmem:[%s10968_s1 + $0x184] ss:$16 sps:$4 sm:$0xff]   ;;  %v7190_v56 = vld [vmem:[%s10968_s1 + $0x1ac] ss:$16 sps:$4 sm:$0xff]   ;;  %v6081_v5 = vcombine.low %v20_v46, %v32_v47 }
  0x13   :  { %4803 = vmatpush1.bf16.msra.mxu0 %v7138_v18  ;;  %5319 = vmatpush1.bf16.msra.mxu1 %v7139_v19  ;;  %v7186_v53 = vld [vmem:[%s10968_s1 + $0x180] ss:$16 sps:$4 sm:$0xff]   ;;  %v7188_v55 = vld [vmem:[%s10968_s1 + $0x1a4] ss:$16 sps:$4 sm:$0xff]   ;;  %v7193_v58 = vld [vmem:[%s10968_s1 + $0x1a8] ss:$16 sps:$4 sm:$0xff]  }
  0x14   :  { %4804 = vmatprep.subr.bf16.mxu0 %v7140_v20  ;;  %5320 = vmatprep.subr.bf16.mxu1 %v7142_v21  ;;  %v7192_v57 = vld [vmem:[%s10968_s1 + $0x1a0] ss:$16 sps:$4 sm:$0xff]   ;;  %v7194_v59 = vld [vmem:[%s10968_s1 + $0x1c4] ss:$16 sps:$4 sm:$0xff]   ;;  %v7196_v60 = vld [vmem:[%s10968_s1 + $0x1cc] ss:$16 sps:$4 sm:$0xff]  }
  0x15   :  { %4826 = vmatprep.mubr.bf16.mxu0 %v6082_v50  ;;  %5342 = vmatprep.mubr.bf16.mxu1 %v6082_v50  ;;  %v7198_v61 = vld [vmem:[%s10968_s1 + $0x1c0] ss:$16 sps:$4 sm:$0xff]   ;;  %v7199_v62 = vld [vmem:[%s10968_s1 + $0x1c8] ss:$16 sps:$4 sm:$0xff]   ;;  %v7200_v63 = vld [vmem:[%s10968_s1 + $0x1e4] ss:$16 sps:$4 sm:$0xff]  }
  0x16   :  { %v7202_v0 = vld [vmem:[%s10968_s1 + $0x1ec] ss:$16 sps:$4 sm:$0xff]   ;;  %v7204_v1 = vld [vmem:[%s10968_s1 + $0x1e0] ss:$16 sps:$4 sm:$0xff]   ;;  %v7205_v2 = vld [vmem:[%s10968_s1 + $0x1e8] ss:$16 sps:$4 sm:$0xff]  }
  0x17   :  { %4805 = vmatpush1.bf16.msra.mxu0 %v7144_v22  ;;  %5321 = vmatpush1.bf16.msra.mxu1 %v7145_v23  ;;  %v7208_v3 = vld [vmem:[%s10968_s1 + $0x204] ss:$16 sps:$4 sm:$0xff]   ;;  %v7211_v4 = vld [vmem:[%s10968_s1 + $0x20c] ss:$16 sps:$4 sm:$0xff]   ;;  %v7206_v6 = vld [vmem:[%s10968_s1 + $0x200] ss:$16 sps:$4 sm:$0xff]  }
  0x18   :  { %4806 = vmatprep.subr.bf16.mxu0 %v7146_v24  ;;  %5322 = vmatprep.subr.bf16.mxu1 %v7148_v25  ;;  %v7209_v7 = vld [vmem:[%s10968_s1 + $0x208] ss:$16 sps:$4 sm:$0xff]   ;;  %v7214_v8 = vld [vmem:[%s10968_s1 + $0x224] ss:$16 sps:$4 sm:$0xff]   ;;  %v7217_v9 = vld [vmem:[%s10968_s1 + $0x22c] ss:$16 sps:$4 sm:$0xff]  }
  0x19   :  { %v7212_v10 = vld [vmem:[%s10968_s1 + $0x220] ss:$16 sps:$4 sm:$0xff]   ;;  %v7215_v11 = vld [vmem:[%s10968_s1 + $0x228] ss:$16 sps:$4 sm:$0xff]   ;;  %v7220_v12 = vld [vmem:[%s10968_s1 + $0x244] ss:$16 sps:$4 sm:$0xff]  }
  0x1a   :  { %v7223_v13 = vld [vmem:[%s10968_s1 + $0x24c] ss:$16 sps:$4 sm:$0xff]   ;;  %v7218_v14 = vld [vmem:[%s10968_s1 + $0x240] ss:$16 sps:$4 sm:$0xff]   ;;  %v7221_v15 = vld [vmem:[%s10968_s1 + $0x248] ss:$16 sps:$4 sm:$0xff]  }
  0x1b   :  { %4807 = vmatpush1.bf16.msra.mxu0 %v7150_v26  ;;  %5323 = vmatpush1.bf16.msra.mxu1 %v7151_v27  ;;  %v7226_v16 = vld [vmem:[%s10968_s1 + $0x264] ss:$16 sps:$4 sm:$0xff]   ;;  %v7229_v17 = vld [vmem:[%s10968_s1 + $0x26c] ss:$16 sps:$4 sm:$0xff]   ;;  %v7224_v18 = vld [vmem:[%s10968_s1 + $0x260] ss:$16 sps:$4 sm:$0xff]  }
  0x1c   :  { %4808 = vmatprep.subr.bf16.mxu0 %v7152_v28  ;;  %5324 = vmatprep.subr.bf16.mxu1 %v7154_v29  ;;  %v7227_v19 = vld [vmem:[%s10968_s1 + $0x268] ss:$16 sps:$4 sm:$0xff]   ;;  %v7232_v20 = vld [vmem:[%s10968_s1 + $0x284] ss:$16 sps:$4 sm:$0xff]   ;;  %v7235_v21 = vld [vmem:[%s10968_s1 + $0x28c] ss:$16 sps:$4 sm:$0xff]  }
  0x1d   :  { %v7230_v22 = vld [vmem:[%s10968_s1 + $0x280] ss:$16 sps:$4 sm:$0xff]   ;;  %v7233_v23 = vld [vmem:[%s10968_s1 + $0x288] ss:$16 sps:$4 sm:$0xff]   ;;  %v7238_v24 = vld [vmem:[%s10968_s1 + $0x2a4] ss:$16 sps:$4 sm:$0xff]  }
  0x1e   :  { %v7241_v25 = vld [vmem:[%s10968_s1 + $0x2ac] ss:$16 sps:$4 sm:$0xff]   ;;  %v7236_v26 = vld [vmem:[%s10968_s1 + $0x2a0] ss:$16 sps:$4 sm:$0xff]   ;;  %v7239_v27 = vld [vmem:[%s10968_s1 + $0x2a8] ss:$16 sps:$4 sm:$0xff]  }
  0x1f   :  { %4809 = vmatpush1.bf16.msra.mxu0 %v7156_v30  ;;  %5325 = vmatpush1.bf16.msra.mxu1 %v7157_v31  ;;  %v7244_v28 = vld [vmem:[%s10968_s1 + $0x2c4] ss:$16 sps:$4 sm:$0xff]   ;;  %v7247_v29 = vld [vmem:[%s10968_s1 + $0x2cc] ss:$16 sps:$4 sm:$0xff]   ;;  %v7263_v46 = vld [vmem:[%s10968_s1 + $0x328] ss:$16 sps:$4 sm:$0xff]  }
  0x20   :  { %4810 = vmatprep.subr.bf16.mxu0 %v7158_v32  ;;  %5326 = vmatprep.subr.bf16.mxu1 %v7160_v33  ;;  %v8579_v30 = vld [vmem:[%s10969_s0 + $0x8] sm:$0xff]  ;;  %v7242_v32 = vld [vmem:[%s10968_s1 + $0x2c0] ss:$16 sps:$4 sm:$0xff]   ;;  %v7268_v47 = vld [vmem:[%s10968_s1 + $0x344] ss:$16 sps:$4 sm:$0xff]  }
  0x21   :  { %v8584_v31 = vld [vmem:[%s10969_s0 + $0x68] sm:$0xff] }
  0x22   :  { %v7245_v33 = vld [vmem:[%s10968_s1 + $0x2c8] ss:$16 sps:$4 sm:$0xff]  }
  0x23   :  { %4811 = vmatpush1.bf16.msra.mxu0 %v7162_v34  ;;  %5327 = vmatpush1.bf16.msra.mxu1 %v7163_v35  ;;  %v6084_v34 = vcombine.high %v8579_v30, %v8584_v31  ;;  %v7250_v35 = vld [vmem:[%s10968_s1 + $0x2e4] ss:$16 sps:$4 sm:$0xff]   ;;  %v7269_v50 = vld [vmem:[%s10968_s1 + $0x348] ss:$16 sps:$4 sm:$0xff]  }
  0x24   :  { %4812 = vmatprep.subr.bf16.mxu0 %v7164_v36  ;;  %5328 = vmatprep.subr.bf16.mxu1 %v7166_v37  ;;  %v7253_v36 = vld [vmem:[%s10968_s1 + $0x2ec] ss:$16 sps:$4 sm:$0xff]   ;;  %v7248_v37 = vld [vmem:[%s10968_s1 + $0x2e0] ss:$16 sps:$4 sm:$0xff]  }
  0x27   :  { %4813 = vmatpush1.bf16.msra.mxu0 %v7168_v38  ;;  %5329 = vmatpush1.bf16.msra.mxu1 %v7169_v39  ;;  %v7251_v38 = vld [vmem:[%s10968_s1 + $0x2e8] ss:$16 sps:$4 sm:$0xff]   ;;  %v7256_v39 = vld [vmem:[%s10968_s1 + $0x304] ss:$16 sps:$4 sm:$0xff]  }
  0x28   :  { %4814 = vmatprep.subr.bf16.mxu0 %v7170_v40  ;;  %5330 = vmatprep.subr.bf16.mxu1 %v7172_v41  ;;  %v7259_v40 = vld [vmem:[%s10968_s1 + $0x30c] ss:$16 sps:$4 sm:$0xff]   ;;  %v7254_v41 = vld [vmem:[%s10968_s1 + $0x300] ss:$16 sps:$4 sm:$0xff]  }
  0x2b   :  { %4815 = vmatpush1.bf16.msra.mxu0 %v7174_v42  ;;  %5331 = vmatpush1.bf16.msra.mxu1 %v7175_v43  ;;  %v7257_v42 = vld [vmem:[%s10968_s1 + $0x308] ss:$16 sps:$4 sm:$0xff]   ;;  %v7262_v43 = vld [vmem:[%s10968_s1 + $0x324] ss:$16 sps:$4 sm:$0xff]  }
  0x2c   :  { %4816 = vmatprep.subr.bf16.mxu0 %v7176_v44  ;;  %5332 = vmatprep.subr.bf16.mxu1 %v7178_v45  ;;  %v7265_v44 = vld [vmem:[%s10968_s1 + $0x32c] ss:$16 sps:$4 sm:$0xff]   ;;  %v7260_v45 = vld [vmem:[%s10968_s1 + $0x320] ss:$16 sps:$4 sm:$0xff]  }
  0x2f   :  { %4817 = vmatpush1.bf16.msra.mxu0 %v7180_v48  ;;  %5333 = vmatpush1.bf16.msra.mxu1 %v7181_v49  ;;  %v7271_v48 = vld [vmem:[%s10968_s1 + $0x34c] ss:$16 sps:$4 sm:$0xff]   ;;  %v7266_v49 = vld [vmem:[%s10968_s1 + $0x340] ss:$16 sps:$4 sm:$0xff]  }
  0x30   :  { %4818 = vmatprep.subr.bf16.mxu0 %v7182_v51  ;;  %5334 = vmatprep.subr.bf16.mxu1 %v7184_v52  ;;  %v7274_v51 = vld [vmem:[%s10968_s1 + $0x364] ss:$16 sps:$4 sm:$0xff]   ;;  %v7277_v52 = vld [vmem:[%s10968_s1 + $0x36c] ss:$16 sps:$4 sm:$0xff]  }
  0x33   :  { %4819 = vmatpush1.bf16.msra.mxu0 %v7186_v53  ;;  %5335 = vmatpush1.bf16.msra.mxu1 %v7187_v54  ;;  %v7272_v53 = vld [vmem:[%s10968_s1 + $0x360] ss:$16 sps:$4 sm:$0xff]   ;;  %v7275_v54 = vld [vmem:[%s10968_s1 + $0x368] ss:$16 sps:$4 sm:$0xff]  }
  0x34   :  { %4820 = vmatprep.subr.bf16.mxu0 %v7188_v55  ;;  %5336 = vmatprep.subr.bf16.mxu1 %v7190_v56  ;;  %v7280_v55 = vld [vmem:[%s10968_s1 + $0x384] ss:$16 sps:$4 sm:$0xff]   ;;  %v7283_v56 = vld [vmem:[%s10968_s1 + $0x38c] ss:$16 sps:$4 sm:$0xff]  }
  0x37   :  { %4821 = vmatpush1.bf16.msra.mxu0 %v7192_v57  ;;  %5337 = vmatpush1.bf16.msra.mxu1 %v7193_v58  ;;  %v7278_v57 = vld [vmem:[%s10968_s1 + $0x380] ss:$16 sps:$4 sm:$0xff]   ;;  %v7281_v58 = vld [vmem:[%s10968_s1 + $0x388] ss:$16 sps:$4 sm:$0xff]  }
  0x38   :  { %4822 = vmatprep.subr.bf16.mxu0 %v7194_v59  ;;  %5338 = vmatprep.subr.bf16.mxu1 %v7196_v60  ;;  %v7286_v59 = vld [vmem:[%s10968_s1 + $0x3a4] ss:$16 sps:$4 sm:$0xff]   ;;  %v7289_v60 = vld [vmem:[%s10968_s1 + $0x3ac] ss:$16 sps:$4 sm:$0xff]  }
  0x3b   :  { %4823 = vmatpush1.bf16.msra.mxu0 %v7198_v61  ;;  %5339 = vmatpush1.bf16.msra.mxu1 %v7199_v62  ;;  %v7284_v61 = vld [vmem:[%s10968_s1 + $0x3a0] ss:$16 sps:$4 sm:$0xff]   ;;  %v7287_v62 = vld [vmem:[%s10968_s1 + $0x3a8] ss:$16 sps:$4 sm:$0xff]  }
  0x3c   :  { %4824 = vmatprep.subr.bf16.mxu0 %v7200_v63  ;;  %5340 = vmatprep.subr.bf16.mxu1 %v7202_v0  ;;  %v7292_v63 = vld [vmem:[%s10968_s1 + $0x3c4] ss:$16 sps:$4 sm:$0xff]   ;;  %v7295_v0 = vld [vmem:[%s10968_s1 + $0x3cc] ss:$16 sps:$4 sm:$0xff]  }
  0x3f   :  { %4825 = vmatpush1.bf16.msra.mxu0 %v7204_v1  ;;  %5341 = vmatpush1.bf16.msra.mxu1 %v7205_v2  ;;  %v7290_v1 = vld [vmem:[%s10968_s1 + $0x3c0] ss:$16 sps:$4 sm:$0xff]   ;;  %v7293_v2 = vld [vmem:[%s10968_s1 + $0x3c8] ss:$16 sps:$4 sm:$0xff]  }
  0x40   :  { %4837 = vmatprep.subr.bf16.mxu0 %v7208_v3  ;;  %5353 = vmatprep.subr.bf16.mxu1 %v7211_v4  ;;  %v7298_v3 = vld [vmem:[%s10968_s1 + $0x3e4] ss:$16 sps:$4 sm:$0xff]   ;;  %v7301_v4 = vld [vmem:[%s10968_s1 + $0x3ec] ss:$16 sps:$4 sm:$0xff]  }
  0x42   :  { %4827 = vmatmul.mubr.bf16.vlgmr.msra.gmra.mrb[0].mxu0 %v6081_v5  ;;  %5343 = vmatmul.mubr.bf16.vlgmr.msra.gmra.mrb[0].mxu1 %v6081_v5  ;;  %v7296_v5 = vld [vmem:[%s10968_s1 + $0x3e0] ss:$16 sps:$4 sm:$0xff]  }
  0x43   :  { %4838 = vmatpush1.bf16.msra.mxu0 %v7206_v6  ;;  %5354 = vmatpush1.bf16.msra.mxu1 %v7209_v7  ;;  %v7299_v6 = vld [vmem:[%s10968_s1 + $0x3e8] ss:$16 sps:$4 sm:$0xff]   ;;  %v7304_v7 = vld [vmem:[%s10968_s1 + $0x404] ss:$16 sps:$4 sm:$0xff]  }
  0x44   :  { %4839 = vmatprep.subr.bf16.mxu0 %v7214_v8  ;;  %5355 = vmatprep.subr.bf16.mxu1 %v7217_v9  ;;  %v7307_v8 = vld [vmem:[%s10968_s1 + $0x40c] ss:$16 sps:$4 sm:$0xff]   ;;  %v6083_v9 = vcombine.low %v8579_v30, %v8584_v31  ;;  %v7329_v30 = vld [vmem:[%s10968_s1 + $0x488] ss:$16 sps:$4 sm:$0xff]   ;;  %v7334_v31 = vld [vmem:[%s10968_s1 + $0x4a4] ss:$16 sps:$4 sm:$0xff]  }
  0x45   :  { %4869 = vmatprep.mubr.bf16.mxu0 %v6084_v34  ;;  %5385 = vmatprep.mubr.bf16.mxu1 %v6084_v34  ;;  %v7335_v34 = vld [vmem:[%s10968_s1 + $0x4a8] ss:$16 sps:$4 sm:$0xff]  }
  0x47   :  { %4840 = vmatpush1.bf16.msra.mxu0 %v7212_v10  ;;  %5356 = vmatpush1.bf16.msra.mxu1 %v7215_v11  ;;  %v7302_v10 = vld [vmem:[%s10968_s1 + $0x400] ss:$16 sps:$4 sm:$0xff]   ;;  %v7305_v11 = vld [vmem:[%s10968_s1 + $0x408] ss:$16 sps:$4 sm:$0xff]  }
  0x48   :  { %4841 = vmatprep.subr.bf16.mxu0 %v7220_v12  ;;  %5357 = vmatprep.subr.bf16.mxu1 %v7223_v13  ;;  %v7310_v12 = vld [vmem:[%s10968_s1 + $0x424] ss:$16 sps:$4 sm:$0xff]   ;;  %v7313_v13 = vld [vmem:[%s10968_s1 + $0x42c] ss:$16 sps:$4 sm:$0xff]  }
  0x4b   :  { %4842 = vmatpush1.bf16.msra.mxu0 %v7218_v14  ;;  %5358 = vmatpush1.bf16.msra.mxu1 %v7221_v15  ;;  %v8725_v14 = vld [vmem:[%s10969_s0 + $0x10] sm:$0xff] }
  0x4c   :  { %4843 = vmatprep.subr.bf16.mxu0 %v7226_v16  ;;  %5359 = vmatprep.subr.bf16.mxu1 %v7229_v17  ;;  %v8730_v15 = vld [vmem:[%s10969_s0 + $0x70] sm:$0xff] }
  0x4d   :  { %v6086_v16 = vcombine.high %v8725_v14, %v8730_v15  ;;  %v7308_v17 = vld [vmem:[%s10968_s1 + $0x420] ss:$16 sps:$4 sm:$0xff]  }
  0x4f   :  { %4844 = vmatpush1.bf16.msra.mxu0 %v7224_v18  ;;  %5360 = vmatpush1.bf16.msra.mxu1 %v7227_v19  ;;  %v7311_v18 = vld [vmem:[%s10968_s1 + $0x428] ss:$16 sps:$4 sm:$0xff]   ;;  %v7316_v19 = vld [vmem:[%s10968_s1 + $0x444] ss:$16 sps:$4 sm:$0xff]  }
  0x50   :  { %4845 = vmatprep.subr.bf16.mxu0 %v7232_v20  ;;  %5361 = vmatprep.subr.bf16.mxu1 %v7235_v21  ;;  %v7319_v20 = vld [vmem:[%s10968_s1 + $0x44c] ss:$16 sps:$4 sm:$0xff]   ;;  %v7314_v21 = vld [vmem:[%s10968_s1 + $0x440] ss:$16 sps:$4 sm:$0xff]  }
  0x53   :  { %4846 = vmatpush1.bf16.msra.mxu0 %v7230_v22  ;;  %5362 = vmatpush1.bf16.msra.mxu1 %v7233_v23  ;;  %v7317_v22 = vld [vmem:[%s10968_s1 + $0x448] ss:$16 sps:$4 sm:$0xff]   ;;  %v7322_v23 = vld [vmem:[%s10968_s1 + $0x464] ss:$16 sps:$4 sm:$0xff]  }
  0x54   :  { %4847 = vmatprep.subr.bf16.mxu0 %v7238_v24  ;;  %5363 = vmatprep.subr.bf16.mxu1 %v7241_v25  ;;  %v7325_v24 = vld [vmem:[%s10968_s1 + $0x46c] ss:$16 sps:$4 sm:$0xff]   ;;  %v7320_v25 = vld [vmem:[%s10968_s1 + $0x460] ss:$16 sps:$4 sm:$0xff]  }
  0x57   :  { %4848 = vmatpush1.bf16.msra.mxu0 %v7236_v26  ;;  %5364 = vmatpush1.bf16.msra.mxu1 %v7239_v27  ;;  %v7323_v26 = vld [vmem:[%s10968_s1 + $0x468] ss:$16 sps:$4 sm:$0xff]   ;;  %v7328_v27 = vld [vmem:[%s10968_s1 + $0x484] ss:$16 sps:$4 sm:$0xff]  }
  0x58   :  { %4849 = vmatprep.subr.bf16.mxu0 %v7244_v28  ;;  %5365 = vmatprep.subr.bf16.mxu1 %v7247_v29  ;;  %v7331_v28 = vld [vmem:[%s10968_s1 + $0x48c] ss:$16 sps:$4 sm:$0xff]   ;;  %v7326_v29 = vld [vmem:[%s10968_s1 + $0x480] ss:$16 sps:$4 sm:$0xff]  }
  0x5b   :  { %4850 = vmatpush1.bf16.msra.mxu0 %v7242_v32  ;;  %5366 = vmatpush1.bf16.msra.mxu1 %v7245_v33  ;;  %v7337_v32 = vld [vmem:[%s10968_s1 + $0x4ac] ss:$16 sps:$4 sm:$0xff]   ;;  %v7332_v33 = vld [vmem:[%s10968_s1 + $0x4a0] ss:$16 sps:$4 sm:$0xff]  }
  0x5c   :  { %4851 = vmatprep.subr.bf16.mxu0 %v7250_v35  ;;  %5367 = vmatprep.subr.bf16.mxu1 %v7253_v36  ;;  %v7340_v35 = vld [vmem:[%s10968_s1 + $0x4c4] ss:$16 sps:$4 sm:$0xff]   ;;  %v7343_v36 = vld [vmem:[%s10968_s1 + $0x4cc] ss:$16 sps:$4 sm:$0xff]  }
  0x5f   :  { %4852 = vmatpush1.bf16.msra.mxu0 %v7248_v37  ;;  %5368 = vmatpush1.bf16.msra.mxu1 %v7251_v38  ;;  %v7338_v37 = vld [vmem:[%s10968_s1 + $0x4c0] ss:$16 sps:$4 sm:$0xff]   ;;  %v7341_v38 = vld [vmem:[%s10968_s1 + $0x4c8] ss:$16 sps:$4 sm:$0xff]  }
  0x60   :  { %4853 = vmatprep.subr.bf16.mxu0 %v7256_v39  ;;  %5369 = vmatprep.subr.bf16.mxu1 %v7259_v40  ;;  %v7346_v39 = vld [vmem:[%s10968_s1 + $0x4e4] ss:$16 sps:$4 sm:$0xff]   ;;  %v7349_v40 = vld [vmem:[%s10968_s1 + $0x4ec] ss:$16 sps:$4 sm:$0xff]  }
  0x63   :  { %4854 = vmatpush1.bf16.msra.mxu0 %v7254_v41  ;;  %5370 = vmatpush1.bf16.msra.mxu1 %v7257_v42  ;;  %v7344_v41 = vld [vmem:[%s10968_s1 + $0x4e0] ss:$16 sps:$4 sm:$0xff]   ;;  %v7347_v42 = vld [vmem:[%s10968_s1 + $0x4e8] ss:$16 sps:$4 sm:$0xff]  }
  0x64   :  { %4855 = vmatprep.subr.bf16.mxu0 %v7262_v43  ;;  %5371 = vmatprep.subr.bf16.mxu1 %v7265_v44  ;;  %v7352_v43 = vld [vmem:[%s10968_s1 + $0x504] ss:$16 sps:$4 sm:$0xff]   ;;  %v7355_v44 = vld [vmem:[%s10968_s1 + $0x50c] ss:$16 sps:$4 sm:$0xff]  }
  0x67   :  { %4856 = vmatpush1.bf16.msra.mxu0 %v7260_v45  ;;  %5372 = vmatpush1.bf16.msra.mxu1 %v7263_v46  ;;  %v7350_v45 = vld [vmem:[%s10968_s1 + $0x500] ss:$16 sps:$4 sm:$0xff]   ;;  %v7353_v46 = vld [vmem:[%s10968_s1 + $0x508] ss:$16 sps:$4 sm:$0xff]  }
  0x68   :  { %4857 = vmatprep.subr.bf16.mxu0 %v7268_v47  ;;  %5373 = vmatprep.subr.bf16.mxu1 %v7271_v48  ;;  %v7358_v47 = vld [vmem:[%s10968_s1 + $0x524] ss:$16 sps:$4 sm:$0xff]   ;;  %v7361_v48 = vld [vmem:[%s10968_s1 + $0x52c] ss:$16 sps:$4 sm:$0xff]  }
  0x6b   :  { %4858 = vmatpush1.bf16.msra.mxu0 %v7266_v49  ;;  %5374 = vmatpush1.bf16.msra.mxu1 %v7269_v50  ;;  %v7356_v49 = vld [vmem:[%s10968_s1 + $0x520] ss:$16 sps:$4 sm:$0xff]   ;;  %v7359_v50 = vld [vmem:[%s10968_s1 + $0x528] ss:$16 sps:$4 sm:$0xff]  }
  0x6c   :  { %4859 = vmatprep.subr.bf16.mxu0 %v7274_v51  ;;  %5375 = vmatprep.subr.bf16.mxu1 %v7277_v52  ;;  %v7364_v51 = vld [vmem:[%s10968_s1 + $0x544] ss:$16 sps:$4 sm:$0xff]   ;;  %v7367_v52 = vld [vmem:[%s10968_s1 + $0x54c] ss:$16 sps:$4 sm:$0xff]  }
  0x6f   :  { %4860 = vmatpush1.bf16.msra.mxu0 %v7272_v53  ;;  %5376 = vmatpush1.bf16.msra.mxu1 %v7275_v54  ;;  %v7362_v53 = vld [vmem:[%s10968_s1 + $0x540] ss:$16 sps:$4 sm:$0xff]   ;;  %v7365_v54 = vld [vmem:[%s10968_s1 + $0x548] ss:$16 sps:$4 sm:$0xff]  }
  0x70   :  { %4861 = vmatprep.subr.bf16.mxu0 %v7280_v55  ;;  %5377 = vmatprep.subr.bf16.mxu1 %v7283_v56  ;;  %v7370_v55 = vld [vmem:[%s10968_s1 + $0x564] ss:$16 sps:$4 sm:$0xff]   ;;  %v7373_v56 = vld [vmem:[%s10968_s1 + $0x56c] ss:$16 sps:$4 sm:$0xff]  }
  0x73   :  { %4862 = vmatpush1.bf16.msra.mxu0 %v7278_v57  ;;  %5378 = vmatpush1.bf16.msra.mxu1 %v7281_v58  ;;  %v7368_v57 = vld [vmem:[%s10968_s1 + $0x560] ss:$16 sps:$4 sm:$0xff]   ;;  %v7371_v58 = vld [vmem:[%s10968_s1 + $0x568] ss:$16 sps:$4 sm:$0xff]  }
  0x74   :  { %4863 = vmatprep.subr.bf16.mxu0 %v7286_v59  ;;  %5379 = vmatprep.subr.bf16.mxu1 %v7289_v60  ;;  %v7376_v59 = vld [vmem:[%s10968_s1 + $0x584] ss:$16 sps:$4 sm:$0xff]   ;;  %v7379_v60 = vld [vmem:[%s10968_s1 + $0x58c] ss:$16 sps:$4 sm:$0xff]  }
  0x77   :  { %4864 = vmatpush1.bf16.msra.mxu0 %v7284_v61  ;;  %5380 = vmatpush1.bf16.msra.mxu1 %v7287_v62  ;;  %v7374_v61 = vld [vmem:[%s10968_s1 + $0x580] ss:$16 sps:$4 sm:$0xff]   ;;  %v7377_v62 = vld [vmem:[%s10968_s1 + $0x588] ss:$16 sps:$4 sm:$0xff]  }
  0x78   :  { %4865 = vmatprep.subr.bf16.mxu0 %v7292_v63  ;;  %5381 = vmatprep.subr.bf16.mxu1 %v7295_v0  ;;  %v7382_v63 = vld [vmem:[%s10968_s1 + $0x5a4] ss:$16 sps:$4 sm:$0xff]   ;;  %v7385_v0 = vld [vmem:[%s10968_s1 + $0x5ac] ss:$16 sps:$4 sm:$0xff]  }
  0x7b   :  { %4866 = vmatpush1.bf16.msra.mxu0 %v7290_v1  ;;  %5382 = vmatpush1.bf16.msra.mxu1 %v7293_v2  ;;  %v7380_v1 = vld [vmem:[%s10968_s1 + $0x5a0] ss:$16 sps:$4 sm:$0xff]   ;;  %v7383_v2 = vld [vmem:[%s10968_s1 + $0x5a8] ss:$16 sps:$4 sm:$0xff]  }
  0x7c   :  { %4867 = vmatprep.subr.bf16.mxu0 %v7298_v3  ;;  %5383 = vmatprep.subr.bf16.mxu1 %v7301_v4  ;;  %v7388_v3 = vld [vmem:[%s10968_s1 + $0x5c4] ss:$16 sps:$4 sm:$0xff]   ;;  %v7391_v4 = vld [vmem:[%s10968_s1 + $0x5cc] ss:$16 sps:$4 sm:$0xff]  }
  0x7f   :  { %4868 = vmatpush1.bf16.msra.mxu0 %v7296_v5  ;;  %5384 = vmatpush1.bf16.msra.mxu1 %v7299_v6  ;;  %v7386_v5 = vld [vmem:[%s10968_s1 + $0x5c0] ss:$16 sps:$4 sm:$0xff]   ;;  %v7389_v6 = vld [vmem:[%s10968_s1 + $0x5c8] ss:$16 sps:$4 sm:$0xff]  }
  0x80   :  { %4880 = vmatprep.subr.bf16.mxu0 %v7304_v7  ;;  %5396 = vmatprep.subr.bf16.mxu1 %v7307_v8  ;;  %v7394_v7 = vld [vmem:[%s10968_s1 + $0x5e4] ss:$16 sps:$4 sm:$0xff]   ;;  %v7397_v8 = vld [vmem:[%s10968_s1 + $0x5ec] ss:$16 sps:$4 sm:$0xff]  }
  0x82   :  { %4870 = vmatmul.mubr.bf16.vlgmr.msra.gmra.mrb[0].mxu0 %v6083_v9  ;;  %5386 = vmatmul.mubr.bf16.vlgmr.msra.gmra.mrb[0].mxu1 %v6083_v9  ;;  %v7392_v9 = vld [vmem:[%s10968_s1 + $0x5e0] ss:$16 sps:$4 sm:$0xff]  }
  0x83   :  { %4881 = vmatpush1.bf16.msra.mxu0 %v7302_v10  ;;  %5397 = vmatpush1.bf16.msra.mxu1 %v7305_v11  ;;  %v7395_v10 = vld [vmem:[%s10968_s1 + $0x5e8] ss:$16 sps:$4 sm:$0xff]   ;;  %v7400_v11 = vld [vmem:[%s10968_s1 + $0x604] ss:$16 sps:$4 sm:$0xff]  }
  0x84   :  { %4882 = vmatprep.subr.bf16.mxu0 %v7310_v12  ;;  %5398 = vmatprep.subr.bf16.mxu1 %v7313_v13  ;;  %v7403_v12 = vld [vmem:[%s10968_s1 + $0x60c] ss:$16 sps:$4 sm:$0xff]   ;;  %v7398_v13 = vld [vmem:[%s10968_s1 + $0x600] ss:$16 sps:$4 sm:$0xff]  }
  0x85   :  { %4912 = vmatprep.mubr.bf16.mxu0 %v6086_v16  ;;  %5428 = vmatprep.mubr.bf16.mxu1 %v6086_v16  ;;  %v7401_v16 = vld [vmem:[%s10968_s1 + $0x608] ss:$16 sps:$4 sm:$0xff]  }
  0x87   :  { %4883 = vmatpush1.bf16.msra.mxu0 %v7308_v17  ;;  %5399 = vmatpush1.bf16.msra.mxu1 %v7311_v18  ;;  %v6085_v17 = vcombine.low %v8725_v14, %v8730_v15  ;;  %v8925_v18 = vld [vmem:[%s10969_s0 + $0x18] sm:$0xff] }
  0x88   :  { %4884 = vmatprep.subr.bf16.mxu0 %v7316_v19  ;;  %5400 = vmatprep.subr.bf16.mxu1 %v7319_v20  ;;  %v8930_v19 = vld [vmem:[%s10969_s0 + $0x78] sm:$0xff]  ;;  %v7406_v20 = vld [vmem:[%s10968_s1 + $0x624] ss:$16 sps:$4 sm:$0xff]  }
  0x89   :  { %v7409_v14 = vld [vmem:[%s10968_s1 + $0x62c] ss:$16 sps:$4 sm:$0xff]   ;;  %v6088_v15 = vcombine.high %v8925_v18, %v8930_v19 }
  0x8b   :  { %4885 = vmatpush1.bf16.msra.mxu0 %v7314_v21  ;;  %5401 = vmatpush1.bf16.msra.mxu1 %v7317_v22  ;;  %v7404_v21 = vld [vmem:[%s10968_s1 + $0x620] ss:$16 sps:$4 sm:$0xff]   ;;  %v7407_v22 = vld [vmem:[%s10968_s1 + $0x628] ss:$16 sps:$4 sm:$0xff]  }
  0x8c   :  { %4886 = vmatprep.subr.bf16.mxu0 %v7322_v23  ;;  %5402 = vmatprep.subr.bf16.mxu1 %v7325_v24  ;;  %v7412_v23 = vld [vmem:[%s10968_s1 + $0x644] ss:$16 sps:$4 sm:$0xff]   ;;  %v7415_v24 = vld [vmem:[%s10968_s1 + $0x64c] ss:$16 sps:$4 sm:$0xff]  }
  0x8f   :  { %4887 = vmatpush1.bf16.msra.mxu0 %v7320_v25  ;;  %5403 = vmatpush1.bf16.msra.mxu1 %v7323_v26  ;;  %v7410_v25 = vld [vmem:[%s10968_s1 + $0x640] ss:$16 sps:$4 sm:$0xff]   ;;  %v7413_v26 = vld [vmem:[%s10968_s1 + $0x648] ss:$16 sps:$4 sm:$0xff]  }
  0x90   :  { %4888 = vmatprep.subr.bf16.mxu0 %v7328_v27  ;;  %5404 = vmatprep.subr.bf16.mxu1 %v7331_v28  ;;  %v7418_v27 = vld [vmem:[%s10968_s1 + $0x664] ss:$16 sps:$4 sm:$0xff]   ;;  %v7421_v28 = vld [vmem:[%s10968_s1 + $0x66c] ss:$16 sps:$4 sm:$0xff]  }
  0x93   :  { %4889 = vmatpush1.bf16.msra.mxu0 %v7326_v29  ;;  %5405 = vmatpush1.bf16.msra.mxu1 %v7329_v30  ;;  %v7416_v29 = vld [vmem:[%s10968_s1 + $0x660] ss:$16 sps:$4 sm:$0xff]   ;;  %v7419_v30 = vld [vmem:[%s10968_s1 + $0x668] ss:$16 sps:$4 sm:$0xff]  }
  0x94   :  { %4890 = vmatprep.subr.bf16.mxu0 %v7334_v31  ;;  %5406 = vmatprep.subr.bf16.mxu1 %v7337_v32  ;;  %v7424_v31 = vld [vmem:[%s10968_s1 + $0x684] ss:$16 sps:$4 sm:$0xff]   ;;  %v7427_v32 = vld [vmem:[%s10968_s1 + $0x68c] ss:$16 sps:$4 sm:$0xff]  }
  0x97   :  { %4891 = vmatpush1.bf16.msra.mxu0 %v7332_v33  ;;  %5407 = vmatpush1.bf16.msra.mxu1 %v7335_v34  ;;  %v7422_v33 = vld [vmem:[%s10968_s1 + $0x680] ss:$16 sps:$4 sm:$0xff]   ;;  %v7425_v34 = vld [vmem:[%s10968_s1 + $0x688] ss:$16 sps:$4 sm:$0xff]  }
  0x98   :  { %4892 = vmatprep.subr.bf16.mxu0 %v7340_v35  ;;  %5408 = vmatprep.subr.bf16.mxu1 %v7343_v36  ;;  %v7430_v35 = vld [vmem:[%s10968_s1 + $0x6a4] ss:$16 sps:$4 sm:$0xff]   ;;  %v7433_v36 = vld [vmem:[%s10968_s1 + $0x6ac] ss:$16 sps:$4 sm:$0xff]  }
  0x9b   :  { %4893 = vmatpush1.bf16.msra.mxu0 %v7338_v37  ;;  %5409 = vmatpush1.bf16.msra.mxu1 %v7341_v38  ;;  %v7428_v37 = vld [vmem:[%s10968_s1 + $0x6a0] ss:$16 sps:$4 sm:$0xff]   ;;  %v7431_v38 = vld [vmem:[%s10968_s1 + $0x6a8] ss:$16 sps:$4 sm:$0xff]  }
  0x9c   :  { %4894 = vmatprep.subr.bf16.mxu0 %v7346_v39  ;;  %5410 = vmatprep.subr.bf16.mxu1 %v7349_v40  ;;  %v7436_v39 = vld [vmem:[%s10968_s1 + $0x6c4] ss:$16 sps:$4 sm:$0xff]   ;;  %v7439_v40 = vld [vmem:[%s10968_s1 + $0x6cc] ss:$16 sps:$4 sm:$0xff]  }
  0x9f   :  { %4895 = vmatpush1.bf16.msra.mxu0 %v7344_v41  ;;  %5411 = vmatpush1.bf16.msra.mxu1 %v7347_v42  ;;  %v7434_v41 = vld [vmem:[%s10968_s1 + $0x6c0] ss:$16 sps:$4 sm:$0xff]   ;;  %v7437_v42 = vld [vmem:[%s10968_s1 + $0x6c8] ss:$16 sps:$4 sm:$0xff]  }
  0xa0   :  { %4896 = vmatprep.subr.bf16.mxu0 %v7352_v43  ;;  %5412 = vmatprep.subr.bf16.mxu1 %v7355_v44  ;;  %v7442_v43 = vld [vmem:[%s10968_s1 + $0x6e4] ss:$16 sps:$4 sm:$0xff]   ;;  %v7445_v44 = vld [vmem:[%s10968_s1 + $0x6ec] ss:$16 sps:$4 sm:$0xff]  }
  0xa3   :  { %4897 = vmatpush1.bf16.msra.mxu0 %v7350_v45  ;;  %5413 = vmatpush1.bf16.msra.mxu1 %v7353_v46  ;;  %v7440_v45 = vld [vmem:[%s10968_s1 + $0x6e0] ss:$16 sps:$4 sm:$0xff]   ;;  %v7443_v46 = vld [vmem:[%s10968_s1 + $0x6e8] ss:$16 sps:$4 sm:$0xff]  }
  0xa4   :  { %4898 = vmatprep.subr.bf16.mxu0 %v7358_v47  ;;  %5414 = vmatprep.subr.bf16.mxu1 %v7361_v48  ;;  %v7448_v47 = vld [vmem:[%s10968_s1 + $0x704] ss:$16 sps:$4 sm:$0xff]   ;;  %v7451_v48 = vld [vmem:[%s10968_s1 + $0x70c] ss:$16 sps:$4 sm:$0xff]  }
  0xa7   :  { %4899 = vmatpush1.bf16.msra.mxu0 %v7356_v49  ;;  %5415 = vmatpush1.bf16.msra.mxu1 %v7359_v50  ;;  %v7446_v49 = vld [vmem:[%s10968_s1 + $0x700] ss:$16 sps:$4 sm:$0xff]   ;;  %v7449_v50 = vld [vmem:[%s10968_s1 + $0x708] ss:$16 sps:$4 sm:$0xff]  }
  0xa8   :  { %4900 = vmatprep.subr.bf16.mxu0 %v7364_v51  ;;  %5416 = vmatprep.subr.bf16.mxu1 %v7367_v52  ;;  %v7454_v51 = vld [vmem:[%s10968_s1 + $0x724] ss:$16 sps:$4 sm:$0xff]   ;;  %v7457_v52 = vld [vmem:[%s10968_s1 + $0x72c] ss:$16 sps:$4 sm:$0xff]  }
  0xab   :  { %4901 = vmatpush1.bf16.msra.mxu0 %v7362_v53  ;;  %5417 = vmatpush1.bf16.msra.mxu1 %v7365_v54  ;;  %v7452_v53 = vld [vmem:[%s10968_s1 + $0x720] ss:$16 sps:$4 sm:$0xff]   ;;  %v7455_v54 = vld [vmem:[%s10968_s1 + $0x728] ss:$16 sps:$4 sm:$0xff]  }
  0xac   :  { %4902 = vmatprep.subr.bf16.mxu0 %v7370_v55  ;;  %5418 = vmatprep.subr.bf16.mxu1 %v7373_v56  ;;  %v7460_v55 = vld [vmem:[%s10968_s1 + $0x744] ss:$16 sps:$4 sm:$0xff]   ;;  %v7463_v56 = vld [vmem:[%s10968_s1 + $0x74c] ss:$16 sps:$4 sm:$0xff]  }
  0xaf   :  { %4903 = vmatpush1.bf16.msra.mxu0 %v7368_v57  ;;  %5419 = vmatpush1.bf16.msra.mxu1 %v7371_v58  ;;  %v7458_v57 = vld [vmem:[%s10968_s1 + $0x740] ss:$16 sps:$4 sm:$0xff]   ;;  %v7461_v58 = vld [vmem:[%s10968_s1 + $0x748] ss:$16 sps:$4 sm:$0xff]  }
  0xb0   :  { %4904 = vmatprep.subr.bf16.mxu0 %v7376_v59  ;;  %5420 = vmatprep.subr.bf16.mxu1 %v7379_v60  ;;  %v7466_v59 = vld [vmem:[%s10968_s1 + $0x764] ss:$16 sps:$4 sm:$0xff]   ;;  %v7469_v60 = vld [vmem:[%s10968_s1 + $0x76c] ss:$16 sps:$4 sm:$0xff]  }
  0xb3   :  { %4905 = vmatpush1.bf16.msra.mxu0 %v7374_v61  ;;  %5421 = vmatpush1.bf16.msra.mxu1 %v7377_v62  ;;  %v7464_v61 = vld [vmem:[%s10968_s1 + $0x760] ss:$16 sps:$4 sm:$0xff]   ;;  %v7467_v62 = vld [vmem:[%s10968_s1 + $0x768] ss:$16 sps:$4 sm:$0xff]  }
  0xb4   :  { %4906 = vmatprep.subr.bf16.mxu0 %v7382_v63  ;;  %5422 = vmatprep.subr.bf16.mxu1 %v7385_v0  ;;  %v7472_v63 = vld [vmem:[%s10968_s1 + $0x784] ss:$16 sps:$4 sm:$0xff]   ;;  %v7475_v0 = vld [vmem:[%s10968_s1 + $0x78c] ss:$16 sps:$4 sm:$0xff]  }
  0xb7   :  { %4907 = vmatpush1.bf16.msra.mxu0 %v7380_v1  ;;  %5423 = vmatpush1.bf16.msra.mxu1 %v7383_v2  ;;  %v7470_v1 = vld [vmem:[%s10968_s1 + $0x780] ss:$16 sps:$4 sm:$0xff]   ;;  %v7473_v2 = vld [vmem:[%s10968_s1 + $0x788] ss:$16 sps:$4 sm:$0xff]  }
  0xb8   :  { %4908 = vmatprep.subr.bf16.mxu0 %v7388_v3  ;;  %5424 = vmatprep.subr.bf16.mxu1 %v7391_v4  ;;  %v7478_v3 = vld [vmem:[%s10968_s1 + $0x7a4] ss:$16 sps:$4 sm:$0xff]   ;;  %v7481_v4 = vld [vmem:[%s10968_s1 + $0x7ac] ss:$16 sps:$4 sm:$0xff]  }
  0xbb   :  { %4909 = vmatpush1.bf16.msra.mxu0 %v7386_v5  ;;  %5425 = vmatpush1.bf16.msra.mxu1 %v7389_v6  ;;  %v7476_v5 = vld [vmem:[%s10968_s1 + $0x7a0] ss:$16 sps:$4 sm:$0xff]   ;;  %v7479_v6 = vld [vmem:[%s10968_s1 + $0x7a8] ss:$16 sps:$4 sm:$0xff]  }
  0xbc   :  { %4910 = vmatprep.subr.bf16.mxu0 %v7394_v7  ;;  %5426 = vmatprep.subr.bf16.mxu1 %v7397_v8  ;;  %v7484_v7 = vld [vmem:[%s10968_s1 + $0x7c4] ss:$16 sps:$4 sm:$0xff]   ;;  %v7487_v8 = vld [vmem:[%s10968_s1 + $0x7cc] ss:$16 sps:$4 sm:$0xff]  }
  0xbf   :  { %4911 = vmatpush1.bf16.msra.mxu0 %v7392_v9  ;;  %5427 = vmatpush1.bf16.msra.mxu1 %v7395_v10  ;;  %v7482_v9 = vld [vmem:[%s10968_s1 + $0x7c0] ss:$16 sps:$4 sm:$0xff]   ;;  %v7485_v10 = vld [vmem:[%s10968_s1 + $0x7c8] ss:$16 sps:$4 sm:$0xff]  }
  0xc0   :  { %4923 = vmatprep.subr.bf16.mxu0 %v7400_v11  ;;  %5439 = vmatprep.subr.bf16.mxu1 %v7403_v12  ;;  %v7490_v11 = vld [vmem:[%s10968_s1 + $0x7e4] ss:$16 sps:$4 sm:$0xff]   ;;  %v7493_v12 = vld [vmem:[%s10968_s1 + $0x7ec] ss:$16 sps:$4 sm:$0xff]  }
  0xc2   :  { %4913 = vmatmul.mubr.bf16.vlgmr.msra.gmra.mrb[0].mxu0 %v6085_v17  ;;  %5429 = vmatmul.mubr.bf16.vlgmr.msra.gmra.mrb[0].mxu1 %v6085_v17  ;;  %v7496_v17 = vld [vmem:[%s10968_s1 + $0x804] ss:$16 sps:$4 sm:$0xff]  }
  0xc3   :  { %4924 = vmatpush1.bf16.msra.mxu0 %v7398_v13  ;;  %5440 = vmatpush1.bf16.msra.mxu1 %v7401_v16  ;;  %v7488_v13 = vld [vmem:[%s10968_s1 + $0x7e0] ss:$16 sps:$4 sm:$0xff]   ;;  %v7491_v16 = vld [vmem:[%s10968_s1 + $0x7e8] ss:$16 sps:$4 sm:$0xff]  }
  0xc4   :  { %4925 = vmatprep.subr.bf16.mxu0 %v7406_v20  ;;  %5441 = vmatprep.subr.bf16.mxu1 %v7409_v14  ;;  %v7499_v20 = vld [vmem:[%s10968_s1 + $0x80c] ss:$16 sps:$4 sm:$0xff]   ;;  %v9123_v14 = vld [vmem:[%s10969_s0 + $0x20] sm:$0xff] }
  0xc5   :  { %4955 = vmatprep.mubr.bf16.mxu0 %v6088_v15  ;;  %5471 = vmatprep.mubr.bf16.mxu1 %v6088_v15  ;;  %v6087_v15 = vcombine.low %v8925_v18, %v8930_v19  ;;  %v7502_v18 = vld [vmem:[%s10968_s1 + $0x824] ss:$16 sps:$4 sm:$0xff]   ;;  %v7505_v19 = vld [vmem:[%s10968_s1 + $0x82c] ss:$16 sps:$4 sm:$0xff]  }
  0xc7   :  { %4926 = vmatpush1.bf16.msra.mxu0 %v7404_v21  ;;  %5442 = vmatpush1.bf16.msra.mxu1 %v7407_v22  ;;  %v9130_v21 = vld [vmem:[%s10969_s0 + $0x80] sm:$0xff] }
  0xc8   :  { %4927 = vmatprep.subr.bf16.mxu0 %v7412_v23  ;;  %5443 = vmatprep.subr.bf16.mxu1 %v7415_v24  ;;  %v7494_v22 = vld [vmem:[%s10968_s1 + $0x800] ss:$16 sps:$4 sm:$0xff]   ;;  %v7497_v23 = vld [vmem:[%s10968_s1 + $0x808] ss:$16 sps:$4 sm:$0xff]   ;;  %v6090_v24 = vcombine.high %v9123_v14, %v9130_v21 }
  0xcb   :  { %4928 = vmatpush1.bf16.msra.mxu0 %v7410_v25  ;;  %5444 = vmatpush1.bf16.msra.mxu1 %v7413_v26  ;;  %v7500_v25 = vld [vmem:[%s10968_s1 + $0x820] ss:$16 sps:$4 sm:$0xff]   ;;  %v7503_v26 = vld [vmem:[%s10968_s1 + $0x828] ss:$16 sps:$4 sm:$0xff]  }
  0xcc   :  { %4929 = vmatprep.subr.bf16.mxu0 %v7418_v27  ;;  %5445 = vmatprep.subr.bf16.mxu1 %v7421_v28  ;;  %v7508_v27 = vld [vmem:[%s10968_s1 + $0x844] ss:$16 sps:$4 sm:$0xff]   ;;  %v7511_v28 = vld [vmem:[%s10968_s1 + $0x84c] ss:$16 sps:$4 sm:$0xff]  }
  0xcf   :  { %4930 = vmatpush1.bf16.msra.mxu0 %v7416_v29  ;;  %5446 = vmatpush1.bf16.msra.mxu1 %v7419_v30  ;;  %v7506_v29 = vld [vmem:[%s10968_s1 + $0x840] ss:$16 sps:$4 sm:$0xff]   ;;  %v7509_v30 = vld [vmem:[%s10968_s1 + $0x848] ss:$16 sps:$4 sm:$0xff]  }
  0xd0   :  { %4931 = vmatprep.subr.bf16.mxu0 %v7424_v31  ;;  %5447 = vmatprep.subr.bf16.mxu1 %v7427_v32  ;;  %v7514_v31 = vld [vmem:[%s10968_s1 + $0x864] ss:$16 sps:$4 sm:$0xff]   ;;  %v7517_v32 = vld [vmem:[%s10968_s1 + $0x86c] ss:$16 sps:$4 sm:$0xff]  }
  0xd3   :  { %4932 = vmatpush1.bf16.msra.mxu0 %v7422_v33  ;;  %5448 = vmatpush1.bf16.msra.mxu1 %v7425_v34  ;;  %v7512_v33 = vld [vmem:[%s10968_s1 + $0x860] ss:$16 sps:$4 sm:$0xff]   ;;  %v7515_v34 = vld [vmem:[%s10968_s1 + $0x868] ss:$16 sps:$4 sm:$0xff]  }
  0xd4   :  { %4933 = vmatprep.subr.bf16.mxu0 %v7430_v35  ;;  %5449 = vmatprep.subr.bf16.mxu1 %v7433_v36  ;;  %v7520_v35 = vld [vmem:[%s10968_s1 + $0x884] ss:$16 sps:$4 sm:$0xff]   ;;  %v7523_v36 = vld [vmem:[%s10968_s1 + $0x88c] ss:$16 sps:$4 sm:$0xff]  }
  0xd7   :  { %4934 = vmatpush1.bf16.msra.mxu0 %v7428_v37  ;;  %5450 = vmatpush1.bf16.msra.mxu1 %v7431_v38  ;;  %v7518_v37 = vld [vmem:[%s10968_s1 + $0x880] ss:$16 sps:$4 sm:$0xff]   ;;  %v7521_v38 = vld [vmem:[%s10968_s1 + $0x888] ss:$16 sps:$4 sm:$0xff]  }
  0xd8   :  { %4935 = vmatprep.subr.bf16.mxu0 %v7436_v39  ;;  %5451 = vmatprep.subr.bf16.mxu1 %v7439_v40  ;;  %v7526_v39 = vld [vmem:[%s10968_s1 + $0x8a4] ss:$16 sps:$4 sm:$0xff]   ;;  %v7529_v40 = vld [vmem:[%s10968_s1 + $0x8ac] ss:$16 sps:$4 sm:$0xff]  }
  0xdb   :  { %4936 = vmatpush1.bf16.msra.mxu0 %v7434_v41  ;;  %5452 = vmatpush1.bf16.msra.mxu1 %v7437_v42  ;;  %v7524_v41 = vld [vmem:[%s10968_s1 + $0x8a0] ss:$16 sps:$4 sm:$0xff]   ;;  %v7527_v42 = vld [vmem:[%s10968_s1 + $0x8a8] ss:$16 sps:$4 sm:$0xff]  }
  0xdc   :  { %4937 = vmatprep.subr.bf16.mxu0 %v7442_v43  ;;  %5453 = vmatprep.subr.bf16.mxu1 %v7445_v44  ;;  %v7532_v43 = vld [vmem:[%s10968_s1 + $0x8c4] ss:$16 sps:$4 sm:$0xff]   ;;  %v7535_v44 = vld [vmem:[%s10968_s1 + $0x8cc] ss:$16 sps:$4 sm:$0xff]  }
  0xdf   :  { %4938 = vmatpush1.bf16.msra.mxu0 %v7440_v45  ;;  %5454 = vmatpush1.bf16.msra.mxu1 %v7443_v46  ;;  %v7530_v45 = vld [vmem:[%s10968_s1 + $0x8c0] ss:$16 sps:$4 sm:$0xff]   ;;  %v7533_v46 = vld [vmem:[%s10968_s1 + $0x8c8] ss:$16 sps:$4 sm:$0xff]  }
  0xe0   :  { %4939 = vmatprep.subr.bf16.mxu0 %v7448_v47  ;;  %5455 = vmatprep.subr.bf16.mxu1 %v7451_v48  ;;  %v7538_v47 = vld [vmem:[%s10968_s1 + $0x8e4] ss:$16 sps:$4 sm:$0xff]   ;;  %v7541_v48 = vld [vmem:[%s10968_s1 + $0x8ec] ss:$16 sps:$4 sm:$0xff]  }
  0xe3   :  { %4940 = vmatpush1.bf16.msra.mxu0 %v7446_v49  ;;  %5456 = vmatpush1.bf16.msra.mxu1 %v7449_v50  ;;  %v7536_v49 = vld [vmem:[%s10968_s1 + $0x8e0] ss:$16 sps:$4 sm:$0xff]   ;;  %v7539_v50 = vld [vmem:[%s10968_s1 + $0x8e8] ss:$16 sps:$4 sm:$0xff]  }
  0xe4   :  { %4941 = vmatprep.subr.bf16.mxu0 %v7454_v51  ;;  %5457 = vmatprep.subr.bf16.mxu1 %v7457_v52  ;;  %v7544_v51 = vld [vmem:[%s10968_s1 + $0x904] ss:$16 sps:$4 sm:$0xff]   ;;  %v7547_v52 = vld [vmem:[%s10968_s1 + $0x90c] ss:$16 sps:$4 sm:$0xff]  }
  0xe7   :  { %4942 = vmatpush1.bf16.msra.mxu0 %v7452_v53  ;;  %5458 = vmatpush1.bf16.msra.mxu1 %v7455_v54  ;;  %v7542_v53 = vld [vmem:[%s10968_s1 + $0x900] ss:$16 sps:$4 sm:$0xff]   ;;  %v7545_v54 = vld [vmem:[%s10968_s1 + $0x908] ss:$16 sps:$4 sm:$0xff]  }
  0xe8   :  { %4943 = vmatprep.subr.bf16.mxu0 %v7460_v55  ;;  %5459 = vmatprep.subr.bf16.mxu1 %v7463_v56  ;;  %v7550_v55 = vld [vmem:[%s10968_s1 + $0x924] ss:$16 sps:$4 sm:$0xff]   ;;  %v7553_v56 = vld [vmem:[%s10968_s1 + $0x92c] ss:$16 sps:$4 sm:$0xff]  }
  0xeb   :  { %4944 = vmatpush1.bf16.msra.mxu0 %v7458_v57  ;;  %5460 = vmatpush1.bf16.msra.mxu1 %v7461_v58  ;;  %v7548_v57 = vld [vmem:[%s10968_s1 + $0x920] ss:$16 sps:$4 sm:$0xff]   ;;  %v7551_v58 = vld [vmem:[%s10968_s1 + $0x928] ss:$16 sps:$4 sm:$0xff]  }
  0xec   :  { %4945 = vmatprep.subr.bf16.mxu0 %v7466_v59  ;;  %5461 = vmatprep.subr.bf16.mxu1 %v7469_v60  ;;  %v7556_v59 = vld [vmem:[%s10968_s1 + $0x944] ss:$16 sps:$4 sm:$0xff]   ;;  %v7559_v60 = vld [vmem:[%s10968_s1 + $0x94c] ss:$16 sps:$4 sm:$0xff]  }
  0xef   :  { %4946 = vmatpush1.bf16.msra.mxu0 %v7464_v61  ;;  %5462 = vmatpush1.bf16.msra.mxu1 %v7467_v62  ;;  %v7554_v61 = vld [vmem:[%s10968_s1 + $0x940] ss:$16 sps:$4 sm:$0xff]   ;;  %v7557_v62 = vld [vmem:[%s10968_s1 + $0x948] ss:$16 sps:$4 sm:$0xff]  }
  0xf0   :  { %4947 = vmatprep.subr.bf16.mxu0 %v7472_v63  ;;  %5463 = vmatprep.subr.bf16.mxu1 %v7475_v0  ;;  %v7562_v63 = vld [vmem:[%s10968_s1 + $0x964] ss:$16 sps:$4 sm:$0xff]   ;;  %v7565_v0 = vld [vmem:[%s10968_s1 + $0x96c] ss:$16 sps:$4 sm:$0xff]  }
  0xf3   :  { %4948 = vmatpush1.bf16.msra.mxu0 %v7470_v1  ;;  %5464 = vmatpush1.bf16.msra.mxu1 %v7473_v2  ;;  %v7560_v1 = vld [vmem:[%s10968_s1 + $0x960] ss:$16 sps:$4 sm:$0xff]   ;;  %v7563_v2 = vld [vmem:[%s10968_s1 + $0x968] ss:$16 sps:$4 sm:$0xff]  }
  0xf4   :  { %4949 = vmatprep.subr.bf16.mxu0 %v7478_v3  ;;  %5465 = vmatprep.subr.bf16.mxu1 %v7481_v4  ;;  %v7568_v3 = vld [vmem:[%s10968_s1 + $0x984] ss:$16 sps:$4 sm:$0xff]   ;;  %v7571_v4 = vld [vmem:[%s10968_s1 + $0x98c] ss:$16 sps:$4 sm:$0xff]  }
  0xf7   :  { %4950 = vmatpush1.bf16.msra.mxu0 %v7476_v5  ;;  %5466 = vmatpush1.bf16.msra.mxu1 %v7479_v6  ;;  %v7566_v5 = vld [vmem:[%s10968_s1 + $0x980] ss:$16 sps:$4 sm:$0xff]   ;;  %v7569_v6 = vld [vmem:[%s10968_s1 + $0x988] ss:$16 sps:$4 sm:$0xff]  }
  0xf8   :  { %4951 = vmatprep.subr.bf16.mxu0 %v7484_v7  ;;  %5467 = vmatprep.subr.bf16.mxu1 %v7487_v8  ;;  %v7574_v7 = vld [vmem:[%s10968_s1 + $0x9a4] ss:$16 sps:$4 sm:$0xff]   ;;  %v7577_v8 = vld [vmem:[%s10968_s1 + $0x9ac] ss:$16 sps:$4 sm:$0xff]  }
  0xfb   :  { %4952 = vmatpush1.bf16.msra.mxu0 %v7482_v9  ;;  %5468 = vmatpush1.bf16.msra.mxu1 %v7485_v10  ;;  %v7572_v9 = vld [vmem:[%s10968_s1 + $0x9a0] ss:$16 sps:$4 sm:$0xff]   ;;  %v7575_v10 = vld [vmem:[%s10968_s1 + $0x9a8] ss:$16 sps:$4 sm:$0xff]  }
  0xfc   :  { %4953 = vmatprep.subr.bf16.mxu0 %v7490_v11  ;;  %5469 = vmatprep.subr.bf16.mxu1 %v7493_v12  ;;  %v7580_v11 = vld [vmem:[%s10968_s1 + $0x9c4] ss:$16 sps:$4 sm:$0xff]   ;;  %v7583_v12 = vld [vmem:[%s10968_s1 + $0x9cc] ss:$16 sps:$4 sm:$0xff]  }
  0xff   :  { %4954 = vmatpush1.bf16.msra.mxu0 %v7488_v13  ;;  %5470 = vmatpush1.bf16.msra.mxu1 %v7491_v16  ;;  %v7578_v13 = vld [vmem:[%s10968_s1 + $0x9c0] ss:$16 sps:$4 sm:$0xff]   ;;  %v7581_v16 = vld [vmem:[%s10968_s1 + $0x9c8] ss:$16 sps:$4 sm:$0xff]  }
 0x100   :  { %4966 = vmatprep.subr.bf16.mxu0 %v7496_v17  ;;  %5482 = vmatprep.subr.bf16.mxu1 %v7499_v20  ;;  %v7586_v17 = vld [vmem:[%s10968_s1 + $0x9e4] ss:$16 sps:$4 sm:$0xff]   ;;  %v7589_v20 = vld [vmem:[%s10968_s1 + $0x9ec] ss:$16 sps:$4 sm:$0xff]  }
 0x102   :  { %4956 = vmatmul.mubr.bf16.vlgmr.msra.gmra.mrb[0].mxu0 %v6087_v15  ;;  %5472 = vmatmul.mubr.bf16.vlgmr.msra.gmra.mrb[0].mxu1 %v6087_v15  ;;  %v7584_v15 = vld [vmem:[%s10968_s1 + $0x9e0] ss:$16 sps:$4 sm:$0xff]  }
 0x103   :  { %4967 = vmatpush1.bf16.msra.mxu0 %v7494_v22  ;;  %5483 = vmatpush1.bf16.msra.mxu1 %v7497_v23  ;;  %v7587_v22 = vld [vmem:[%s10968_s1 + $0x9e8] ss:$16 sps:$4 sm:$0xff]   ;;  %v7592_v23 = vld [vmem:[%s10968_s1 + $0xa04] ss:$16 sps:$4 sm:$0xff]  }
 0x104   :  { %4968 = vmatprep.subr.bf16.mxu0 %v7502_v18  ;;  %5484 = vmatprep.subr.bf16.mxu1 %v7505_v19  ;;  %v7595_v18 = vld [vmem:[%s10968_s1 + $0xa0c] ss:$16 sps:$4 sm:$0xff]  }
 0x105   :  { %4998 = vmatprep.mubr.bf16.mxu0 %v6090_v24  ;;  %5514 = vmatprep.mubr.bf16.mxu1 %v6090_v24  ;;  %v9329_v19 = vld [vmem:[%s10969_s0 + $0x28] sm:$0xff] }
 0x106   :  { %v9334_v24 = vld [vmem:[%s10969_s0 + $0x88] sm:$0xff] }
 0x107   :  { %4969 = vmatpush1.bf16.msra.mxu0 %v7500_v25  ;;  %5485 = vmatpush1.bf16.msra.mxu1 %v7503_v26  ;;  %v6089_v25 = vcombine.low %v9123_v14, %v9130_v21  ;;  %v7590_v26 = vld [vmem:[%s10968_s1 + $0xa00] ss:$16 sps:$4 sm:$0xff]   ;;  %v7601_v14 = vld [vmem:[%s10968_s1 + $0xa2c] ss:$16 sps:$4 sm:$0xff]   ;;  %v6092_v21 = vcombine.high %v9329_v19, %v9334_v24 }
 0x108   :  { %4970 = vmatprep.subr.bf16.mxu0 %v7508_v27  ;;  %5486 = vmatprep.subr.bf16.mxu1 %v7511_v28  ;;  %v7593_v27 = vld [vmem:[%s10968_s1 + $0xa08] ss:$16 sps:$4 sm:$0xff]   ;;  %v7598_v28 = vld [vmem:[%s10968_s1 + $0xa24] ss:$16 sps:$4 sm:$0xff]  }
 0x10b   :  { %4971 = vmatpush1.bf16.msra.mxu0 %v7506_v29  ;;  %5487 = vmatpush1.bf16.msra.mxu1 %v7509_v30  ;;  %v7596_v29 = vld [vmem:[%s10968_s1 + $0xa20] ss:$16 sps:$4 sm:$0xff]   ;;  %v7599_v30 = vld [vmem:[%s10968_s1 + $0xa28] ss:$16 sps:$4 sm:$0xff]  }
 0x10c   :  { %4972 = vmatprep.subr.bf16.mxu0 %v7514_v31  ;;  %5488 = vmatprep.subr.bf16.mxu1 %v7517_v32  ;;  %v7604_v31 = vld [vmem:[%s10968_s1 + $0xa44] ss:$16 sps:$4 sm:$0xff]   ;;  %v7607_v32 = vld [vmem:[%s10968_s1 + $0xa4c] ss:$16 sps:$4 sm:$0xff]  }
 0x10f   :  { %4973 = vmatpush1.bf16.msra.mxu0 %v7512_v33  ;;  %5489 = vmatpush1.bf16.msra.mxu1 %v7515_v34  ;;  %v7602_v33 = vld [vmem:[%s10968_s1 + $0xa40] ss:$16 sps:$4 sm:$0xff]   ;;  %v7605_v34 = vld [vmem:[%s10968_s1 + $0xa48] ss:$16 sps:$4 sm:$0xff]  }
 0x110   :  { %4974 = vmatprep.subr.bf16.mxu0 %v7520_v35  ;;  %5490 = vmatprep.subr.bf16.mxu1 %v7523_v36  ;;  %v7610_v35 = vld [vmem:[%s10968_s1 + $0xa64] ss:$16 sps:$4 sm:$0xff]   ;;  %v7613_v36 = vld [vmem:[%s10968_s1 + $0xa6c] ss:$16 sps:$4 sm:$0xff]  }
 0x113   :  { %4975 = vmatpush1.bf16.msra.mxu0 %v7518_v37  ;;  %5491 = vmatpush1.bf16.msra.mxu1 %v7521_v38  ;;  %v7608_v37 = vld [vmem:[%s10968_s1 + $0xa60] ss:$16 sps:$4 sm:$0xff]   ;;  %v7611_v38 = vld [vmem:[%s10968_s1 + $0xa68] ss:$16 sps:$4 sm:$0xff]  }
 0x114   :  { %4976 = vmatprep.subr.bf16.mxu0 %v7526_v39  ;;  %5492 = vmatprep.subr.bf16.mxu1 %v7529_v40  ;;  %v7616_v39 = vld [vmem:[%s10968_s1 + $0xa84] ss:$16 sps:$4 sm:$0xff]   ;;  %v7619_v40 = vld [vmem:[%s10968_s1 + $0xa8c] ss:$16 sps:$4 sm:$0xff]  }
 0x117   :  { %4977 = vmatpush1.bf16.msra.mxu0 %v7524_v41  ;;  %5493 = vmatpush1.bf16.msra.mxu1 %v7527_v42  ;;  %v7614_v41 = vld [vmem:[%s10968_s1 + $0xa80] ss:$16 sps:$4 sm:$0xff]   ;;  %v7617_v42 = vld [vmem:[%s10968_s1 + $0xa88] ss:$16 sps:$4 sm:$0xff]  }
 0x118   :  { %4978 = vmatprep.subr.bf16.mxu0 %v7532_v43  ;;  %5494 = vmatprep.subr.bf16.mxu1 %v7535_v44  ;;  %v7622_v43 = vld [vmem:[%s10968_s1 + $0xaa4] ss:$16 sps:$4 sm:$0xff]   ;;  %v7625_v44 = vld [vmem:[%s10968_s1 + $0xaac] ss:$16 sps:$4 sm:$0xff]  }
 0x11b   :  { %4979 = vmatpush1.bf16.msra.mxu0 %v7530_v45  ;;  %5495 = vmatpush1.bf16.msra.mxu1 %v7533_v46  ;;  %v7620_v45 = vld [vmem:[%s10968_s1 + $0xaa0] ss:$16 sps:$4 sm:$0xff]   ;;  %v7623_v46 = vld [vmem:[%s10968_s1 + $0xaa8] ss:$16 sps:$4 sm:$0xff]  }
 0x11c   :  { %4980 = vmatprep.subr.bf16.mxu0 %v7538_v47  ;;  %5496 = vmatprep.subr.bf16.mxu1 %v7541_v48  ;;  %v7628_v47 = vld [vmem:[%s10968_s1 + $0xac4] ss:$16 sps:$4 sm:$0xff]   ;;  %v7631_v48 = vld [vmem:[%s10968_s1 + $0xacc] ss:$16 sps:$4 sm:$0xff]  }
 0x11f   :  { %4981 = vmatpush1.bf16.msra.mxu0 %v7536_v49  ;;  %5497 = vmatpush1.bf16.msra.mxu1 %v7539_v50  ;;  %v7626_v49 = vld [vmem:[%s10968_s1 + $0xac0] ss:$16 sps:$4 sm:$0xff]   ;;  %v7629_v50 = vld [vmem:[%s10968_s1 + $0xac8] ss:$16 sps:$4 sm:$0xff]  }
 0x120   :  { %4982 = vmatprep.subr.bf16.mxu0 %v7544_v51  ;;  %5498 = vmatprep.subr.bf16.mxu1 %v7547_v52  ;;  %v7634_v51 = vld [vmem:[%s10968_s1 + $0xae4] ss:$16 sps:$4 sm:$0xff]   ;;  %v7637_v52 = vld [vmem:[%s10968_s1 + $0xaec] ss:$16 sps:$4 sm:$0xff]  }
 0x123   :  { %4983 = vmatpush1.bf16.msra.mxu0 %v7542_v53  ;;  %5499 = vmatpush1.bf16.msra.mxu1 %v7545_v54  ;;  %v7632_v53 = vld [vmem:[%s10968_s1 + $0xae0] ss:$16 sps:$4 sm:$0xff]   ;;  %v7635_v54 = vld [vmem:[%s10968_s1 + $0xae8] ss:$16 sps:$4 sm:$0xff]  }
 0x124   :  { %4984 = vmatprep.subr.bf16.mxu0 %v7550_v55  ;;  %5500 = vmatprep.subr.bf16.mxu1 %v7553_v56  ;;  %v7640_v55 = vld [vmem:[%s10968_s1 + $0xb04] ss:$16 sps:$4 sm:$0xff]   ;;  %v7643_v56 = vld [vmem:[%s10968_s1 + $0xb0c] ss:$16 sps:$4 sm:$0xff]  }
 0x127   :  { %4985 = vmatpush1.bf16.msra.mxu0 %v7548_v57  ;;  %5501 = vmatpush1.bf16.msra.mxu1 %v7551_v58  ;;  %v7638_v57 = vld [vmem:[%s10968_s1 + $0xb00] ss:$16 sps:$4 sm:$0xff]   ;;  %v7641_v58 = vld [vmem:[%s10968_s1 + $0xb08] ss:$16 sps:$4 sm:$0xff]  }
 0x128   :  { %4986 = vmatprep.subr.bf16.mxu0 %v7556_v59  ;;  %5502 = vmatprep.subr.bf16.mxu1 %v7559_v60  ;;  %v7646_v59 = vld [vmem:[%s10968_s1 + $0xb24] ss:$16 sps:$4 sm:$0xff]   ;;  %v7649_v60 = vld [vmem:[%s10968_s1 + $0xb2c] ss:$16 sps:$4 sm:$0xff]  }
 0x12b   :  { %4987 = vmatpush1.bf16.msra.mxu0 %v7554_v61  ;;  %5503 = vmatpush1.bf16.msra.mxu1 %v7557_v62  ;;  %v7644_v61 = vld [vmem:[%s10968_s1 + $0xb20] ss:$16 sps:$4 sm:$0xff]   ;;  %v7647_v62 = vld [vmem:[%s10968_s1 + $0xb28] ss:$16 sps:$4 sm:$0xff]  }
 0x12c   :  { %4988 = vmatprep.subr.bf16.mxu0 %v7562_v63  ;;  %5504 = vmatprep.subr.bf16.mxu1 %v7565_v0  ;;  %v7652_v63 = vld [vmem:[%s10968_s1 + $0xb44] ss:$16 sps:$4 sm:$0xff]   ;;  %v7655_v0 = vld [vmem:[%s10968_s1 + $0xb4c] ss:$16 sps:$4 sm:$0xff]  }
 0x12f   :  { %4989 = vmatpush1.bf16.msra.mxu0 %v7560_v1  ;;  %5505 = vmatpush1.bf16.msra.mxu1 %v7563_v2  ;;  %v7650_v1 = vld [vmem:[%s10968_s1 + $0xb40] ss:$16 sps:$4 sm:$0xff]   ;;  %v7653_v2 = vld [vmem:[%s10968_s1 + $0xb48] ss:$16 sps:$4 sm:$0xff]  }
 0x130   :  { %4990 = vmatprep.subr.bf16.mxu0 %v7568_v3  ;;  %5506 = vmatprep.subr.bf16.mxu1 %v7571_v4  ;;  %v7658_v3 = vld [vmem:[%s10968_s1 + $0xb64] ss:$16 sps:$4 sm:$0xff]   ;;  %v7661_v4 = vld [vmem:[%s10968_s1 + $0xb6c] ss:$16 sps:$4 sm:$0xff]  }
 0x133   :  { %4991 = vmatpush1.bf16.msra.mxu0 %v7566_v5  ;;  %5507 = vmatpush1.bf16.msra.mxu1 %v7569_v6  ;;  %v7656_v5 = vld [vmem:[%s10968_s1 + $0xb60] ss:$16 sps:$4 sm:$0xff]   ;;  %v7659_v6 = vld [vmem:[%s10968_s1 + $0xb68] ss:$16 sps:$4 sm:$0xff]  }
 0x134   :  { %4992 = vmatprep.subr.bf16.mxu0 %v7574_v7  ;;  %5508 = vmatprep.subr.bf16.mxu1 %v7577_v8  ;;  %v7664_v7 = vld [vmem:[%s10968_s1 + $0xb84] ss:$16 sps:$4 sm:$0xff]   ;;  %v7667_v8 = vld [vmem:[%s10968_s1 + $0xb8c] ss:$16 sps:$4 sm:$0xff]  }
 0x137   :  { %4993 = vmatpush1.bf16.msra.mxu0 %v7572_v9  ;;  %5509 = vmatpush1.bf16.msra.mxu1 %v7575_v10  ;;  %v7662_v9 = vld [vmem:[%s10968_s1 + $0xb80] ss:$16 sps:$4 sm:$0xff]   ;;  %v7665_v10 = vld [vmem:[%s10968_s1 + $0xb88] ss:$16 sps:$4 sm:$0xff]  }
 0x138   :  { %4994 = vmatprep.subr.bf16.mxu0 %v7580_v11  ;;  %5510 = vmatprep.subr.bf16.mxu1 %v7583_v12  ;;  %v7670_v11 = vld [vmem:[%s10968_s1 + $0xba4] ss:$16 sps:$4 sm:$0xff]   ;;  %v7673_v12 = vld [vmem:[%s10968_s1 + $0xbac] ss:$16 sps:$4 sm:$0xff]  }
 0x13b   :  { %4995 = vmatpush1.bf16.msra.mxu0 %v7578_v13  ;;  %5511 = vmatpush1.bf16.msra.mxu1 %v7581_v16  ;;  %v7668_v13 = vld [vmem:[%s10968_s1 + $0xba0] ss:$16 sps:$4 sm:$0xff]   ;;  %v7671_v16 = vld [vmem:[%s10968_s1 + $0xba8] ss:$16 sps:$4 sm:$0xff]  }
 0x13c   :  { %4996 = vmatprep.subr.bf16.mxu0 %v7586_v17  ;;  %5512 = vmatprep.subr.bf16.mxu1 %v7589_v20  ;;  %v7676_v17 = vld [vmem:[%s10968_s1 + $0xbc4] ss:$16 sps:$4 sm:$0xff]   ;;  %v7679_v20 = vld [vmem:[%s10968_s1 + $0xbcc] ss:$16 sps:$4 sm:$0xff]  }
 0x13f   :  { %4997 = vmatpush1.bf16.msra.mxu0 %v7584_v15  ;;  %5513 = vmatpush1.bf16.msra.mxu1 %v7587_v22  ;;  %v7674_v15 = vld [vmem:[%s10968_s1 + $0xbc0] ss:$16 sps:$4 sm:$0xff]   ;;  %v7677_v22 = vld [vmem:[%s10968_s1 + $0xbc8] ss:$16 sps:$4 sm:$0xff]  }
 0x140   :  { %5009 = vmatprep.subr.bf16.mxu0 %v7592_v23  ;;  %5525 = vmatprep.subr.bf16.mxu1 %v7595_v18  ;;  %v7682_v23 = vld [vmem:[%s10968_s1 + $0xbe4] ss:$16 sps:$4 sm:$0xff]   ;;  %v7685_v18 = vld [vmem:[%s10968_s1 + $0xbec] ss:$16 sps:$4 sm:$0xff]  }
 0x142   :  { %4999 = vmatmul.mubr.bf16.vlgmr.msra.gmra.mrb[0].mxu0 %v6089_v25  ;;  %5515 = vmatmul.mubr.bf16.vlgmr.msra.gmra.mrb[0].mxu1 %v6089_v25  ;;  %v7680_v25 = vld [vmem:[%s10968_s1 + $0xbe0] ss:$16 sps:$4 sm:$0xff]  }
 0x143   :  { %5010 = vmatpush1.bf16.msra.mxu0 %v7590_v26  ;;  %5526 = vmatpush1.bf16.msra.mxu1 %v7593_v27  ;;  %v7683_v26 = vld [vmem:[%s10968_s1 + $0xbe8] ss:$16 sps:$4 sm:$0xff]   ;;  %v7688_v27 = vld [vmem:[%s10968_s1 + $0xc04] ss:$16 sps:$4 sm:$0xff]  }
 0x144   :  { %5011 = vmatprep.subr.bf16.mxu0 %v7598_v28  ;;  %5527 = vmatprep.subr.bf16.mxu1 %v7601_v14  ;;  %v7691_v28 = vld [vmem:[%s10968_s1 + $0xc0c] ss:$16 sps:$4 sm:$0xff]   ;;  %v9535_v14 = vld [vmem:[%s10969_s0 + $0x30] sm:$0xff] }
 0x145   :  { %5041 = vmatprep.mubr.bf16.mxu0 %v6092_v21  ;;  %5557 = vmatprep.mubr.bf16.mxu1 %v6092_v21  ;;  %v9540_v21 = vld [vmem:[%s10969_s0 + $0x90] sm:$0xff] }
 0x147   :  { %5012 = vmatpush1.bf16.msra.mxu0 %v7596_v29  ;;  %5528 = vmatpush1.bf16.msra.mxu1 %v7599_v30  ;;  %v6091_v29 = vcombine.low %v9329_v19, %v9334_v24  ;;  %v7686_v30 = vld [vmem:[%s10968_s1 + $0xc00] ss:$16 sps:$4 sm:$0xff]   ;;  %v7697_v19 = vld [vmem:[%s10968_s1 + $0xc2c] ss:$16 sps:$4 sm:$0xff]   ;;  %v6094_v24 = vcombine.high %v9535_v14, %v9540_v21 }
 0x148   :  { %5013 = vmatprep.subr.bf16.mxu0 %v7604_v31  ;;  %5529 = vmatprep.subr.bf16.mxu1 %v7607_v32  ;;  %v7689_v31 = vld [vmem:[%s10968_s1 + $0xc08] ss:$16 sps:$4 sm:$0xff]   ;;  %v7694_v32 = vld [vmem:[%s10968_s1 + $0xc24] ss:$16 sps:$4 sm:$0xff]  }
 0x14b   :  { %5014 = vmatpush1.bf16.msra.mxu0 %v7602_v33  ;;  %5530 = vmatpush1.bf16.msra.mxu1 %v7605_v34  ;;  %v7692_v33 = vld [vmem:[%s10968_s1 + $0xc20] ss:$16 sps:$4 sm:$0xff]   ;;  %v7695_v34 = vld [vmem:[%s10968_s1 + $0xc28] ss:$16 sps:$4 sm:$0xff]  }
 0x14c   :  { %5015 = vmatprep.subr.bf16.mxu0 %v7610_v35  ;;  %5531 = vmatprep.subr.bf16.mxu1 %v7613_v36  ;;  %v7700_v35 = vld [vmem:[%s10968_s1 + $0xc44] ss:$16 sps:$4 sm:$0xff]   ;;  %v7703_v36 = vld [vmem:[%s10968_s1 + $0xc4c] ss:$16 sps:$4 sm:$0xff]  }
 0x14f   :  { %5016 = vmatpush1.bf16.msra.mxu0 %v7608_v37  ;;  %5532 = vmatpush1.bf16.msra.mxu1 %v7611_v38  ;;  %v7698_v37 = vld [vmem:[%s10968_s1 + $0xc40] ss:$16 sps:$4 sm:$0xff]   ;;  %v7701_v38 = vld [vmem:[%s10968_s1 + $0xc48] ss:$16 sps:$4 sm:$0xff]  }
 0x150   :  { %5017 = vmatprep.subr.bf16.mxu0 %v7616_v39  ;;  %5533 = vmatprep.subr.bf16.mxu1 %v7619_v40  ;;  %v7706_v39 = vld [vmem:[%s10968_s1 + $0xc64] ss:$16 sps:$4 sm:$0xff]   ;;  %v7709_v40 = vld [vmem:[%s10968_s1 + $0xc6c] ss:$16 sps:$4 sm:$0xff]  }
 0x153   :  { %5018 = vmatpush1.bf16.msra.mxu0 %v7614_v41  ;;  %5534 = vmatpush1.bf16.msra.mxu1 %v7617_v42  ;;  %v7704_v41 = vld [vmem:[%s10968_s1 + $0xc60] ss:$16 sps:$4 sm:$0xff]   ;;  %v7707_v42 = vld [vmem:[%s10968_s1 + $0xc68] ss:$16 sps:$4 sm:$0xff]  }
 0x154   :  { %5019 = vmatprep.subr.bf16.mxu0 %v7622_v43  ;;  %5535 = vmatprep.subr.bf16.mxu1 %v7625_v44  ;;  %v7712_v43 = vld [vmem:[%s10968_s1 + $0xc84] ss:$16 sps:$4 sm:$0xff]   ;;  %v7715_v44 = vld [vmem:[%s10968_s1 + $0xc8c] ss:$16 sps:$4 sm:$0xff]  }
 0x157   :  { %5020 = vmatpush1.bf16.msra.mxu0 %v7620_v45  ;;  %5536 = vmatpush1.bf16.msra.mxu1 %v7623_v46  ;;  %v7710_v45 = vld [vmem:[%s10968_s1 + $0xc80] ss:$16 sps:$4 sm:$0xff]   ;;  %v7713_v46 = vld [vmem:[%s10968_s1 + $0xc88] ss:$16 sps:$4 sm:$0xff]  }
 0x158   :  { %5021 = vmatprep.subr.bf16.mxu0 %v7628_v47  ;;  %5537 = vmatprep.subr.bf16.mxu1 %v7631_v48  ;;  %v7718_v47 = vld [vmem:[%s10968_s1 + $0xca4] ss:$16 sps:$4 sm:$0xff]   ;;  %v7721_v48 = vld [vmem:[%s10968_s1 + $0xcac] ss:$16 sps:$4 sm:$0xff]  }
 0x15b   :  { %5022 = vmatpush1.bf16.msra.mxu0 %v7626_v49  ;;  %5538 = vmatpush1.bf16.msra.mxu1 %v7629_v50  ;;  %v7716_v49 = vld [vmem:[%s10968_s1 + $0xca0] ss:$16 sps:$4 sm:$0xff]   ;;  %v7719_v50 = vld [vmem:[%s10968_s1 + $0xca8] ss:$16 sps:$4 sm:$0xff]  }
 0x15c   :  { %5023 = vmatprep.subr.bf16.mxu0 %v7634_v51  ;;  %5539 = vmatprep.subr.bf16.mxu1 %v7637_v52  ;;  %v7724_v51 = vld [vmem:[%s10968_s1 + $0xcc4] ss:$16 sps:$4 sm:$0xff]   ;;  %v7727_v52 = vld [vmem:[%s10968_s1 + $0xccc] ss:$16 sps:$4 sm:$0xff]  }
 0x15f   :  { %5024 = vmatpush1.bf16.msra.mxu0 %v7632_v53  ;;  %5540 = vmatpush1.bf16.msra.mxu1 %v7635_v54  ;;  %v7722_v53 = vld [vmem:[%s10968_s1 + $0xcc0] ss:$16 sps:$4 sm:$0xff]   ;;  %v7725_v54 = vld [vmem:[%s10968_s1 + $0xcc8] ss:$16 sps:$4 sm:$0xff]  }
 0x160   :  { %5025 = vmatprep.subr.bf16.mxu0 %v7640_v55  ;;  %5541 = vmatprep.subr.bf16.mxu1 %v7643_v56  ;;  %v7730_v55 = vld [vmem:[%s10968_s1 + $0xce4] ss:$16 sps:$4 sm:$0xff]   ;;  %v7733_v56 = vld [vmem:[%s10968_s1 + $0xcec] ss:$16 sps:$4 sm:$0xff]  }
 0x163   :  { %5026 = vmatpush1.bf16.msra.mxu0 %v7638_v57  ;;  %5542 = vmatpush1.bf16.msra.mxu1 %v7641_v58  ;;  %v7728_v57 = vld [vmem:[%s10968_s1 + $0xce0] ss:$16 sps:$4 sm:$0xff]   ;;  %v7731_v58 = vld [vmem:[%s10968_s1 + $0xce8] ss:$16 sps:$4 sm:$0xff]  }
 0x164   :  { %5027 = vmatprep.subr.bf16.mxu0 %v7646_v59  ;;  %5543 = vmatprep.subr.bf16.mxu1 %v7649_v60  ;;  %v7736_v59 = vld [vmem:[%s10968_s1 + $0xd04] ss:$16 sps:$4 sm:$0xff]   ;;  %v7739_v60 = vld [vmem:[%s10968_s1 + $0xd0c] ss:$16 sps:$4 sm:$0xff]  }
 0x167   :  { %5028 = vmatpush1.bf16.msra.mxu0 %v7644_v61  ;;  %5544 = vmatpush1.bf16.msra.mxu1 %v7647_v62  ;;  %v7734_v61 = vld [vmem:[%s10968_s1 + $0xd00] ss:$16 sps:$4 sm:$0xff]   ;;  %v7737_v62 = vld [vmem:[%s10968_s1 + $0xd08] ss:$16 sps:$4 sm:$0xff]  }
 0x168   :  { %5029 = vmatprep.subr.bf16.mxu0 %v7652_v63  ;;  %5545 = vmatprep.subr.bf16.mxu1 %v7655_v0  ;;  %v7742_v63 = vld [vmem:[%s10968_s1 + $0xd24] ss:$16 sps:$4 sm:$0xff]   ;;  %v7745_v0 = vld [vmem:[%s10968_s1 + $0xd2c] ss:$16 sps:$4 sm:$0xff]  }
 0x16b   :  { %5030 = vmatpush1.bf16.msra.mxu0 %v7650_v1  ;;  %5546 = vmatpush1.bf16.msra.mxu1 %v7653_v2  ;;  %v7740_v1 = vld [vmem:[%s10968_s1 + $0xd20] ss:$16 sps:$4 sm:$0xff]   ;;  %v7743_v2 = vld [vmem:[%s10968_s1 + $0xd28] ss:$16 sps:$4 sm:$0xff]  }
 0x16c   :  { %5031 = vmatprep.subr.bf16.mxu0 %v7658_v3  ;;  %5547 = vmatprep.subr.bf16.mxu1 %v7661_v4  ;;  %v7748_v3 = vld [vmem:[%s10968_s1 + $0xd44] ss:$16 sps:$4 sm:$0xff]   ;;  %v7751_v4 = vld [vmem:[%s10968_s1 + $0xd4c] ss:$16 sps:$4 sm:$0xff]  }
 0x16f   :  { %5032 = vmatpush1.bf16.msra.mxu0 %v7656_v5  ;;  %5548 = vmatpush1.bf16.msra.mxu1 %v7659_v6  ;;  %v7746_v5 = vld [vmem:[%s10968_s1 + $0xd40] ss:$16 sps:$4 sm:$0xff]   ;;  %v7749_v6 = vld [vmem:[%s10968_s1 + $0xd48] ss:$16 sps:$4 sm:$0xff]  }
 0x170   :  { %5033 = vmatprep.subr.bf16.mxu0 %v7664_v7  ;;  %5549 = vmatprep.subr.bf16.mxu1 %v7667_v8  ;;  %v7754_v7 = vld [vmem:[%s10968_s1 + $0xd64] ss:$16 sps:$4 sm:$0xff]   ;;  %v7757_v8 = vld [vmem:[%s10968_s1 + $0xd6c] ss:$16 sps:$4 sm:$0xff]  }
 0x173   :  { %5034 = vmatpush1.bf16.msra.mxu0 %v7662_v9  ;;  %5550 = vmatpush1.bf16.msra.mxu1 %v7665_v10  ;;  %v7752_v9 = vld [vmem:[%s10968_s1 + $0xd60] ss:$16 sps:$4 sm:$0xff]   ;;  %v7755_v10 = vld [vmem:[%s10968_s1 + $0xd68] ss:$16 sps:$4 sm:$0xff]  }
 0x174   :  { %5035 = vmatprep.subr.bf16.mxu0 %v7670_v11  ;;  %5551 = vmatprep.subr.bf16.mxu1 %v7673_v12  ;;  %v7760_v11 = vld [vmem:[%s10968_s1 + $0xd84] ss:$16 sps:$4 sm:$0xff]   ;;  %v7763_v12 = vld [vmem:[%s10968_s1 + $0xd8c] ss:$16 sps:$4 sm:$0xff]  }
 0x177   :  { %5036 = vmatpush1.bf16.msra.mxu0 %v7668_v13  ;;  %5552 = vmatpush1.bf16.msra.mxu1 %v7671_v16  ;;  %v7758_v13 = vld [vmem:[%s10968_s1 + $0xd80] ss:$16 sps:$4 sm:$0xff]   ;;  %v7761_v16 = vld [vmem:[%s10968_s1 + $0xd88] ss:$16 sps:$4 sm:$0xff]  }
 0x178   :  { %5037 = vmatprep.subr.bf16.mxu0 %v7676_v17  ;;  %5553 = vmatprep.subr.bf16.mxu1 %v7679_v20  ;;  %v7766_v17 = vld [vmem:[%s10968_s1 + $0xda4] ss:$16 sps:$4 sm:$0xff]   ;;  %v7769_v20 = vld [vmem:[%s10968_s1 + $0xdac] ss:$16 sps:$4 sm:$0xff]  }
 0x17b   :  { %5038 = vmatpush1.bf16.msra.mxu0 %v7674_v15  ;;  %5554 = vmatpush1.bf16.msra.mxu1 %v7677_v22  ;;  %v7764_v15 = vld [vmem:[%s10968_s1 + $0xda0] ss:$16 sps:$4 sm:$0xff]   ;;  %v7767_v22 = vld [vmem:[%s10968_s1 + $0xda8] ss:$16 sps:$4 sm:$0xff]  }
 0x17c   :  { %5039 = vmatprep.subr.bf16.mxu0 %v7682_v23  ;;  %5555 = vmatprep.subr.bf16.mxu1 %v7685_v18  ;;  %v7772_v23 = vld [vmem:[%s10968_s1 + $0xdc4] ss:$16 sps:$4 sm:$0xff]   ;;  %v7775_v18 = vld [vmem:[%s10968_s1 + $0xdcc] ss:$16 sps:$4 sm:$0xff]  }
 0x17f   :  { %5040 = vmatpush1.bf16.msra.mxu0 %v7680_v25  ;;  %5556 = vmatpush1.bf16.msra.mxu1 %v7683_v26  ;;  %v7770_v25 = vld [vmem:[%s10968_s1 + $0xdc0] ss:$16 sps:$4 sm:$0xff]   ;;  %v7773_v26 = vld [vmem:[%s10968_s1 + $0xdc8] ss:$16 sps:$4 sm:$0xff]  }
 0x180   :  { %5052 = vmatprep.subr.bf16.mxu0 %v7688_v27  ;;  %5568 = vmatprep.subr.bf16.mxu1 %v7691_v28  ;;  %v7778_v27 = vld [vmem:[%s10968_s1 + $0xde4] ss:$16 sps:$4 sm:$0xff]   ;;  %v7781_v28 = vld [vmem:[%s10968_s1 + $0xdec] ss:$16 sps:$4 sm:$0xff]  }
 0x182   :  { %5042 = vmatmul.mubr.bf16.vlgmr.msra.gmra.mrb[0].mxu0 %v6091_v29  ;;  %5558 = vmatmul.mubr.bf16.vlgmr.msra.gmra.mrb[0].mxu1 %v6091_v29  ;;  %v7776_v29 = vld [vmem:[%s10968_s1 + $0xde0] ss:$16 sps:$4 sm:$0xff]  }
 0x183   :  { %5053 = vmatpush1.bf16.msra.mxu0 %v7686_v30  ;;  %5569 = vmatpush1.bf16.msra.mxu1 %v7689_v31  ;;  %v7779_v30 = vld [vmem:[%s10968_s1 + $0xde8] ss:$16 sps:$4 sm:$0xff]   ;;  %v7784_v31 = vld [vmem:[%s10968_s1 + $0xe04] ss:$16 sps:$4 sm:$0xff]  }
 0x184   :  { %5054 = vmatprep.subr.bf16.mxu0 %v7694_v32  ;;  %5570 = vmatprep.subr.bf16.mxu1 %v7697_v19  ;;  %v7787_v32 = vld [vmem:[%s10968_s1 + $0xe0c] ss:$16 sps:$4 sm:$0xff]  }
 0x185   :  { %5084 = vmatprep.mubr.bf16.mxu0 %v6094_v24  ;;  %5600 = vmatprep.mubr.bf16.mxu1 %v6094_v24  ;;  %v9741_v19 = vld [vmem:[%s10969_s0 + $0x38] sm:$0xff] }
 0x186   :  { %v9746_v24 = vld [vmem:[%s10969_s0 + $0x98] sm:$0xff] }
 0x187   :  { %5055 = vmatpush1.bf16.msra.mxu0 %v7692_v33  ;;  %5571 = vmatpush1.bf16.msra.mxu1 %v7695_v34  ;;  %v6093_v33 = vcombine.low %v9535_v14, %v9540_v21  ;;  %v7782_v34 = vld [vmem:[%s10968_s1 + $0xe00] ss:$16 sps:$4 sm:$0xff]   ;;  %v7793_v14 = vld [vmem:[%s10968_s1 + $0xe2c] ss:$16 sps:$4 sm:$0xff]   ;;  %v6096_v21 = vcombine.high %v9741_v19, %v9746_v24 }
 0x188   :  { %5056 = vmatprep.subr.bf16.mxu0 %v7700_v35  ;;  %5572 = vmatprep.subr.bf16.mxu1 %v7703_v36  ;;  %v7785_v35 = vld [vmem:[%s10968_s1 + $0xe08] ss:$16 sps:$4 sm:$0xff]   ;;  %v7790_v36 = vld [vmem:[%s10968_s1 + $0xe24] ss:$16 sps:$4 sm:$0xff]  }
 0x18b   :  { %5057 = vmatpush1.bf16.msra.mxu0 %v7698_v37  ;;  %5573 = vmatpush1.bf16.msra.mxu1 %v7701_v38  ;;  %v7788_v37 = vld [vmem:[%s10968_s1 + $0xe20] ss:$16 sps:$4 sm:$0xff]   ;;  %v7791_v38 = vld [vmem:[%s10968_s1 + $0xe28] ss:$16 sps:$4 sm:$0xff]  }
 0x18c   :  { %5058 = vmatprep.subr.bf16.mxu0 %v7706_v39  ;;  %5574 = vmatprep.subr.bf16.mxu1 %v7709_v40  ;;  %v7796_v39 = vld [vmem:[%s10968_s1 + $0xe44] ss:$16 sps:$4 sm:$0xff]   ;;  %v7799_v40 = vld [vmem:[%s10968_s1 + $0xe4c] ss:$16 sps:$4 sm:$0xff]  }
 0x18f   :  { %5059 = vmatpush1.bf16.msra.mxu0 %v7704_v41  ;;  %5575 = vmatpush1.bf16.msra.mxu1 %v7707_v42  ;;  %v7794_v41 = vld [vmem:[%s10968_s1 + $0xe40] ss:$16 sps:$4 sm:$0xff]   ;;  %v7797_v42 = vld [vmem:[%s10968_s1 + $0xe48] ss:$16 sps:$4 sm:$0xff]  }
 0x190   :  { %5060 = vmatprep.subr.bf16.mxu0 %v7712_v43  ;;  %5576 = vmatprep.subr.bf16.mxu1 %v7715_v44  ;;  %v7802_v43 = vld [vmem:[%s10968_s1 + $0xe64] ss:$16 sps:$4 sm:$0xff]   ;;  %v7805_v44 = vld [vmem:[%s10968_s1 + $0xe6c] ss:$16 sps:$4 sm:$0xff]  }
 0x193   :  { %5061 = vmatpush1.bf16.msra.mxu0 %v7710_v45  ;;  %5577 = vmatpush1.bf16.msra.mxu1 %v7713_v46  ;;  %v7800_v45 = vld [vmem:[%s10968_s1 + $0xe60] ss:$16 sps:$4 sm:$0xff]   ;;  %v7803_v46 = vld [vmem:[%s10968_s1 + $0xe68] ss:$16 sps:$4 sm:$0xff]  }
 0x194   :  { %5062 = vmatprep.subr.bf16.mxu0 %v7718_v47  ;;  %5578 = vmatprep.subr.bf16.mxu1 %v7721_v48  ;;  %v7808_v47 = vld [vmem:[%s10968_s1 + $0xe84] ss:$16 sps:$4 sm:$0xff]   ;;  %v7811_v48 = vld [vmem:[%s10968_s1 + $0xe8c] ss:$16 sps:$4 sm:$0xff]  }
 0x197   :  { %5063 = vmatpush1.bf16.msra.mxu0 %v7716_v49  ;;  %5579 = vmatpush1.bf16.msra.mxu1 %v7719_v50  ;;  %v7806_v49 = vld [vmem:[%s10968_s1 + $0xe80] ss:$16 sps:$4 sm:$0xff]   ;;  %v7809_v50 = vld [vmem:[%s10968_s1 + $0xe88] ss:$16 sps:$4 sm:$0xff]  }
 0x198   :  { %5064 = vmatprep.subr.bf16.mxu0 %v7724_v51  ;;  %5580 = vmatprep.subr.bf16.mxu1 %v7727_v52  ;;  %v7814_v51 = vld [vmem:[%s10968_s1 + $0xea4] ss:$16 sps:$4 sm:$0xff]   ;;  %v7817_v52 = vld [vmem:[%s10968_s1 + $0xeac] ss:$16 sps:$4 sm:$0xff]  }
 0x19b   :  { %5065 = vmatpush1.bf16.msra.mxu0 %v7722_v53  ;;  %5581 = vmatpush1.bf16.msra.mxu1 %v7725_v54  ;;  %v7812_v53 = vld [vmem:[%s10968_s1 + $0xea0] ss:$16 sps:$4 sm:$0xff]   ;;  %v7815_v54 = vld [vmem:[%s10968_s1 + $0xea8] ss:$16 sps:$4 sm:$0xff]  }
 0x19c   :  { %5066 = vmatprep.subr.bf16.mxu0 %v7730_v55  ;;  %5582 = vmatprep.subr.bf16.mxu1 %v7733_v56  ;;  %v7820_v55 = vld [vmem:[%s10968_s1 + $0xec4] ss:$16 sps:$4 sm:$0xff]   ;;  %v7823_v56 = vld [vmem:[%s10968_s1 + $0xecc] ss:$16 sps:$4 sm:$0xff]  }
 0x19f   :  { %5067 = vmatpush1.bf16.msra.mxu0 %v7728_v57  ;;  %5583 = vmatpush1.bf16.msra.mxu1 %v7731_v58  ;;  %v7818_v57 = vld [vmem:[%s10968_s1 + $0xec0] ss:$16 sps:$4 sm:$0xff]   ;;  %v7821_v58 = vld [vmem:[%s10968_s1 + $0xec8] ss:$16 sps:$4 sm:$0xff]  }
 0x1a0   :  { %5068 = vmatprep.subr.bf16.mxu0 %v7736_v59  ;;  %5584 = vmatprep.subr.bf16.mxu1 %v7739_v60  ;;  %v7826_v59 = vld [vmem:[%s10968_s1 + $0xee4] ss:$16 sps:$4 sm:$0xff]   ;;  %v7829_v60 = vld [vmem:[%s10968_s1 + $0xeec] ss:$16 sps:$4 sm:$0xff]  }
 0x1a3   :  { %5069 = vmatpush1.bf16.msra.mxu0 %v7734_v61  ;;  %5585 = vmatpush1.bf16.msra.mxu1 %v7737_v62  ;;  %v7824_v61 = vld [vmem:[%s10968_s1 + $0xee0] ss:$16 sps:$4 sm:$0xff]   ;;  %v7827_v62 = vld [vmem:[%s10968_s1 + $0xee8] ss:$16 sps:$4 sm:$0xff]  }
 0x1a4   :  { %5070 = vmatprep.subr.bf16.mxu0 %v7742_v63  ;;  %5586 = vmatprep.subr.bf16.mxu1 %v7745_v0  ;;  %v7832_v63 = vld [vmem:[%s10968_s1 + $0xf04] ss:$16 sps:$4 sm:$0xff]   ;;  %v7835_v0 = vld [vmem:[%s10968_s1 + $0xf0c] ss:$16 sps:$4 sm:$0xff]  }
 0x1a7   :  { %5071 = vmatpush1.bf16.msra.mxu0 %v7740_v1  ;;  %5587 = vmatpush1.bf16.msra.mxu1 %v7743_v2  ;;  %v7830_v1 = vld [vmem:[%s10968_s1 + $0xf00] ss:$16 sps:$4 sm:$0xff]   ;;  %v7833_v2 = vld [vmem:[%s10968_s1 + $0xf08] ss:$16 sps:$4 sm:$0xff]  }
 0x1a8   :  { %5072 = vmatprep.subr.bf16.mxu0 %v7748_v3  ;;  %5588 = vmatprep.subr.bf16.mxu1 %v7751_v4  ;;  %v7838_v3 = vld [vmem:[%s10968_s1 + $0xf24] ss:$16 sps:$4 sm:$0xff]   ;;  %v7841_v4 = vld [vmem:[%s10968_s1 + $0xf2c] ss:$16 sps:$4 sm:$0xff]  }
 0x1ab   :  { %5073 = vmatpush1.bf16.msra.mxu0 %v7746_v5  ;;  %5589 = vmatpush1.bf16.msra.mxu1 %v7749_v6  ;;  %v7836_v5 = vld [vmem:[%s10968_s1 + $0xf20] ss:$16 sps:$4 sm:$0xff]   ;;  %v7839_v6 = vld [vmem:[%s10968_s1 + $0xf28] ss:$16 sps:$4 sm:$0xff]  }
 0x1ac   :  { %5074 = vmatprep.subr.bf16.mxu0 %v7754_v7  ;;  %5590 = vmatprep.subr.bf16.mxu1 %v7757_v8  ;;  %v7844_v7 = vld [vmem:[%s10968_s1 + $0xf44] ss:$16 sps:$4 sm:$0xff]   ;;  %v7847_v8 = vld [vmem:[%s10968_s1 + $0xf4c] ss:$16 sps:$4 sm:$0xff]  }
 0x1af   :  { %5075 = vmatpush1.bf16.msra.mxu0 %v7752_v9  ;;  %5591 = vmatpush1.bf16.msra.mxu1 %v7755_v10  ;;  %v7842_v9 = vld [vmem:[%s10968_s1 + $0xf40] ss:$16 sps:$4 sm:$0xff]   ;;  %v7845_v10 = vld [vmem:[%s10968_s1 + $0xf48] ss:$16 sps:$4 sm:$0xff]  }
 0x1b0   :  { %5076 = vmatprep.subr.bf16.mxu0 %v7760_v11  ;;  %5592 = vmatprep.subr.bf16.mxu1 %v7763_v12  ;;  %v7850_v11 = vld [vmem:[%s10968_s1 + $0xf64] ss:$16 sps:$4 sm:$0xff]   ;;  %v7853_v12 = vld [vmem:[%s10968_s1 + $0xf6c] ss:$16 sps:$4 sm:$0xff]  }
 0x1b3   :  { %5077 = vmatpush1.bf16.msra.mxu0 %v7758_v13  ;;  %5593 = vmatpush1.bf16.msra.mxu1 %v7761_v16  ;;  %v7848_v13 = vld [vmem:[%s10968_s1 + $0xf60] ss:$16 sps:$4 sm:$0xff]   ;;  %v7851_v16 = vld [vmem:[%s10968_s1 + $0xf68] ss:$16 sps:$4 sm:$0xff]  }
 0x1b4   :  { %5078 = vmatprep.subr.bf16.mxu0 %v7766_v17  ;;  %5594 = vmatprep.subr.bf16.mxu1 %v7769_v20  ;;  %v7856_v17 = vld [vmem:[%s10968_s1 + $0xf84] ss:$16 sps:$4 sm:$0xff]   ;;  %v7859_v20 = vld [vmem:[%s10968_s1 + $0xf8c] ss:$16 sps:$4 sm:$0xff]  }
 0x1b7   :  { %5079 = vmatpush1.bf16.msra.mxu0 %v7764_v15  ;;  %5595 = vmatpush1.bf16.msra.mxu1 %v7767_v22  ;;  %v7854_v15 = vld [vmem:[%s10968_s1 + $0xf80] ss:$16 sps:$4 sm:$0xff]   ;;  %v7857_v22 = vld [vmem:[%s10968_s1 + $0xf88] ss:$16 sps:$4 sm:$0xff]  }
 0x1b8   :  { %5080 = vmatprep.subr.bf16.mxu0 %v7772_v23  ;;  %5596 = vmatprep.subr.bf16.mxu1 %v7775_v18  ;;  %v7862_v23 = vld [vmem:[%s10968_s1 + $0xfa4] ss:$16 sps:$4 sm:$0xff]   ;;  %v7865_v18 = vld [vmem:[%s10968_s1 + $0xfac] ss:$16 sps:$4 sm:$0xff]  }
 0x1bb   :  { %5081 = vmatpush1.bf16.msra.mxu0 %v7770_v25  ;;  %5597 = vmatpush1.bf16.msra.mxu1 %v7773_v26  ;;  %v7860_v25 = vld [vmem:[%s10968_s1 + $0xfa0] ss:$16 sps:$4 sm:$0xff]   ;;  %v7863_v26 = vld [vmem:[%s10968_s1 + $0xfa8] ss:$16 sps:$4 sm:$0xff]  }
 0x1bc   :  { %5082 = vmatprep.subr.bf16.mxu0 %v7778_v27  ;;  %5598 = vmatprep.subr.bf16.mxu1 %v7781_v28  ;;  %v7868_v27 = vld [vmem:[%s10968_s1 + $0xfc4] ss:$16 sps:$4 sm:$0xff]   ;;  %v7871_v28 = vld [vmem:[%s10968_s1 + $0xfcc] ss:$16 sps:$4 sm:$0xff]  }
 0x1bf   :  { %5083 = vmatpush1.bf16.msra.mxu0 %v7776_v29  ;;  %5599 = vmatpush1.bf16.msra.mxu1 %v7779_v30  ;;  %v7866_v29 = vld [vmem:[%s10968_s1 + $0xfc0] ss:$16 sps:$4 sm:$0xff]   ;;  %v7869_v30 = vld [vmem:[%s10968_s1 + $0xfc8] ss:$16 sps:$4 sm:$0xff]  }
 0x1c0   :  { %5095 = vmatprep.subr.bf16.mxu0 %v7784_v31  ;;  %5611 = vmatprep.subr.bf16.mxu1 %v7787_v32  ;;  %v7874_v31 = vld [vmem:[%s10968_s1 + $0xfe4] ss:$16 sps:$4 sm:$0xff]   ;;  %v7877_v32 = vld [vmem:[%s10968_s1 + $0xfec] ss:$16 sps:$4 sm:$0xff]  }
 0x1c2   :  { %5085 = vmatmul.mubr.bf16.vlgmr.msra.gmra.mrb[0].mxu0 %v6093_v33  ;;  %5601 = vmatmul.mubr.bf16.vlgmr.msra.gmra.mrb[0].mxu1 %v6093_v33  ;;  %v7872_v33 = vld [vmem:[%s10968_s1 + $0xfe0] ss:$16 sps:$4 sm:$0xff]  }
 0x1c3   :  { %5096 = vmatpush1.bf16.msra.mxu0 %v7782_v34  ;;  %5612 = vmatpush1.bf16.msra.mxu1 %v7785_v35  ;;  %v7875_v34 = vld [vmem:[%s10968_s1 + $0xfe8] ss:$16 sps:$4 sm:$0xff]   ;;  %v7880_v35 = vld [vmem:[%s10968_s1 + $0x1004] ss:$16 sps:$4 sm:$0xff]  }
 0x1c4   :  { %5097 = vmatprep.subr.bf16.mxu0 %v7790_v36  ;;  %5613 = vmatprep.subr.bf16.mxu1 %v7793_v14  ;;  %v7883_v36 = vld [vmem:[%s10968_s1 + $0x100c] ss:$16 sps:$4 sm:$0xff]   ;;  %v6095_v14 = vcombine.low %v9741_v19, %v9746_v24  ;;  %v7881_v19 = vld [vmem:[%s10968_s1 + $0x1008] ss:$16 sps:$4 sm:$0xff]   ;;  %v7886_v24 = vld [vmem:[%s10968_s1 + $0x1024] ss:$16 sps:$4 sm:$0xff]  }
 0x1c5   :  { %5127 = vmatprep.mubr.bf16.mxu0 %v6096_v21  ;;  %5643 = vmatprep.mubr.bf16.mxu1 %v6096_v21  ;;  %v9949_v21 = vld [vmem:[%s10969_s0 + $0x40] sm:$0xff] }
 0x1c7   :  { %5098 = vmatpush1.bf16.msra.mxu0 %v7788_v37  ;;  %5614 = vmatpush1.bf16.msra.mxu1 %v7791_v38  ;;  %v9954_v37 = vld [vmem:[%s10969_s0 + $0xa0] sm:$0xff] }
 0x1c8   :  { %5099 = vmatprep.subr.bf16.mxu0 %v7796_v39  ;;  %5615 = vmatprep.subr.bf16.mxu1 %v7799_v40  ;;  %v7878_v38 = vld [vmem:[%s10968_s1 + $0x1000] ss:$16 sps:$4 sm:$0xff]   ;;  %v7889_v39 = vld [vmem:[%s10968_s1 + $0x102c] ss:$16 sps:$4 sm:$0xff]   ;;  %v6098_v40 = vcombine.high %v9949_v21, %v9954_v37 }
 0x1cb   :  { %5100 = vmatpush1.bf16.msra.mxu0 %v7794_v41  ;;  %5616 = vmatpush1.bf16.msra.mxu1 %v7797_v42  ;;  %v7884_v41 = vld [vmem:[%s10968_s1 + $0x1020] ss:$16 sps:$4 sm:$0xff]   ;;  %v7887_v42 = vld [vmem:[%s10968_s1 + $0x1028] ss:$16 sps:$4 sm:$0xff]  }
 0x1cc   :  { %5101 = vmatprep.subr.bf16.mxu0 %v7802_v43  ;;  %5617 = vmatprep.subr.bf16.mxu1 %v7805_v44  ;;  %v7892_v43 = vld [vmem:[%s10968_s1 + $0x1044] ss:$16 sps:$4 sm:$0xff]   ;;  %v7895_v44 = vld [vmem:[%s10968_s1 + $0x104c] ss:$16 sps:$4 sm:$0xff]  }
 0x1cf   :  { %5102 = vmatpush1.bf16.msra.mxu0 %v7800_v45  ;;  %5618 = vmatpush1.bf16.msra.mxu1 %v7803_v46  ;;  %v7890_v45 = vld [vmem:[%s10968_s1 + $0x1040] ss:$16 sps:$4 sm:$0xff]   ;;  %v7893_v46 = vld [vmem:[%s10968_s1 + $0x1048] ss:$16 sps:$4 sm:$0xff]  }
 0x1d0   :  { %5103 = vmatprep.subr.bf16.mxu0 %v7808_v47  ;;  %5619 = vmatprep.subr.bf16.mxu1 %v7811_v48  ;;  %v7898_v47 = vld [vmem:[%s10968_s1 + $0x1064] ss:$16 sps:$4 sm:$0xff]   ;;  %v7901_v48 = vld [vmem:[%s10968_s1 + $0x106c] ss:$16 sps:$4 sm:$0xff]  }
 0x1d3   :  { %5104 = vmatpush1.bf16.msra.mxu0 %v7806_v49  ;;  %5620 = vmatpush1.bf16.msra.mxu1 %v7809_v50  ;;  %v7896_v49 = vld [vmem:[%s10968_s1 + $0x1060] ss:$16 sps:$4 sm:$0xff]   ;;  %v7899_v50 = vld [vmem:[%s10968_s1 + $0x1068] ss:$16 sps:$4 sm:$0xff]  }
 0x1d4   :  { %5105 = vmatprep.subr.bf16.mxu0 %v7814_v51  ;;  %5621 = vmatprep.subr.bf16.mxu1 %v7817_v52  ;;  %v7904_v51 = vld [vmem:[%s10968_s1 + $0x1084] ss:$16 sps:$4 sm:$0xff]   ;;  %v7907_v52 = vld [vmem:[%s10968_s1 + $0x108c] ss:$16 sps:$4 sm:$0xff]  }
 0x1d7   :  { %5106 = vmatpush1.bf16.msra.mxu0 %v7812_v53  ;;  %5622 = vmatpush1.bf16.msra.mxu1 %v7815_v54  ;;  %v7902_v53 = vld [vmem:[%s10968_s1 + $0x1080] ss:$16 sps:$4 sm:$0xff]   ;;  %v7905_v54 = vld [vmem:[%s10968_s1 + $0x1088] ss:$16 sps:$4 sm:$0xff]  }
 0x1d8   :  { %5107 = vmatprep.subr.bf16.mxu0 %v7820_v55  ;;  %5623 = vmatprep.subr.bf16.mxu1 %v7823_v56  ;;  %v7910_v55 = vld [vmem:[%s10968_s1 + $0x10a4] ss:$16 sps:$4 sm:$0xff]   ;;  %v7913_v56 = vld [vmem:[%s10968_s1 + $0x10ac] ss:$16 sps:$4 sm:$0xff]  }
 0x1db   :  { %5108 = vmatpush1.bf16.msra.mxu0 %v7818_v57  ;;  %5624 = vmatpush1.bf16.msra.mxu1 %v7821_v58  ;;  %v7908_v57 = vld [vmem:[%s10968_s1 + $0x10a0] ss:$16 sps:$4 sm:$0xff]   ;;  %v7911_v58 = vld [vmem:[%s10968_s1 + $0x10a8] ss:$16 sps:$4 sm:$0xff]  }
 0x1dc   :  { %5109 = vmatprep.subr.bf16.mxu0 %v7826_v59  ;;  %5625 = vmatprep.subr.bf16.mxu1 %v7829_v60  ;;  %v7916_v59 = vld [vmem:[%s10968_s1 + $0x10c4] ss:$16 sps:$4 sm:$0xff]   ;;  %v7919_v60 = vld [vmem:[%s10968_s1 + $0x10cc] ss:$16 sps:$4 sm:$0xff]  }
 0x1df   :  { %5110 = vmatpush1.bf16.msra.mxu0 %v7824_v61  ;;  %5626 = vmatpush1.bf16.msra.mxu1 %v7827_v62  ;;  %v7914_v61 = vld [vmem:[%s10968_s1 + $0x10c0] ss:$16 sps:$4 sm:$0xff]   ;;  %v7917_v62 = vld [vmem:[%s10968_s1 + $0x10c8] ss:$16 sps:$4 sm:$0xff]  }
 0x1e0   :  { %5111 = vmatprep.subr.bf16.mxu0 %v7832_v63  ;;  %5627 = vmatprep.subr.bf16.mxu1 %v7835_v0  ;;  %v7922_v63 = vld [vmem:[%s10968_s1 + $0x10e4] ss:$16 sps:$4 sm:$0xff]   ;;  %v7925_v0 = vld [vmem:[%s10968_s1 + $0x10ec] ss:$16 sps:$4 sm:$0xff]  }
 0x1e3   :  { %5112 = vmatpush1.bf16.msra.mxu0 %v7830_v1  ;;  %5628 = vmatpush1.bf16.msra.mxu1 %v7833_v2  ;;  %v7920_v1 = vld [vmem:[%s10968_s1 + $0x10e0] ss:$16 sps:$4 sm:$0xff]   ;;  %v7923_v2 = vld [vmem:[%s10968_s1 + $0x10e8] ss:$16 sps:$4 sm:$0xff]  }
 0x1e4   :  { %5113 = vmatprep.subr.bf16.mxu0 %v7838_v3  ;;  %5629 = vmatprep.subr.bf16.mxu1 %v7841_v4  ;;  %v7928_v3 = vld [vmem:[%s10968_s1 + $0x1104] ss:$16 sps:$4 sm:$0xff]   ;;  %v7931_v4 = vld [vmem:[%s10968_s1 + $0x110c] ss:$16 sps:$4 sm:$0xff]  }
 0x1e7   :  { %5114 = vmatpush1.bf16.msra.mxu0 %v7836_v5  ;;  %5630 = vmatpush1.bf16.msra.mxu1 %v7839_v6  ;;  %v7926_v5 = vld [vmem:[%s10968_s1 + $0x1100] ss:$16 sps:$4 sm:$0xff]   ;;  %v7929_v6 = vld [vmem:[%s10968_s1 + $0x1108] ss:$16 sps:$4 sm:$0xff]  }
 0x1e8   :  { %5115 = vmatprep.subr.bf16.mxu0 %v7844_v7  ;;  %5631 = vmatprep.subr.bf16.mxu1 %v7847_v8  ;;  %v7934_v7 = vld [vmem:[%s10968_s1 + $0x1124] ss:$16 sps:$4 sm:$0xff]   ;;  %v7937_v8 = vld [vmem:[%s10968_s1 + $0x112c] ss:$16 sps:$4 sm:$0xff]  }
 0x1eb   :  { %5116 = vmatpush1.bf16.msra.mxu0 %v7842_v9  ;;  %5632 = vmatpush1.bf16.msra.mxu1 %v7845_v10  ;;  %v7932_v9 = vld [vmem:[%s10968_s1 + $0x1120] ss:$16 sps:$4 sm:$0xff]   ;;  %v7935_v10 = vld [vmem:[%s10968_s1 + $0x1128] ss:$16 sps:$4 sm:$0xff]  }
 0x1ec   :  { %5117 = vmatprep.subr.bf16.mxu0 %v7850_v11  ;;  %5633 = vmatprep.subr.bf16.mxu1 %v7853_v12  ;;  %v7940_v11 = vld [vmem:[%s10968_s1 + $0x1144] ss:$16 sps:$4 sm:$0xff]   ;;  %v7943_v12 = vld [vmem:[%s10968_s1 + $0x114c] ss:$16 sps:$4 sm:$0xff]  }
 0x1ef   :  { %5118 = vmatpush1.bf16.msra.mxu0 %v7848_v13  ;;  %5634 = vmatpush1.bf16.msra.mxu1 %v7851_v16  ;;  %v7938_v13 = vld [vmem:[%s10968_s1 + $0x1140] ss:$16 sps:$4 sm:$0xff]   ;;  %v7941_v16 = vld [vmem:[%s10968_s1 + $0x1148] ss:$16 sps:$4 sm:$0xff]  }
 0x1f0   :  { %5119 = vmatprep.subr.bf16.mxu0 %v7856_v17  ;;  %5635 = vmatprep.subr.bf16.mxu1 %v7859_v20  ;;  %v7946_v17 = vld [vmem:[%s10968_s1 + $0x1164] ss:$16 sps:$4 sm:$0xff]   ;;  %v7949_v20 = vld [vmem:[%s10968_s1 + $0x116c] ss:$16 sps:$4 sm:$0xff]  }
 0x1f3   :  { %5120 = vmatpush1.bf16.msra.mxu0 %v7854_v15  ;;  %5636 = vmatpush1.bf16.msra.mxu1 %v7857_v22  ;;  %v7944_v15 = vld [vmem:[%s10968_s1 + $0x1160] ss:$16 sps:$4 sm:$0xff]   ;;  %v7947_v22 = vld [vmem:[%s10968_s1 + $0x1168] ss:$16 sps:$4 sm:$0xff]  }
 0x1f4   :  { %5121 = vmatprep.subr.bf16.mxu0 %v7862_v23  ;;  %5637 = vmatprep.subr.bf16.mxu1 %v7865_v18  ;;  %v7952_v23 = vld [vmem:[%s10968_s1 + $0x1184] ss:$16 sps:$4 sm:$0xff]   ;;  %v7955_v18 = vld [vmem:[%s10968_s1 + $0x118c] ss:$16 sps:$4 sm:$0xff]  }
 0x1f7   :  { %5122 = vmatpush1.bf16.msra.mxu0 %v7860_v25  ;;  %5638 = vmatpush1.bf16.msra.mxu1 %v7863_v26  ;;  %v7950_v25 = vld [vmem:[%s10968_s1 + $0x1180] ss:$16 sps:$4 sm:$0xff]   ;;  %v7953_v26 = vld [vmem:[%s10968_s1 + $0x1188] ss:$16 sps:$4 sm:$0xff]  }
 0x1f8   :  { %5123 = vmatprep.subr.bf16.mxu0 %v7868_v27  ;;  %5639 = vmatprep.subr.bf16.mxu1 %v7871_v28  ;;  %v7958_v27 = vld [vmem:[%s10968_s1 + $0x11a4] ss:$16 sps:$4 sm:$0xff]   ;;  %v7961_v28 = vld [vmem:[%s10968_s1 + $0x11ac] ss:$16 sps:$4 sm:$0xff]  }
 0x1fb   :  { %5124 = vmatpush1.bf16.msra.mxu0 %v7866_v29  ;;  %5640 = vmatpush1.bf16.msra.mxu1 %v7869_v30  ;;  %v7956_v29 = vld [vmem:[%s10968_s1 + $0x11a0] ss:$16 sps:$4 sm:$0xff]   ;;  %v7959_v30 = vld [vmem:[%s10968_s1 + $0x11a8] ss:$16 sps:$4 sm:$0xff]  }
 0x1fc   :  { %5125 = vmatprep.subr.bf16.mxu0 %v7874_v31  ;;  %5641 = vmatprep.subr.bf16.mxu1 %v7877_v32  ;;  %v7964_v31 = vld [vmem:[%s10968_s1 + $0x11c4] ss:$16 sps:$4 sm:$0xff]   ;;  %v7967_v32 = vld [vmem:[%s10968_s1 + $0x11cc] ss:$16 sps:$4 sm:$0xff]  }
 0x1ff   :  { %5126 = vmatpush1.bf16.msra.mxu0 %v7872_v33  ;;  %5642 = vmatpush1.bf16.msra.mxu1 %v7875_v34  ;;  %v7962_v33 = vld [vmem:[%s10968_s1 + $0x11c0] ss:$16 sps:$4 sm:$0xff]   ;;  %v7965_v34 = vld [vmem:[%s10968_s1 + $0x11c8] ss:$16 sps:$4 sm:$0xff]  }
 0x200   :  { %5138 = vmatprep.subr.bf16.mxu0 %v7880_v35  ;;  %5654 = vmatprep.subr.bf16.mxu1 %v7883_v36  ;;  %v7970_v35 = vld [vmem:[%s10968_s1 + $0x11e4] ss:$16 sps:$4 sm:$0xff]   ;;  %v7973_v36 = vld [vmem:[%s10968_s1 + $0x11ec] ss:$16 sps:$4 sm:$0xff]  }
 0x202   :  { %5128 = vmatmul.mubr.bf16.vlgmr.msra.gmra.mrb[0].mxu0 %v6095_v14  ;;  %5644 = vmatmul.mubr.bf16.vlgmr.msra.gmra.mrb[0].mxu1 %v6095_v14  ;;  %v7968_v14 = vld [vmem:[%s10968_s1 + $0x11e0] ss:$16 sps:$4 sm:$0xff]  }
 0x203   :  { %5139 = vmatpush1.bf16.msra.mxu0 %v7878_v38  ;;  %5655 = vmatpush1.bf16.msra.mxu1 %v7881_v19  ;;  %v7971_v38 = vld [vmem:[%s10968_s1 + $0x11e8] ss:$16 sps:$4 sm:$0xff]   ;;  %v7976_v19 = vld [vmem:[%s10968_s1 + $0x1204] ss:$16 sps:$4 sm:$0xff]  }
 0x204   :  { %5140 = vmatprep.subr.bf16.mxu0 %v7886_v24  ;;  %5656 = vmatprep.subr.bf16.mxu1 %v7889_v39  ;;  %v7979_v24 = vld [vmem:[%s10968_s1 + $0x120c] ss:$16 sps:$4 sm:$0xff]   ;;  %v6097_v39 = vcombine.low %v9949_v21, %v9954_v37  ;;  %v7977_v21 = vld [vmem:[%s10968_s1 + $0x1208] ss:$16 sps:$4 sm:$0xff]   ;;  %v7982_v37 = vld [vmem:[%s10968_s1 + $0x1224] ss:$16 sps:$4 sm:$0xff]  }
 0x205   :  { %5170 = vmatprep.mubr.bf16.mxu0 %v6098_v40  ;;  %5686 = vmatprep.mubr.bf16.mxu1 %v6098_v40  ;;  %v10155_v40 = vld [vmem:[%s10969_s0 + $0x48] sm:$0xff] }
 0x207   :  { %5141 = vmatpush1.bf16.msra.mxu0 %v7884_v41  ;;  %5657 = vmatpush1.bf16.msra.mxu1 %v7887_v42  ;;  %v10160_v41 = vld [vmem:[%s10969_s0 + $0xa8] sm:$0xff]  ;;  %v7974_v42 = vld [vmem:[%s10968_s1 + $0x1200] ss:$16 sps:$4 sm:$0xff]  }
 0x208   :  { %5142 = vmatprep.subr.bf16.mxu0 %v7892_v43  ;;  %5658 = vmatprep.subr.bf16.mxu1 %v7895_v44  ;;  %v7985_v43 = vld [vmem:[%s10968_s1 + $0x122c] ss:$16 sps:$4 sm:$0xff]   ;;  %v6100_v44 = vcombine.high %v10155_v40, %v10160_v41 }
 0x20b   :  { %5143 = vmatpush1.bf16.msra.mxu0 %v7890_v45  ;;  %5659 = vmatpush1.bf16.msra.mxu1 %v7893_v46  ;;  %v7980_v45 = vld [vmem:[%s10968_s1 + $0x1220] ss:$16 sps:$4 sm:$0xff]   ;;  %v7983_v46 = vld [vmem:[%s10968_s1 + $0x1228] ss:$16 sps:$4 sm:$0xff]  }
 0x20c   :  { %5144 = vmatprep.subr.bf16.mxu0 %v7898_v47  ;;  %5660 = vmatprep.subr.bf16.mxu1 %v7901_v48  ;;  %v7988_v47 = vld [vmem:[%s10968_s1 + $0x1244] ss:$16 sps:$4 sm:$0xff]   ;;  %v7991_v48 = vld [vmem:[%s10968_s1 + $0x124c] ss:$16 sps:$4 sm:$0xff]  }
 0x20f   :  { %5145 = vmatpush1.bf16.msra.mxu0 %v7896_v49  ;;  %5661 = vmatpush1.bf16.msra.mxu1 %v7899_v50  ;;  %v7986_v49 = vld [vmem:[%s10968_s1 + $0x1240] ss:$16 sps:$4 sm:$0xff]   ;;  %v7989_v50 = vld [vmem:[%s10968_s1 + $0x1248] ss:$16 sps:$4 sm:$0xff]  }
 0x210   :  { %5146 = vmatprep.subr.bf16.mxu0 %v7904_v51  ;;  %5662 = vmatprep.subr.bf16.mxu1 %v7907_v52  ;;  %v7994_v51 = vld [vmem:[%s10968_s1 + $0x1264] ss:$16 sps:$4 sm:$0xff]   ;;  %v7997_v52 = vld [vmem:[%s10968_s1 + $0x126c] ss:$16 sps:$4 sm:$0xff]  }
 0x213   :  { %5147 = vmatpush1.bf16.msra.mxu0 %v7902_v53  ;;  %5663 = vmatpush1.bf16.msra.mxu1 %v7905_v54  ;;  %v7992_v53 = vld [vmem:[%s10968_s1 + $0x1260] ss:$16 sps:$4 sm:$0xff]   ;;  %v7995_v54 = vld [vmem:[%s10968_s1 + $0x1268] ss:$16 sps:$4 sm:$0xff]  }
 0x214   :  { %5148 = vmatprep.subr.bf16.mxu0 %v7910_v55  ;;  %5664 = vmatprep.subr.bf16.mxu1 %v7913_v56  ;;  %v8000_v55 = vld [vmem:[%s10968_s1 + $0x1284] ss:$16 sps:$4 sm:$0xff]   ;;  %v8003_v56 = vld [vmem:[%s10968_s1 + $0x128c] ss:$16 sps:$4 sm:$0xff]  }
 0x217   :  { %5149 = vmatpush1.bf16.msra.mxu0 %v7908_v57  ;;  %5665 = vmatpush1.bf16.msra.mxu1 %v7911_v58  ;;  %v7998_v57 = vld [vmem:[%s10968_s1 + $0x1280] ss:$16 sps:$4 sm:$0xff]   ;;  %v8001_v58 = vld [vmem:[%s10968_s1 + $0x1288] ss:$16 sps:$4 sm:$0xff]  }
 0x218   :  { %5150 = vmatprep.subr.bf16.mxu0 %v7916_v59  ;;  %5666 = vmatprep.subr.bf16.mxu1 %v7919_v60  ;;  %v8006_v59 = vld [vmem:[%s10968_s1 + $0x12a4] ss:$16 sps:$4 sm:$0xff]   ;;  %v8009_v60 = vld [vmem:[%s10968_s1 + $0x12ac] ss:$16 sps:$4 sm:$0xff]  }
 0x21b   :  { %5151 = vmatpush1.bf16.msra.mxu0 %v7914_v61  ;;  %5667 = vmatpush1.bf16.msra.mxu1 %v7917_v62  ;;  %v8004_v61 = vld [vmem:[%s10968_s1 + $0x12a0] ss:$16 sps:$4 sm:$0xff]   ;;  %v8007_v62 = vld [vmem:[%s10968_s1 + $0x12a8] ss:$16 sps:$4 sm:$0xff]  }
 0x21c   :  { %5152 = vmatprep.subr.bf16.mxu0 %v7922_v63  ;;  %5668 = vmatprep.subr.bf16.mxu1 %v7925_v0  ;;  %v8012_v63 = vld [vmem:[%s10968_s1 + $0x12c4] ss:$16 sps:$4 sm:$0xff]   ;;  %v8015_v0 = vld [vmem:[%s10968_s1 + $0x12cc] ss:$16 sps:$4 sm:$0xff]  }
 0x21f   :  { %5153 = vmatpush1.bf16.msra.mxu0 %v7920_v1  ;;  %5669 = vmatpush1.bf16.msra.mxu1 %v7923_v2  ;;  %v8010_v1 = vld [vmem:[%s10968_s1 + $0x12c0] ss:$16 sps:$4 sm:$0xff]   ;;  %v8013_v2 = vld [vmem:[%s10968_s1 + $0x12c8] ss:$16 sps:$4 sm:$0xff]  }
 0x220   :  { %5154 = vmatprep.subr.bf16.mxu0 %v7928_v3  ;;  %5670 = vmatprep.subr.bf16.mxu1 %v7931_v4  ;;  %v8018_v3 = vld [vmem:[%s10968_s1 + $0x12e4] ss:$16 sps:$4 sm:$0xff]   ;;  %v8021_v4 = vld [vmem:[%s10968_s1 + $0x12ec] ss:$16 sps:$4 sm:$0xff]  }
 0x223   :  { %5155 = vmatpush1.bf16.msra.mxu0 %v7926_v5  ;;  %5671 = vmatpush1.bf16.msra.mxu1 %v7929_v6  ;;  %v8016_v5 = vld [vmem:[%s10968_s1 + $0x12e0] ss:$16 sps:$4 sm:$0xff]   ;;  %v8019_v6 = vld [vmem:[%s10968_s1 + $0x12e8] ss:$16 sps:$4 sm:$0xff]  }
 0x224   :  { %5156 = vmatprep.subr.bf16.mxu0 %v7934_v7  ;;  %5672 = vmatprep.subr.bf16.mxu1 %v7937_v8  ;;  %v8024_v7 = vld [vmem:[%s10968_s1 + $0x1304] ss:$16 sps:$4 sm:$0xff]   ;;  %v8027_v8 = vld [vmem:[%s10968_s1 + $0x130c] ss:$16 sps:$4 sm:$0xff]  }
 0x227   :  { %5157 = vmatpush1.bf16.msra.mxu0 %v7932_v9  ;;  %5673 = vmatpush1.bf16.msra.mxu1 %v7935_v10  ;;  %v8022_v9 = vld [vmem:[%s10968_s1 + $0x1300] ss:$16 sps:$4 sm:$0xff]   ;;  %v8025_v10 = vld [vmem:[%s10968_s1 + $0x1308] ss:$16 sps:$4 sm:$0xff]  }
 0x228   :  { %5158 = vmatprep.subr.bf16.mxu0 %v7940_v11  ;;  %5674 = vmatprep.subr.bf16.mxu1 %v7943_v12  ;;  %v8030_v11 = vld [vmem:[%s10968_s1 + $0x1324] ss:$16 sps:$4 sm:$0xff]   ;;  %v8033_v12 = vld [vmem:[%s10968_s1 + $0x132c] ss:$16 sps:$4 sm:$0xff]  }
 0x22b   :  { %5159 = vmatpush1.bf16.msra.mxu0 %v7938_v13  ;;  %5675 = vmatpush1.bf16.msra.mxu1 %v7941_v16  ;;  %v8028_v13 = vld [vmem:[%s10968_s1 + $0x1320] ss:$16 sps:$4 sm:$0xff]   ;;  %v8031_v16 = vld [vmem:[%s10968_s1 + $0x1328] ss:$16 sps:$4 sm:$0xff]  }
 0x22c   :  { %5160 = vmatprep.subr.bf16.mxu0 %v7946_v17  ;;  %5676 = vmatprep.subr.bf16.mxu1 %v7949_v20  ;;  %v8036_v17 = vld [vmem:[%s10968_s1 + $0x1344] ss:$16 sps:$4 sm:$0xff]   ;;  %v8039_v20 = vld [vmem:[%s10968_s1 + $0x134c] ss:$16 sps:$4 sm:$0xff]  }
 0x22f   :  { %5161 = vmatpush1.bf16.msra.mxu0 %v7944_v15  ;;  %5677 = vmatpush1.bf16.msra.mxu1 %v7947_v22  ;;  %v8034_v15 = vld [vmem:[%s10968_s1 + $0x1340] ss:$16 sps:$4 sm:$0xff]   ;;  %v8037_v22 = vld [vmem:[%s10968_s1 + $0x1348] ss:$16 sps:$4 sm:$0xff]  }
 0x230   :  { %5162 = vmatprep.subr.bf16.mxu0 %v7952_v23  ;;  %5678 = vmatprep.subr.bf16.mxu1 %v7955_v18  ;;  %v8042_v23 = vld [vmem:[%s10968_s1 + $0x1364] ss:$16 sps:$4 sm:$0xff]   ;;  %v8045_v18 = vld [vmem:[%s10968_s1 + $0x136c] ss:$16 sps:$4 sm:$0xff]  }
 0x233   :  { %5163 = vmatpush1.bf16.msra.mxu0 %v7950_v25  ;;  %5679 = vmatpush1.bf16.msra.mxu1 %v7953_v26  ;;  %v8040_v25 = vld [vmem:[%s10968_s1 + $0x1360] ss:$16 sps:$4 sm:$0xff]   ;;  %v8043_v26 = vld [vmem:[%s10968_s1 + $0x1368] ss:$16 sps:$4 sm:$0xff]  }
 0x234   :  { %5164 = vmatprep.subr.bf16.mxu0 %v7958_v27  ;;  %5680 = vmatprep.subr.bf16.mxu1 %v7961_v28  ;;  %v8048_v27 = vld [vmem:[%s10968_s1 + $0x1384] ss:$16 sps:$4 sm:$0xff]   ;;  %v8051_v28 = vld [vmem:[%s10968_s1 + $0x138c] ss:$16 sps:$4 sm:$0xff]  }
 0x237   :  { %5165 = vmatpush1.bf16.msra.mxu0 %v7956_v29  ;;  %5681 = vmatpush1.bf16.msra.mxu1 %v7959_v30  ;;  %v8046_v29 = vld [vmem:[%s10968_s1 + $0x1380] ss:$16 sps:$4 sm:$0xff]   ;;  %v8049_v30 = vld [vmem:[%s10968_s1 + $0x1388] ss:$16 sps:$4 sm:$0xff]  }
 0x238   :  { %5166 = vmatprep.subr.bf16.mxu0 %v7964_v31  ;;  %5682 = vmatprep.subr.bf16.mxu1 %v7967_v32  ;;  %v8054_v31 = vld [vmem:[%s10968_s1 + $0x13a4] ss:$16 sps:$4 sm:$0xff]   ;;  %v8057_v32 = vld [vmem:[%s10968_s1 + $0x13ac] ss:$16 sps:$4 sm:$0xff]  }
 0x23b   :  { %5167 = vmatpush1.bf16.msra.mxu0 %v7962_v33  ;;  %5683 = vmatpush1.bf16.msra.mxu1 %v7965_v34  ;;  %v8052_v33 = vld [vmem:[%s10968_s1 + $0x13a0] ss:$16 sps:$4 sm:$0xff]   ;;  %v8055_v34 = vld [vmem:[%s10968_s1 + $0x13a8] ss:$16 sps:$4 sm:$0xff]  }
 0x23c   :  { %5168 = vmatprep.subr.bf16.mxu0 %v7970_v35  ;;  %5684 = vmatprep.subr.bf16.mxu1 %v7973_v36  ;;  %v8060_v35 = vld [vmem:[%s10968_s1 + $0x13c4] ss:$16 sps:$4 sm:$0xff]   ;;  %v8063_v36 = vld [vmem:[%s10968_s1 + $0x13cc] ss:$16 sps:$4 sm:$0xff]  }
 0x23f   :  { %5169 = vmatpush1.bf16.msra.mxu0 %v7968_v14  ;;  %5685 = vmatpush1.bf16.msra.mxu1 %v7971_v38  ;;  %v8058_v14 = vld [vmem:[%s10968_s1 + $0x13c0] ss:$16 sps:$4 sm:$0xff]   ;;  %v8061_v38 = vld [vmem:[%s10968_s1 + $0x13c8] ss:$16 sps:$4 sm:$0xff]  }
 0x240   :  { %5181 = vmatprep.subr.bf16.mxu0 %v7976_v19  ;;  %5697 = vmatprep.subr.bf16.mxu1 %v7979_v24  ;;  %v8066_v19 = vld [vmem:[%s10968_s1 + $0x13e4] ss:$16 sps:$4 sm:$0xff]   ;;  %v8069_v24 = vld [vmem:[%s10968_s1 + $0x13ec] ss:$16 sps:$4 sm:$0xff]  }
 0x242   :  { %5171 = vmatmul.mubr.bf16.vlgmr.msra.gmra.mrb[0].mxu0 %v6097_v39  ;;  %5687 = vmatmul.mubr.bf16.vlgmr.msra.gmra.mrb[0].mxu1 %v6097_v39  ;;  %v8064_v39 = vld [vmem:[%s10968_s1 + $0x13e0] ss:$16 sps:$4 sm:$0xff]  }
 0x243   :  { %5182 = vmatpush1.bf16.msra.mxu0 %v7974_v42  ;;  %5698 = vmatpush1.bf16.msra.mxu1 %v7977_v21  ;;  %v8067_v42 = vld [vmem:[%s10968_s1 + $0x13e8] ss:$16 sps:$4 sm:$0xff]   ;;  %v8072_v21 = vld [vmem:[%s10968_s1 + $0x1404] ss:$16 sps:$4 sm:$0xff]  }
 0x244   :  { %5183 = vmatprep.subr.bf16.mxu0 %v7982_v37  ;;  %5699 = vmatprep.subr.bf16.mxu1 %v7985_v43  ;;  %v8075_v37 = vld [vmem:[%s10968_s1 + $0x140c] ss:$16 sps:$4 sm:$0xff]   ;;  %v6099_v43 = vcombine.low %v10155_v40, %v10160_v41  ;;  %v8073_v40 = vld [vmem:[%s10968_s1 + $0x1408] ss:$16 sps:$4 sm:$0xff]   ;;  %v8078_v41 = vld [vmem:[%s10968_s1 + $0x1424] ss:$16 sps:$4 sm:$0xff]  }
 0x245   :  { %5213 = vmatprep.mubr.bf16.mxu0 %v6100_v44  ;;  %5729 = vmatprep.mubr.bf16.mxu1 %v6100_v44  ;;  %v10361_v44 = vld [vmem:[%s10969_s0 + $0x50] sm:$0xff] }
 0x247   :  { %5184 = vmatpush1.bf16.msra.mxu0 %v7980_v45  ;;  %5700 = vmatpush1.bf16.msra.mxu1 %v7983_v46  ;;  %v10366_v45 = vld [vmem:[%s10969_s0 + $0xb0] sm:$0xff] }
 0x248   :  { %5185 = vmatprep.subr.bf16.mxu0 %v7988_v47  ;;  %5701 = vmatprep.subr.bf16.mxu1 %v7991_v48  ;;  %v8070_v46 = vld [vmem:[%s10968_s1 + $0x1400] ss:$16 sps:$4 sm:$0xff]   ;;  %v8081_v47 = vld [vmem:[%s10968_s1 + $0x142c] ss:$16 sps:$4 sm:$0xff]   ;;  %v6102_v48 = vcombine.high %v10361_v44, %v10366_v45 }
 0x24b   :  { %5186 = vmatpush1.bf16.msra.mxu0 %v7986_v49  ;;  %5702 = vmatpush1.bf16.msra.mxu1 %v7989_v50  ;;  %v8076_v49 = vld [vmem:[%s10968_s1 + $0x1420] ss:$16 sps:$4 sm:$0xff]   ;;  %v8079_v50 = vld [vmem:[%s10968_s1 + $0x1428] ss:$16 sps:$4 sm:$0xff]  }
 0x24c   :  { %5187 = vmatprep.subr.bf16.mxu0 %v7994_v51  ;;  %5703 = vmatprep.subr.bf16.mxu1 %v7997_v52  ;;  %v8084_v51 = vld [vmem:[%s10968_s1 + $0x1444] ss:$16 sps:$4 sm:$0xff]   ;;  %v8087_v52 = vld [vmem:[%s10968_s1 + $0x144c] ss:$16 sps:$4 sm:$0xff]  }
 0x24f   :  { %5188 = vmatpush1.bf16.msra.mxu0 %v7992_v53  ;;  %5704 = vmatpush1.bf16.msra.mxu1 %v7995_v54  ;;  %v8082_v53 = vld [vmem:[%s10968_s1 + $0x1440] ss:$16 sps:$4 sm:$0xff]   ;;  %v8085_v54 = vld [vmem:[%s10968_s1 + $0x1448] ss:$16 sps:$4 sm:$0xff]  }
 0x250   :  { %5189 = vmatprep.subr.bf16.mxu0 %v8000_v55  ;;  %5705 = vmatprep.subr.bf16.mxu1 %v8003_v56  ;;  %v8090_v55 = vld [vmem:[%s10968_s1 + $0x1464] ss:$16 sps:$4 sm:$0xff]   ;;  %v8093_v56 = vld [vmem:[%s10968_s1 + $0x146c] ss:$16 sps:$4 sm:$0xff]  }
 0x253   :  { %5190 = vmatpush1.bf16.msra.mxu0 %v7998_v57  ;;  %5706 = vmatpush1.bf16.msra.mxu1 %v8001_v58  ;;  %v8088_v57 = vld [vmem:[%s10968_s1 + $0x1460] ss:$16 sps:$4 sm:$0xff]   ;;  %v8091_v58 = vld [vmem:[%s10968_s1 + $0x1468] ss:$16 sps:$4 sm:$0xff]  }
 0x254   :  { %5191 = vmatprep.subr.bf16.mxu0 %v8006_v59  ;;  %5707 = vmatprep.subr.bf16.mxu1 %v8009_v60  ;;  %v8096_v59 = vld [vmem:[%s10968_s1 + $0x1484] ss:$16 sps:$4 sm:$0xff]   ;;  %v8099_v60 = vld [vmem:[%s10968_s1 + $0x148c] ss:$16 sps:$4 sm:$0xff]  }
 0x257   :  { %5192 = vmatpush1.bf16.msra.mxu0 %v8004_v61  ;;  %5708 = vmatpush1.bf16.msra.mxu1 %v8007_v62  ;;  %v8094_v61 = vld [vmem:[%s10968_s1 + $0x1480] ss:$16 sps:$4 sm:$0xff]   ;;  %v8097_v62 = vld [vmem:[%s10968_s1 + $0x1488] ss:$16 sps:$4 sm:$0xff]  }
 0x258   :  { %5193 = vmatprep.subr.bf16.mxu0 %v8012_v63  ;;  %5709 = vmatprep.subr.bf16.mxu1 %v8015_v0  ;;  %v8102_v63 = vld [vmem:[%s10968_s1 + $0x14a4] ss:$16 sps:$4 sm:$0xff]   ;;  %v8105_v0 = vld [vmem:[%s10968_s1 + $0x14ac] ss:$16 sps:$4 sm:$0xff]  }
 0x25b   :  { %5194 = vmatpush1.bf16.msra.mxu0 %v8010_v1  ;;  %5710 = vmatpush1.bf16.msra.mxu1 %v8013_v2  ;;  %v8100_v1 = vld [vmem:[%s10968_s1 + $0x14a0] ss:$16 sps:$4 sm:$0xff]   ;;  %v8103_v2 = vld [vmem:[%s10968_s1 + $0x14a8] ss:$16 sps:$4 sm:$0xff]  }
 0x25c   :  { %5195 = vmatprep.subr.bf16.mxu0 %v8018_v3  ;;  %5711 = vmatprep.subr.bf16.mxu1 %v8021_v4  ;;  %v8108_v3 = vld [vmem:[%s10968_s1 + $0x14c4] ss:$16 sps:$4 sm:$0xff]   ;;  %v8111_v4 = vld [vmem:[%s10968_s1 + $0x14cc] ss:$16 sps:$4 sm:$0xff]  }
 0x25f   :  { %5196 = vmatpush1.bf16.msra.mxu0 %v8016_v5  ;;  %5712 = vmatpush1.bf16.msra.mxu1 %v8019_v6  ;;  %v8106_v5 = vld [vmem:[%s10968_s1 + $0x14c0] ss:$16 sps:$4 sm:$0xff]   ;;  %v8109_v6 = vld [vmem:[%s10968_s1 + $0x14c8] ss:$16 sps:$4 sm:$0xff]  }
 0x260   :  { %5197 = vmatprep.subr.bf16.mxu0 %v8024_v7  ;;  %5713 = vmatprep.subr.bf16.mxu1 %v8027_v8  ;;  %v8114_v7 = vld [vmem:[%s10968_s1 + $0x14e4] ss:$16 sps:$4 sm:$0xff]   ;;  %v8117_v8 = vld [vmem:[%s10968_s1 + $0x14ec] ss:$16 sps:$4 sm:$0xff]  }
 0x263   :  { %5198 = vmatpush1.bf16.msra.mxu0 %v8022_v9  ;;  %5714 = vmatpush1.bf16.msra.mxu1 %v8025_v10  ;;  %v8112_v9 = vld [vmem:[%s10968_s1 + $0x14e0] ss:$16 sps:$4 sm:$0xff]   ;;  %v8115_v10 = vld [vmem:[%s10968_s1 + $0x14e8] ss:$16 sps:$4 sm:$0xff]  }
 0x264   :  { %5199 = vmatprep.subr.bf16.mxu0 %v8030_v11  ;;  %5715 = vmatprep.subr.bf16.mxu1 %v8033_v12  ;;  %v8120_v11 = vld [vmem:[%s10968_s1 + $0x1504] ss:$16 sps:$4 sm:$0xff]   ;;  %v8123_v12 = vld [vmem:[%s10968_s1 + $0x150c] ss:$16 sps:$4 sm:$0xff]  }
 0x267   :  { %5200 = vmatpush1.bf16.msra.mxu0 %v8028_v13  ;;  %5716 = vmatpush1.bf16.msra.mxu1 %v8031_v16  ;;  %v8118_v13 = vld [vmem:[%s10968_s1 + $0x1500] ss:$16 sps:$4 sm:$0xff]   ;;  %v8121_v16 = vld [vmem:[%s10968_s1 + $0x1508] ss:$16 sps:$4 sm:$0xff]  }
 0x268   :  { %5201 = vmatprep.subr.bf16.mxu0 %v8036_v17  ;;  %5717 = vmatprep.subr.bf16.mxu1 %v8039_v20  ;;  %v8126_v17 = vld [vmem:[%s10968_s1 + $0x1524] ss:$16 sps:$4 sm:$0xff]   ;;  %v8129_v20 = vld [vmem:[%s10968_s1 + $0x152c] ss:$16 sps:$4 sm:$0xff]  }
 0x26b   :  { %5202 = vmatpush1.bf16.msra.mxu0 %v8034_v15  ;;  %5718 = vmatpush1.bf16.msra.mxu1 %v8037_v22  ;;  %v8124_v15 = vld [vmem:[%s10968_s1 + $0x1520] ss:$16 sps:$4 sm:$0xff]   ;;  %v8127_v22 = vld [vmem:[%s10968_s1 + $0x1528] ss:$16 sps:$4 sm:$0xff]  }
 0x26c   :  { %5203 = vmatprep.subr.bf16.mxu0 %v8042_v23  ;;  %5719 = vmatprep.subr.bf16.mxu1 %v8045_v18  ;;  %v8132_v23 = vld [vmem:[%s10968_s1 + $0x1544] ss:$16 sps:$4 sm:$0xff]   ;;  %v8135_v18 = vld [vmem:[%s10968_s1 + $0x154c] ss:$16 sps:$4 sm:$0xff]  }
 0x26f   :  { %5204 = vmatpush1.bf16.msra.mxu0 %v8040_v25  ;;  %5720 = vmatpush1.bf16.msra.mxu1 %v8043_v26  ;;  %v8130_v25 = vld [vmem:[%s10968_s1 + $0x1540] ss:$16 sps:$4 sm:$0xff]   ;;  %v8133_v26 = vld [vmem:[%s10968_s1 + $0x1548] ss:$16 sps:$4 sm:$0xff]  }
 0x270   :  { %5205 = vmatprep.subr.bf16.mxu0 %v8048_v27  ;;  %5721 = vmatprep.subr.bf16.mxu1 %v8051_v28  ;;  %v8138_v27 = vld [vmem:[%s10968_s1 + $0x1564] ss:$16 sps:$4 sm:$0xff]   ;;  %v8141_v28 = vld [vmem:[%s10968_s1 + $0x156c] ss:$16 sps:$4 sm:$0xff]  }
 0x273   :  { %5206 = vmatpush1.bf16.msra.mxu0 %v8046_v29  ;;  %5722 = vmatpush1.bf16.msra.mxu1 %v8049_v30  ;;  %v8136_v29 = vld [vmem:[%s10968_s1 + $0x1560] ss:$16 sps:$4 sm:$0xff]   ;;  %v8139_v30 = vld [vmem:[%s10968_s1 + $0x1568] ss:$16 sps:$4 sm:$0xff]  }
 0x274   :  { %5207 = vmatprep.subr.bf16.mxu0 %v8054_v31  ;;  %5723 = vmatprep.subr.bf16.mxu1 %v8057_v32  ;;  %v8144_v31 = vld [vmem:[%s10968_s1 + $0x1584] ss:$16 sps:$4 sm:$0xff]   ;;  %v8147_v32 = vld [vmem:[%s10968_s1 + $0x158c] ss:$16 sps:$4 sm:$0xff]  }
 0x277   :  { %5208 = vmatpush1.bf16.msra.mxu0 %v8052_v33  ;;  %5724 = vmatpush1.bf16.msra.mxu1 %v8055_v34  ;;  %v8142_v33 = vld [vmem:[%s10968_s1 + $0x1580] ss:$16 sps:$4 sm:$0xff]   ;;  %v8145_v34 = vld [vmem:[%s10968_s1 + $0x1588] ss:$16 sps:$4 sm:$0xff]  }
 0x278   :  { %5209 = vmatprep.subr.bf16.mxu0 %v8060_v35  ;;  %5725 = vmatprep.subr.bf16.mxu1 %v8063_v36  ;;  %v8150_v35 = vld [vmem:[%s10968_s1 + $0x15a4] ss:$16 sps:$4 sm:$0xff]   ;;  %v8153_v36 = vld [vmem:[%s10968_s1 + $0x15ac] ss:$16 sps:$4 sm:$0xff]  }
 0x27b   :  { %5210 = vmatpush1.bf16.msra.mxu0 %v8058_v14  ;;  %5726 = vmatpush1.bf16.msra.mxu1 %v8061_v38  ;;  %v8148_v14 = vld [vmem:[%s10968_s1 + $0x15a0] ss:$16 sps:$4 sm:$0xff]   ;;  %v8151_v38 = vld [vmem:[%s10968_s1 + $0x15a8] ss:$16 sps:$4 sm:$0xff]  }
 0x27c   :  { %5211 = vmatprep.subr.bf16.mxu0 %v8066_v19  ;;  %5727 = vmatprep.subr.bf16.mxu1 %v8069_v24  ;;  %v8156_v19 = vld [vmem:[%s10968_s1 + $0x15c4] ss:$16 sps:$4 sm:$0xff]   ;;  %v8159_v24 = vld [vmem:[%s10968_s1 + $0x15cc] ss:$16 sps:$4 sm:$0xff]  }
 0x27f   :  { %5212 = vmatpush1.bf16.msra.mxu0 %v8064_v39  ;;  %5728 = vmatpush1.bf16.msra.mxu1 %v8067_v42  ;;  %v8154_v39 = vld [vmem:[%s10968_s1 + $0x15c0] ss:$16 sps:$4 sm:$0xff]   ;;  %v8157_v42 = vld [vmem:[%s10968_s1 + $0x15c8] ss:$16 sps:$4 sm:$0xff]  }
 0x280   :  { %5224 = vmatprep.subr.bf16.mxu0 %v8072_v21  ;;  %5740 = vmatprep.subr.bf16.mxu1 %v8075_v37  ;;  %v8162_v21 = vld [vmem:[%s10968_s1 + $0x15e4] ss:$16 sps:$4 sm:$0xff]   ;;  %v8165_v37 = vld [vmem:[%s10968_s1 + $0x15ec] ss:$16 sps:$4 sm:$0xff]  }
 0x282   :  { %5214 = vmatmul.mubr.bf16.vlgmr.msra.gmra.mrb[0].mxu0 %v6099_v43  ;;  %5730 = vmatmul.mubr.bf16.vlgmr.msra.gmra.mrb[0].mxu1 %v6099_v43  ;;  %v8160_v43 = vld [vmem:[%s10968_s1 + $0x15e0] ss:$16 sps:$4 sm:$0xff]  }
 0x283   :  { %5225 = vmatpush1.bf16.msra.mxu0 %v8070_v46  ;;  %5741 = vmatpush1.bf16.msra.mxu1 %v8073_v40  ;;  %v8163_v46 = vld [vmem:[%s10968_s1 + $0x15e8] ss:$16 sps:$4 sm:$0xff]   ;;  %v8168_v40 = vld [vmem:[%s10968_s1 + $0x1604] ss:$16 sps:$4 sm:$0xff]  }
 0x284   :  { %5226 = vmatprep.subr.bf16.mxu0 %v8078_v41  ;;  %5742 = vmatprep.subr.bf16.mxu1 %v8081_v47  ;;  %v8171_v41 = vld [vmem:[%s10968_s1 + $0x160c] ss:$16 sps:$4 sm:$0xff]   ;;  %v6101_v47 = vcombine.low %v10361_v44, %v10366_v45  ;;  %v8169_v44 = vld [vmem:[%s10968_s1 + $0x1608] ss:$16 sps:$4 sm:$0xff]   ;;  %v8174_v45 = vld [vmem:[%s10968_s1 + $0x1624] ss:$16 sps:$4 sm:$0xff]  }
 0x285   :  { %5256 = vmatprep.mubr.bf16.mxu0 %v6102_v48  ;;  %5772 = vmatprep.mubr.bf16.mxu1 %v6102_v48  ;;  %v10567_v48 = vld [vmem:[%s10969_s0 + $0x58] sm:$0xff] }
 0x287   :  { %5227 = vmatpush1.bf16.msra.mxu0 %v8076_v49  ;;  %5743 = vmatpush1.bf16.msra.mxu1 %v8079_v50  ;;  %v10572_v49 = vld [vmem:[%s10969_s0 + $0xb8] sm:$0xff]  ;;  %v8166_v50 = vld [vmem:[%s10968_s1 + $0x1600] ss:$16 sps:$4 sm:$0xff]  }
 0x288   :  { %5228 = vmatprep.subr.bf16.mxu0 %v8084_v51  ;;  %5744 = vmatprep.subr.bf16.mxu1 %v8087_v52  ;;  %v8177_v51 = vld [vmem:[%s10968_s1 + $0x162c] ss:$16 sps:$4 sm:$0xff]   ;;  %v6104_v52 = vcombine.high %v10567_v48, %v10572_v49 }
 0x28b   :  { %5229 = vmatpush1.bf16.msra.mxu0 %v8082_v53  ;;  %5745 = vmatpush1.bf16.msra.mxu1 %v8085_v54  ;;  %v8172_v53 = vld [vmem:[%s10968_s1 + $0x1620] ss:$16 sps:$4 sm:$0xff]   ;;  %v8175_v54 = vld [vmem:[%s10968_s1 + $0x1628] ss:$16 sps:$4 sm:$0xff]  }
 0x28c   :  { %5230 = vmatprep.subr.bf16.mxu0 %v8090_v55  ;;  %5746 = vmatprep.subr.bf16.mxu1 %v8093_v56  ;;  %v8180_v55 = vld [vmem:[%s10968_s1 + $0x1644] ss:$16 sps:$4 sm:$0xff]   ;;  %v8183_v56 = vld [vmem:[%s10968_s1 + $0x164c] ss:$16 sps:$4 sm:$0xff]  }
 0x28f   :  { %5231 = vmatpush1.bf16.msra.mxu0 %v8088_v57  ;;  %5747 = vmatpush1.bf16.msra.mxu1 %v8091_v58  ;;  %v8178_v57 = vld [vmem:[%s10968_s1 + $0x1640] ss:$16 sps:$4 sm:$0xff]   ;;  %v8181_v58 = vld [vmem:[%s10968_s1 + $0x1648] ss:$16 sps:$4 sm:$0xff]  }
 0x290   :  { %5232 = vmatprep.subr.bf16.mxu0 %v8096_v59  ;;  %5748 = vmatprep.subr.bf16.mxu1 %v8099_v60  ;;  %v8186_v59 = vld [vmem:[%s10968_s1 + $0x1664] ss:$16 sps:$4 sm:$0xff]   ;;  %v8189_v60 = vld [vmem:[%s10968_s1 + $0x166c] ss:$16 sps:$4 sm:$0xff]  }
 0x293   :  { %5233 = vmatpush1.bf16.msra.mxu0 %v8094_v61  ;;  %5749 = vmatpush1.bf16.msra.mxu1 %v8097_v62  ;;  %v8184_v61 = vld [vmem:[%s10968_s1 + $0x1660] ss:$16 sps:$4 sm:$0xff]   ;;  %v8187_v62 = vld [vmem:[%s10968_s1 + $0x1668] ss:$16 sps:$4 sm:$0xff]  }
 0x294   :  { %5234 = vmatprep.subr.bf16.mxu0 %v8102_v63  ;;  %5750 = vmatprep.subr.bf16.mxu1 %v8105_v0  ;;  %v8192_v63 = vld [vmem:[%s10968_s1 + $0x1684] ss:$16 sps:$4 sm:$0xff]   ;;  %v8195_v0 = vld [vmem:[%s10968_s1 + $0x168c] ss:$16 sps:$4 sm:$0xff]  }
 0x297   :  { %5235 = vmatpush1.bf16.msra.mxu0 %v8100_v1  ;;  %5751 = vmatpush1.bf16.msra.mxu1 %v8103_v2  ;;  %v8190_v1 = vld [vmem:[%s10968_s1 + $0x1680] ss:$16 sps:$4 sm:$0xff]   ;;  %v8193_v2 = vld [vmem:[%s10968_s1 + $0x1688] ss:$16 sps:$4 sm:$0xff]  }
 0x298   :  { %5236 = vmatprep.subr.bf16.mxu0 %v8108_v3  ;;  %5752 = vmatprep.subr.bf16.mxu1 %v8111_v4  ;;  %v8198_v3 = vld [vmem:[%s10968_s1 + $0x16a4] ss:$16 sps:$4 sm:$0xff]   ;;  %v8201_v4 = vld [vmem:[%s10968_s1 + $0x16ac] ss:$16 sps:$4 sm:$0xff]  }
 0x29b   :  { %5237 = vmatpush1.bf16.msra.mxu0 %v8106_v5  ;;  %5753 = vmatpush1.bf16.msra.mxu1 %v8109_v6  ;;  %v8196_v5 = vld [vmem:[%s10968_s1 + $0x16a0] ss:$16 sps:$4 sm:$0xff]   ;;  %v8199_v6 = vld [vmem:[%s10968_s1 + $0x16a8] ss:$16 sps:$4 sm:$0xff]  }
 0x29c   :  { %5238 = vmatprep.subr.bf16.mxu0 %v8114_v7  ;;  %5754 = vmatprep.subr.bf16.mxu1 %v8117_v8  ;;  %v8204_v7 = vld [vmem:[%s10968_s1 + $0x16c4] ss:$16 sps:$4 sm:$0xff]   ;;  %v8207_v8 = vld [vmem:[%s10968_s1 + $0x16cc] ss:$16 sps:$4 sm:$0xff]  }
 0x29f   :  { %5239 = vmatpush1.bf16.msra.mxu0 %v8112_v9  ;;  %5755 = vmatpush1.bf16.msra.mxu1 %v8115_v10  ;;  %v8202_v9 = vld [vmem:[%s10968_s1 + $0x16c0] ss:$16 sps:$4 sm:$0xff]   ;;  %v8205_v10 = vld [vmem:[%s10968_s1 + $0x16c8] ss:$16 sps:$4 sm:$0xff]  }
 0x2a0   :  { %5240 = vmatprep.subr.bf16.mxu0 %v8120_v11  ;;  %5756 = vmatprep.subr.bf16.mxu1 %v8123_v12  ;;  %v8210_v11 = vld [vmem:[%s10968_s1 + $0x16e4] ss:$16 sps:$4 sm:$0xff]   ;;  %v8213_v12 = vld [vmem:[%s10968_s1 + $0x16ec] ss:$16 sps:$4 sm:$0xff]  }
 0x2a3   :  { %5241 = vmatpush1.bf16.msra.mxu0 %v8118_v13  ;;  %5757 = vmatpush1.bf16.msra.mxu1 %v8121_v16  ;;  %v8208_v13 = vld [vmem:[%s10968_s1 + $0x16e0] ss:$16 sps:$4 sm:$0xff]   ;;  %v8211_v16 = vld [vmem:[%s10968_s1 + $0x16e8] ss:$16 sps:$4 sm:$0xff]  }
 0x2a4   :  { %5242 = vmatprep.subr.bf16.mxu0 %v8126_v17  ;;  %5758 = vmatprep.subr.bf16.mxu1 %v8129_v20  ;;  %v8216_v17 = vld [vmem:[%s10968_s1 + $0x1704] ss:$16 sps:$4 sm:$0xff]   ;;  %v8219_v20 = vld [vmem:[%s10968_s1 + $0x170c] ss:$16 sps:$4 sm:$0xff]  }
 0x2a7   :  { %5243 = vmatpush1.bf16.msra.mxu0 %v8124_v15  ;;  %5759 = vmatpush1.bf16.msra.mxu1 %v8127_v22  ;;  %v8214_v15 = vld [vmem:[%s10968_s1 + $0x1700] ss:$16 sps:$4 sm:$0xff]   ;;  %v8217_v22 = vld [vmem:[%s10968_s1 + $0x1708] ss:$16 sps:$4 sm:$0xff]  }
 0x2a8   :  { %5244 = vmatprep.subr.bf16.mxu0 %v8132_v23  ;;  %5760 = vmatprep.subr.bf16.mxu1 %v8135_v18  ;;  %v8222_v23 = vld [vmem:[%s10968_s1 + $0x1724] ss:$16 sps:$4 sm:$0xff]   ;;  %v8225_v18 = vld [vmem:[%s10968_s1 + $0x172c] ss:$16 sps:$4 sm:$0xff]  }
 0x2ab   :  { %5245 = vmatpush1.bf16.msra.mxu0 %v8130_v25  ;;  %5761 = vmatpush1.bf16.msra.mxu1 %v8133_v26  ;;  %v8220_v25 = vld [vmem:[%s10968_s1 + $0x1720] ss:$16 sps:$4 sm:$0xff]   ;;  %v8223_v26 = vld [vmem:[%s10968_s1 + $0x1728] ss:$16 sps:$4 sm:$0xff]  }
 0x2ac   :  { %5246 = vmatprep.subr.bf16.mxu0 %v8138_v27  ;;  %5762 = vmatprep.subr.bf16.mxu1 %v8141_v28  ;;  %v8228_v27 = vld [vmem:[%s10968_s1 + $0x1744] ss:$16 sps:$4 sm:$0xff]   ;;  %v8231_v28 = vld [vmem:[%s10968_s1 + $0x174c] ss:$16 sps:$4 sm:$0xff]  }
 0x2af   :  { %5247 = vmatpush1.bf16.msra.mxu0 %v8136_v29  ;;  %5763 = vmatpush1.bf16.msra.mxu1 %v8139_v30  ;;  %v8226_v29 = vld [vmem:[%s10968_s1 + $0x1740] ss:$16 sps:$4 sm:$0xff]   ;;  %v8229_v30 = vld [vmem:[%s10968_s1 + $0x1748] ss:$16 sps:$4 sm:$0xff]  }
 0x2b0   :  { %5248 = vmatprep.subr.bf16.mxu0 %v8144_v31  ;;  %5764 = vmatprep.subr.bf16.mxu1 %v8147_v32  ;;  %v8234_v31 = vld [vmem:[%s10968_s1 + $0x1764] ss:$16 sps:$4 sm:$0xff]   ;;  %v8237_v32 = vld [vmem:[%s10968_s1 + $0x176c] ss:$16 sps:$4 sm:$0xff]  }
 0x2b3   :  { %5249 = vmatpush1.bf16.msra.mxu0 %v8142_v33  ;;  %5765 = vmatpush1.bf16.msra.mxu1 %v8145_v34  ;;  %v8232_v33 = vld [vmem:[%s10968_s1 + $0x1760] ss:$16 sps:$4 sm:$0xff]   ;;  %v8235_v34 = vld [vmem:[%s10968_s1 + $0x1768] ss:$16 sps:$4 sm:$0xff]  }
 0x2b4   :  { %5250 = vmatprep.subr.bf16.mxu0 %v8150_v35  ;;  %5766 = vmatprep.subr.bf16.mxu1 %v8153_v36  ;;  %v8240_v35 = vld [vmem:[%s10968_s1 + $0x1784] ss:$16 sps:$4 sm:$0xff]   ;;  %v8243_v36 = vld [vmem:[%s10968_s1 + $0x178c] ss:$16 sps:$4 sm:$0xff]  }
 0x2b7   :  { %5251 = vmatpush1.bf16.msra.mxu0 %v8148_v14  ;;  %5767 = vmatpush1.bf16.msra.mxu1 %v8151_v38  ;;  %v8238_v14 = vld [vmem:[%s10968_s1 + $0x1780] ss:$16 sps:$4 sm:$0xff]   ;;  %v8241_v38 = vld [vmem:[%s10968_s1 + $0x1788] ss:$16 sps:$4 sm:$0xff]  }
 0x2b8   :  { %5252 = vmatprep.subr.bf16.mxu0 %v8156_v19  ;;  %5768 = vmatprep.subr.bf16.mxu1 %v8159_v24  ;;  %v8246_v19 = vld [vmem:[%s10968_s1 + $0x17a4] ss:$16 sps:$4 sm:$0xff]   ;;  %v8249_v24 = vld [vmem:[%s10968_s1 + $0x17ac] ss:$16 sps:$4 sm:$0xff]  }
 0x2bb   :  { %5253 = vmatpush1.bf16.msra.mxu0 %v8154_v39  ;;  %5769 = vmatpush1.bf16.msra.mxu1 %v8157_v42  ;;  %v8244_v39 = vld [vmem:[%s10968_s1 + $0x17a0] ss:$16 sps:$4 sm:$0xff]   ;;  %v8247_v42 = vld [vmem:[%s10968_s1 + $0x17a8] ss:$16 sps:$4 sm:$0xff]  }
 0x2bc   :  { %5254 = vmatprep.subr.bf16.mxu0 %v8162_v21  ;;  %5770 = vmatprep.subr.bf16.mxu1 %v8165_v37  ;;  %v8252_v21 = vld [vmem:[%s10968_s1 + $0x17c4] ss:$16 sps:$4 sm:$0xff]   ;;  %v8255_v37 = vld [vmem:[%s10968_s1 + $0x17cc] ss:$16 sps:$4 sm:$0xff]  }
 0x2bf   :  { %5255 = vmatpush1.bf16.msra.mxu0 %v8160_v43  ;;  %5771 = vmatpush1.bf16.msra.mxu1 %v8163_v46  ;;  %v8250_v43 = vld [vmem:[%s10968_s1 + $0x17c0] ss:$16 sps:$4 sm:$0xff]   ;;  %v8253_v46 = vld [vmem:[%s10968_s1 + $0x17c8] ss:$16 sps:$4 sm:$0xff]  }
 0x2c0   :  { %5267 = vmatprep.subr.bf16.mxu0 %v8168_v40  ;;  %5783 = vmatprep.subr.bf16.mxu1 %v8171_v41  ;;  %v8258_v40 = vld [vmem:[%s10968_s1 + $0x17e4] ss:$16 sps:$4 sm:$0xff]   ;;  %v8261_v41 = vld [vmem:[%s10968_s1 + $0x17ec] ss:$16 sps:$4 sm:$0xff]  }
 0x2c2   :  { %5257 = vmatmul.mubr.bf16.vlgmr.msra.gmra.mrb[0].mxu0 %v6101_v47  ;;  %5773 = vmatmul.mubr.bf16.vlgmr.msra.gmra.mrb[0].mxu1 %v6101_v47  ;;  %v5850_v47 = vld [vmem:[%s10970_s3 + $0x80] sm:$0xff] }
 0x2c3   :  { %5268 = vmatpush1.bf16.msra.mxu0 %v8166_v50  ;;  %5784 = vmatpush1.bf16.msra.mxu1 %v8169_v44  ;;  %v5851_v50 = vld [vmem:[%s10970_s3 + $0x88] sm:$0xff]  ;;  %v5882_v44 = vld [vmem:[%s10970_s3 + $0x180] sm:$0xff] }
 0x2c4   :  { %5269 = vmatprep.subr.bf16.mxu0 %v8174_v45  ;;  %5785 = vmatprep.subr.bf16.mxu1 %v8177_v51  ;;  %v5883_v45 = vld [vmem:[%s10970_s3 + $0x188] sm:$0xff]  ;;  %v8256_v51 = vld [vmem:[%s10968_s1 + $0x17e0] ss:$16 sps:$4 sm:$0xff]  }
 0x2c5   :  { %5299 = vmatprep.mubr.bf16.mxu0 %v6104_v52  ;;  %5815 = vmatprep.mubr.bf16.mxu1 %v6104_v52  ;;  %v8259_v52 = vld [vmem:[%s10968_s1 + $0x17e8] ss:$16 sps:$4 sm:$0xff]  }
 0x2c7   :  { %5270 = vmatpush1.bf16.msra.mxu0 %v8172_v53  ;;  %5786 = vmatpush1.bf16.msra.mxu1 %v8175_v54  ;;  %v5834_v53 = vld [vmem:[%s10970_s3] sm:$0xff]  ;;  %v5835_v54 = vld [vmem:[%s10970_s3 + $0x8] sm:$0xff] }
 0x2c8   :  { %5271 = vmatprep.subr.bf16.mxu0 %v8180_v55  ;;  %5787 = vmatprep.subr.bf16.mxu1 %v8183_v56  ;;  %v6950_v55 = vpack.c.bf16 %v5851_v50, %v5850_v47  ;;  %v6982_v56 = vpack.c.bf16 %v5883_v45, %v5882_v44  ;;  %v5893_v47 = vld [vmem:[%s10970_s3 + $0x1d8] sm:$0xff]  ;;  %v5844_v45 = vld [vmem:[%s10970_s3 + $0x50] sm:$0xff] }
 0x2cb   :  { %5272 = vmatpush1.bf16.msra.mxu0 %v8178_v57  ;;  %5788 = vmatpush1.bf16.msra.mxu1 %v8181_v58  ;;  %v5866_v57 = vld [vmem:[%s10970_s3 + $0x100] sm:$0xff]  ;;  %v5867_v58 = vld [vmem:[%s10970_s3 + $0x108] sm:$0xff] }
 0x2cc   :  { %5273 = vmatprep.subr.bf16.mxu0 %v8186_v59  ;;  %5789 = vmatprep.subr.bf16.mxu1 %v8189_v60  ;;  %v5852_v59 = vld [vmem:[%s10970_s3 + $0x90] sm:$0xff]  ;;  %v5853_v60 = vld [vmem:[%s10970_s3 + $0x98] sm:$0xff] }
 0x2cf   :  { %5274 = vmatpush1.bf16.msra.mxu0 %v8184_v61  ;;  %5790 = vmatpush1.bf16.msra.mxu1 %v8187_v62  ;;  %v5884_v61 = vld [vmem:[%s10970_s3 + $0x190] sm:$0xff]  ;;  %v5885_v62 = vld [vmem:[%s10970_s3 + $0x198] sm:$0xff] }
 0x2d0   :  { %5275 = vmatprep.subr.bf16.mxu0 %v8192_v63  ;;  %5791 = vmatprep.subr.bf16.mxu1 %v8195_v0  ;;  %v6103_v63 = vcombine.low %v10567_v48, %v10572_v49  ;;  %v6952_v0 = vpack.c.bf16 %v5835_v54, %v5834_v53  ;;  %v5868_v48 = vld [vmem:[%s10970_s3 + $0x110] sm:$0xff]  ;;  %v5869_v49 = vld [vmem:[%s10970_s3 + $0x118] sm:$0xff] }
 0x2d1   :  { %v5876_v54 = vld [vmem:[%s10970_s3 + $0x150] sm:$0xff] }
 0x2d3   :  { %5276 = vmatpush1.bf16.msra.mxu0 %v8190_v1  ;;  %5792 = vmatpush1.bf16.msra.mxu1 %v8193_v2  ;;  %v6984_v1 = vpack.c.bf16 %v5867_v58, %v5866_v57  ;;  %v5836_v2 = vld [vmem:[%s10970_s3 + $0x10] sm:$0xff]  ;;  %v5863_v57 = vld [vmem:[%s10970_s3 + $0xe8] sm:$0xff]  ;;  %v5894_v58 = vld [vmem:[%s10970_s3 + $0x1e0] sm:$0xff] }
 0x2d4   :  { %5277 = vmatprep.subr.bf16.mxu0 %v8198_v3  ;;  %5793 = vmatprep.subr.bf16.mxu1 %v8201_v4  ;;  %v5837_v3 = vld [vmem:[%s10970_s3 + $0x18] sm:$0xff]  ;;  %v6954_v4 = vpack.c.bf16 %v5853_v60, %v5852_v59  ;;  %v5895_v59 = vld [vmem:[%s10970_s3 + $0x1e8] sm:$0xff] }
 0x2d7   :  { %5278 = vmatpush1.bf16.msra.mxu0 %v8196_v5  ;;  %5794 = vmatpush1.bf16.msra.mxu1 %v8199_v6  ;;  %v6986_v5 = vpack.c.bf16 %v5885_v62, %v5884_v61  ;;  %v5854_v6 = vld [vmem:[%s10970_s3 + $0xa0] sm:$0xff] }
 0x2d8   :  { %5279 = vmatprep.subr.bf16.mxu0 %v8204_v7  ;;  %5795 = vmatprep.subr.bf16.mxu1 %v8207_v8  ;;  %v5855_v7 = vld [vmem:[%s10970_s3 + $0xa8] sm:$0xff]  ;;  %v5886_v8 = vld [vmem:[%s10970_s3 + $0x1a0] sm:$0xff] }
 0x2db   :  { %5280 = vmatpush1.bf16.msra.mxu0 %v8202_v9  ;;  %5796 = vmatpush1.bf16.msra.mxu1 %v8205_v10  ;;  %v5887_v9 = vld [vmem:[%s10970_s3 + $0x1a8] sm:$0xff]  ;;  %v6956_v10 = vpack.c.bf16 %v5837_v3, %v5836_v2  ;;  %v5878_v2 = vld [vmem:[%s10970_s3 + $0x160] sm:$0xff] }
 0x2dc   :  { %5281 = vmatprep.subr.bf16.mxu0 %v8210_v11  ;;  %5797 = vmatprep.subr.bf16.mxu1 %v8213_v12  ;;  %v6988_v11 = vpack.c.bf16 %v5869_v49, %v5868_v48  ;;  %v5838_v12 = vld [vmem:[%s10970_s3 + $0x20] sm:$0xff]  ;;  %v5864_v48 = vld [vmem:[%s10970_s3 + $0xf0] sm:$0xff]  ;;  %v5865_v49 = vld [vmem:[%s10970_s3 + $0xf8] sm:$0xff] }
 0x2df   :  { %5282 = vmatpush1.bf16.msra.mxu0 %v8208_v13  ;;  %5798 = vmatpush1.bf16.msra.mxu1 %v8211_v16  ;;  %v5839_v13 = vld [vmem:[%s10970_s3 + $0x28] sm:$0xff]  ;;  %v6958_v16 = vpack.c.bf16 %v5855_v7, %v5854_v6  ;;  %v5896_v6 = vld [vmem:[%s10970_s3 + $0x1f0] sm:$0xff]  ;;  %v6978_v7 = vpack.c.bf16 %v5865_v49, %v5864_v48 }
 0x2e0   :  { %5283 = vmatprep.subr.bf16.mxu0 %v8216_v17  ;;  %5799 = vmatprep.subr.bf16.mxu1 %v8219_v20  ;;  %v6990_v17 = vpack.c.bf16 %v5887_v9, %v5886_v8  ;;  %v5870_v20 = vld [vmem:[%s10970_s3 + $0x120] sm:$0xff]  ;;  %v5897_v8 = vld [vmem:[%s10970_s3 + $0x1f8] sm:$0xff]  ;;  %v5848_v9 = vld [vmem:[%s10970_s3 + $0x70] sm:$0xff] }
 0x2e3   :  { %5284 = vmatpush1.bf16.msra.mxu0 %v8214_v15  ;;  %5800 = vmatpush1.bf16.msra.mxu1 %v8217_v22  ;;  %v5871_v15 = vld [vmem:[%s10970_s3 + $0x128] sm:$0xff]  ;;  %v5856_v22 = vld [vmem:[%s10970_s3 + $0xb0] sm:$0xff] }
 0x2e4   :  { %5285 = vmatprep.subr.bf16.mxu0 %v8222_v23  ;;  %5801 = vmatprep.subr.bf16.mxu1 %v8225_v18  ;;  %v5857_v23 = vld [vmem:[%s10970_s3 + $0xb8] sm:$0xff]  ;;  %v5888_v18 = vld [vmem:[%s10970_s3 + $0x1b0] sm:$0xff] }
 0x2e7   :  { %5286 = vmatpush1.bf16.msra.mxu0 %v8220_v25  ;;  %5802 = vmatpush1.bf16.msra.mxu1 %v8223_v26  ;;  %v5889_v25 = vld [vmem:[%s10970_s3 + $0x1b8] sm:$0xff]  ;;  %v6960_v26 = vpack.c.bf16 %v5839_v13, %v5838_v12  ;;  %v5880_v13 = vld [vmem:[%s10970_s3 + $0x170] sm:$0xff] }
 0x2e8   :  { %5287 = vmatprep.subr.bf16.mxu0 %v8228_v27  ;;  %5803 = vmatprep.subr.bf16.mxu1 %v8231_v28  ;;  %v6992_v27 = vpack.c.bf16 %v5871_v15, %v5870_v20  ;;  %v5840_v28 = vld [vmem:[%s10970_s3 + $0x30] sm:$0xff]  ;;  %v814_v20 = vlaneseq }
 0x2ea   :  { %v815_v15 = vshrl.u32 %v814_v20, 7 }
 0x2eb   :  { %5288 = vmatpush1.bf16.msra.mxu0 %v8226_v29  ;;  %5804 = vmatpush1.bf16.msra.mxu1 %v8229_v30  ;;  %v5841_v29 = vld [vmem:[%s10970_s3 + $0x38] sm:$0xff]  ;;  %v6962_v30 = vpack.c.bf16 %v5857_v23, %v5856_v22 }
 0x2ec   :  { %5289 = vmatprep.subr.bf16.mxu0 %v8234_v31  ;;  %5805 = vmatprep.subr.bf16.mxu1 %v8237_v32  ;;  %v6994_v31 = vpack.c.bf16 %v5889_v25, %v5888_v18  ;;  %v5872_v32 = vld [vmem:[%s10970_s3 + $0x130] sm:$0xff]  ;;  %v816_v22 = vsub.s32 0, %v815_v15  ;;  %v824_v23 = vsub.s32 2, %v815_v15  ;;  %v812_v18 = vld [vmem:[%s10971_s2] sm:$0xf]  ;;  %v820_v25 = vsub.s32 1, %v815_v15 }
 0x2ef   :  { %5290 = vmatpush1.bf16.msra.mxu0 %v8232_v33  ;;  %5806 = vmatpush1.bf16.msra.mxu1 %v8235_v34  ;;  %v5873_v33 = vld [vmem:[%s10970_s3 + $0x138] sm:$0xff]  ;;  %v5858_v34 = vld [vmem:[%s10970_s3 + $0xc0] sm:$0xff] }
 0x2f0   :  { %5291 = vmatprep.subr.bf16.mxu0 %v8240_v35  ;;  %5807 = vmatprep.subr.bf16.mxu1 %v8243_v36  ;;  %v5859_v35 = vld [vmem:[%s10970_s3 + $0xc8] sm:$0xff]  ;;  %v5890_v36 = vld [vmem:[%s10970_s3 + $0x1c0] sm:$0xff] }
 0x2f3   :  { %5292 = vmatpush1.bf16.msra.mxu0 %v8238_v14  ;;  %5808 = vmatpush1.bf16.msra.mxu1 %v8241_v38  ;;  %v5891_v14 = vld [vmem:[%s10970_s3 + $0x1c8] sm:$0xff]  ;;  %v6964_v38 = vpack.c.bf16 %v5841_v29, %v5840_v28  ;;  %v825_v28 = vrot.slane %v812_v18, %v824_v23  ;;  %v821_v29 = vrot.slane %v812_v18, %v820_v25 }
 0x2f4   :  { %5293 = vmatprep.subr.bf16.mxu0 %v8246_v19  ;;  %5809 = vmatprep.subr.bf16.mxu1 %v8249_v24  ;;  %v6996_v19 = vpack.c.bf16 %v5873_v33, %v5872_v32  ;;  %v5842_v24 = vld [vmem:[%s10970_s3 + $0x40] sm:$0xff] }
 0x2f7   :  { %5294 = vmatpush1.bf16.msra.mxu0 %v8244_v39  ;;  %5810 = vmatpush1.bf16.msra.mxu1 %v8247_v42  ;;  %v5843_v39 = vld [vmem:[%s10970_s3 + $0x48] sm:$0xff]  ;;  %v6966_v42 = vpack.c.bf16 %v5859_v35, %v5858_v34 }
 0x2f8   :  { %5295 = vmatprep.subr.bf16.mxu0 %v8252_v21  ;;  %5811 = vmatprep.subr.bf16.mxu1 %v8255_v37  ;;  %v6998_v21 = vpack.c.bf16 %v5891_v14, %v5890_v36  ;;  %v5874_v37 = vld [vmem:[%s10970_s3 + $0x140] sm:$0xff]  ;;  %v6968_v50 = vpack.c.bf16 %v5843_v39, %v5842_v24 }
 0x2fb   :  { %5296 = vmatpush1.bf16.msra.mxu0 %v8250_v43  ;;  %5812 = vmatpush1.bf16.msra.mxu1 %v8253_v46  ;;  %v5875_v43 = vld [vmem:[%s10970_s3 + $0x148] sm:$0xff]  ;;  %v5860_v46 = vld [vmem:[%s10970_s3 + $0xd0] sm:$0xff] }
 0x2fc   :  { %5297 = vmatprep.subr.bf16.mxu0 %v8258_v40  ;;  %5813 = vmatprep.subr.bf16.mxu1 %v8261_v41  ;;  %v5861_v40 = vld [vmem:[%s10970_s3 + $0xd8] sm:$0xff]  ;;  %v5892_v41 = vld [vmem:[%s10970_s3 + $0x1d0] sm:$0xff]  ;;  %v7000_v44 = vpack.c.bf16 %v5875_v43, %v5874_v37 }
 0x2fd   :  { %v7002_v53 = vpack.c.bf16 %v5893_v47, %v5892_v41 }
 0x2ff   :  { %5298 = vmatpush1.bf16.msra.mxu0 %v8256_v51  ;;  %5814 = vmatpush1.bf16.msra.mxu1 %v8259_v52  ;;  %v5845_v51 = vld [vmem:[%s10970_s3 + $0x58] sm:$0xff]  ;;  %v6970_v52 = vpack.c.bf16 %v5861_v40, %v5860_v46 }
 0x300   :  { %6951 = vmatprep.subr.bf16.mxu0 %v6950_v55  ;;  %6983 = vmatprep.subr.bf16.mxu1 %v6982_v56  ;;  %v5877_v55 = vld [vmem:[%s10970_s3 + $0x158] sm:$0xff]  ;;  %v5862_v56 = vld [vmem:[%s10970_s3 + $0xe0] sm:$0xff]  ;;  %v6972_v60 = vpack.c.bf16 %v5845_v51, %v5844_v45 }
 0x301   :  { %v7004_v61 = vpack.c.bf16 %v5877_v55, %v5876_v54  ;;  %v6974_v62 = vpack.c.bf16 %v5863_v57, %v5862_v56  ;;  %v6873_v55 = vld [vmem:[%s10972_s4] ss:$0 sm:$0xff] }
 0x302   :  { %5300 = vmatmul.mubr.bf16.vlgmr.msra.gmra.mrb[0].mxu0 %v6103_v63  ;;  %5816 = vmatmul.mubr.bf16.vlgmr.msra.gmra.mrb[0].mxu1 %v6103_v63  ;;  %v7006_v63 = vpack.c.bf16 %v5895_v59, %v5894_v58 }
 0x303   :  { %6953 = vmatpush3.bf16.msra.mxu0 %v6952_v0  ;;  %6985 = vmatpush3.bf16.msra.mxu1 %v6984_v1  ;;  %v5846_v0 = vld [vmem:[%s10970_s3 + $0x60] sm:$0xff]  ;;  %v5847_v1 = vld [vmem:[%s10970_s3 + $0x68] sm:$0xff] }
 0x304   :  { %6955 = vmatprep.subr.bf16.mxu0 %v6954_v4  ;;  %6987 = vmatprep.subr.bf16.mxu1 %v6986_v5  ;;  %v6976_v3 = vpack.c.bf16 %v5847_v1, %v5846_v0  ;;  %v5879_v4 = vld [vmem:[%s10970_s3 + $0x168] sm:$0xff] }
 0x305   :  { %v7008_v5 = vpack.c.bf16 %v5879_v4, %v5878_v2 }
 0x307   :  { %6957 = vmatpush3.bf16.msra.mxu0 %v6956_v10  ;;  %6989 = vmatpush3.bf16.msra.mxu1 %v6988_v11  ;;  %v5849_v10 = vld [vmem:[%s10970_s3 + $0x78] sm:$0xff]  ;;  %v7010_v11 = vpack.c.bf16 %v5897_v8, %v5896_v6 }
 0x308   :  { %6959 = vmatprep.subr.bf16.mxu0 %v6958_v16  ;;  %6991 = vmatprep.subr.bf16.mxu1 %v6990_v17  ;;  %v6980_v12 = vpack.c.bf16 %v5849_v10, %v5848_v9  ;;  %v5881_v16 = vld [vmem:[%s10970_s3 + $0x178] sm:$0xff] }
 0x309   :  { %v7012_v17 = vpack.c.bf16 %v5881_v16, %v5880_v13 }
 0x30b   :  { %6961 = vmatpush3.bf16.msra.mxu0 %v6960_v26  ;;  %6993 = vmatpush3.bf16.msra.mxu1 %v6992_v27  ;;  %v828_v26 = vsub.s32 3, %v815_v15  ;;  %v817_v27 = vrot.slane %v812_v18, %v816_v22 }
 0x30c   :  { %6963 = vmatprep.subr.bf16.mxu0 %v6962_v30  ;;  %6995 = vmatprep.subr.bf16.mxu1 %v6994_v31 }
 0x30d   :  { %v829_v30 = vrot.slane %v812_v18, %v828_v26 }
 0x30f   :  { %6965 = vmatpush3.bf16.msra.mxu0 %v6964_v38  ;;  %6997 = vmatpush3.bf16.msra.mxu1 %v6996_v19 }
 0x310   :  { %6967 = vmatprep.subr.bf16.mxu0 %v6966_v42  ;;  %6999 = vmatprep.subr.bf16.mxu1 %v6998_v21 }
 0x313   :  { %6969 = vmatpush3.bf16.msra.mxu0 %v6968_v50  ;;  %7001 = vmatpush3.bf16.msra.mxu1 %v7000_v44 }
 0x314   :  { %6971 = vmatprep.subr.bf16.mxu0 %v6970_v52  ;;  %7003 = vmatprep.subr.bf16.mxu1 %v7002_v53 }
 0x317   :  { %6973 = vmatpush3.bf16.msra.mxu0 %v6972_v60  ;;  %7005 = vmatpush3.bf16.msra.mxu1 %v7004_v61 }
 0x318   :  { %6975 = vmatprep.subr.bf16.mxu0 %v6974_v62  ;;  %7007 = vmatprep.subr.bf16.mxu1 %v7006_v63 }
 0x31b   :  { %6977 = vmatpush3.bf16.msra.mxu0 %v6976_v3  ;;  %7009 = vmatpush3.bf16.msra.mxu1 %v7008_v5 }
 0x31c   :  { %6979 = vmatprep.subr.bf16.mxu0 %v6978_v7  ;;  %7011 = vmatprep.subr.bf16.mxu1 %v7010_v11 }
 0x31f   :  { %6981 = vmatpush3.bf16.msra.mxu0 %v6980_v12  ;;  %7013 = vmatpush3.bf16.msra.mxu1 %v7012_v17 }
 0x3d5   :  { %v5301_v31 = vpop.f32.mrb[0].mxu0  ;;  %v5817_v32 = vpop.f32.mrb[0].mxu1 }
 0x3d6   :  { %v7014_v33 = vadd.f32 %v5301_v31, %v817_v27  ;;  %v7018_v34 = vadd.f32 %v5817_v32, %v825_v28  ;;  %v5303_v35 = vpop.f32.mrb[1].mxu0  ;;  %v5819_v36 = vpop.f32.mrb[1].mxu1 }
 0x3d7   :  { %v7015_v14 = vadd.f32 %v5303_v35, %v821_v29  ;;  %v7019_v38 = vadd.f32 %v5819_v36, %v829_v30  ;;  %v5305_v19 = vpop.f32.mrb[2].mxu0  ;;  %v5821_v24 = vpop.f32.mrb[2].mxu1 }
 0x3d8   :  { %v5307_v39 = vpop.f32.mrb[3].mxu0  ;;  %v5823_v42 = vpop.f32.mrb[3].mxu1  ;;  %v5826_v40 = vmax.f32 %v7014_v33, 0.0  ;;  %v5828_v41 = vmax.f32 %v7018_v34, 0.0  ;;  %v7016_v47 = vadd.f32 %v5305_v19, %v817_v27  ;;  %v7020_v50 = vadd.f32 %v5821_v24, %v825_v28 }
 0x3d9   :  { %v5827_v21 = vmax.f32 %v7015_v14, 0.0  ;;  %v5829_v37 = vmax.f32 %v7019_v38, 0.0  ;;  %v7017_v43 = vadd.f32 %v5307_v39, %v821_v29  ;;  %v7021_v46 = vadd.f32 %v5823_v42, %v829_v30 }
 0x3da   :  { %v5830_v51 = vmax.f32 %v7016_v47, 0.0  ;;  %v5832_v52 = vmax.f32 %v7020_v50, 0.0 }
 0x3db   :  { %v5831_v44 = vmax.f32 %v7017_v43, 0.0  ;;  %v5833_v45 = vmax.f32 %v7021_v46, 0.0  ;;  %5969 = vmatprep.mubr.f32.mxu0 %v5827_v21  ;;  %6044 = vmatprep.mubr.f32.mxu1 %v5829_v37 }
 0x3dc   :  { %5970 = vmatmul.mubr.f32.vlgmr.msra.gmra.mrb[4].mxu0 %v5826_v40  ;;  %6045 = vmatmul.mubr.f32.vlgmr.msra.gmra.mrb[4].mxu1 %v5828_v41 }
 0x3dd   :  { %5974 = vmatprep.mubr.f32.mxu0 %v5831_v44  ;;  %6049 = vmatprep.mubr.f32.mxu1 %v5833_v45 }
 0x3e0   :  { %5975 = vmatmul.mubr.f32.gmra.mrb[6].mxu0 %v5830_v51  ;;  %6050 = vmatmul.mubr.f32.gmra.mrb[6].mxu1 %v5832_v52 }
 0x4af   :  { %v6906_v53 = vpop.f32.mrb[4].mxu0  ;;  %v6944_v54 = vpop.f32.mrb[4].mxu1 }
 0x4b0   :  { %v6907_v56 = vpop.f32.mrb[5].mxu0  ;;  %v6945_v57 = vpop.f32.mrb[5].mxu1 }
 0x4b1   :  { %v6908_v58 = vadd.f32 %v6907_v56, %v6906_v53  ;;  %v6946_v59 = vadd.f32 %v6945_v57, %v6944_v54 }
 0x4b3   :  { %v5972_v60 = vadd.f32 %v6908_v58, %v6873_v55  ;;  %v6909_v61 = vpop.f32.mrb[6].mxu0  ;;  %v6947_v62 = vpop.f32.mrb[6].mxu1 }
 0x4b4   :  { %v6910_v63 = vpop.f32.mrb[7].mxu0  ;;  %v6948_v0 = vpop.f32.mrb[7].mxu1 }
 0x4b5   :  { %v6911_v1 = vadd.f32 %v6910_v63, %v6909_v61  ;;  %v6949_v2 = vadd.f32 %v6948_v0, %v6947_v62  ;;  %v6047_v3 = vadd.f32 %v6946_v59, %v5972_v60 }
 0x4b7   :  { %v5977_v4 = vadd.f32 %v6911_v1, %v6873_v55  ;;  %6055 = vmax.xlane.f32.xlu0 %v6047_v3 }
 0x4b9   :  { %v6052_v5 = vadd.f32 %v6949_v2, %v5977_v4 }
 0x4bb   :  { %6057 = vmax.xlane.f32.xlu0 %v6052_v5 }
 0x544   :  { %v6056_v48 = vpop.xlane.xlu0 %6055 }
 0x545   :  { %v6059_v49 = vsub.f32 %v6047_v3, %v6056_v48 }
 0x547   :  { %v6061_v6 = vmul.f32 1.442695, %v6059_v49 }
 0x548   :  { %v6058_v7 = vpop.xlane.xlu0 %6057 }
 0x549   :  { %v6060_v8 = vsub.f32 %v6052_v5, %v6058_v7  ;;  %8262 = vpow2.f32 %v6061_v6 }
 0x54b   :  { %v6063_v9 = vmul.f32 1.442695, %v6060_v8 }
 0x54d   :  { %8264 = vpow2.f32 %v6063_v9 }
 0x553   :  { %v8263_v10 = vpop.eup %8262 }
 0x554   :  { %6065 = vadd.xlane.f32.xlu1 %v8263_v10 }
 0x557   :  { %v8265_v11 = vpop.eup %8264 }
 0x558   :  { %6067 = vadd.xlane.f32.xlu1 %v8265_v11 }
 0x5e1   :  { %v6066_v12 = vpop.xlane.xlu1 %6065 }
 0x5e2   :  { %8266 = vlog2.f32 %v6066_v12 }
 0x5e5   :  { %v6068_v13 = vpop.xlane.xlu1 %6067 }
 0x5e6   :  { %8268 = vlog2.f32 %v6068_v13 }
 0x5ec   :  { %v8267_v16 = vpop.eup %8266 }
 0x5ed   :  { %v6070_v17 = vmul.f32 0.6931472, %v8267_v16 }
 0x5ef   :  { %v6073_v20 = vsub.f32 %v6059_v49, %v6070_v17 }
 0x5f0   :  { %v8269_v15 = vpop.eup %8268 }
 0x5f1   :  { %6075 = vst [vmem:[%s10973_s5] sm:$0xff] %v6073_v20  ;;  %v6072_v22 = vmul.f32 0.6931472, %v8269_v15 }
 0x5f3   :  { %v6074_v23 = vsub.f32 %v6060_v8, %v6072_v22 }
 0x5f5   :  { %6076 = vst [vmem:[%s10973_s5 + $0x8] sm:$0xff] %v6074_v23 }

</bundles_post_ra>
